<compile_context>
chip_gen: v6e
topology: v6e:2x2x1
jax: 0.10.0
libtpu: 0.0.40
codegen_flags: <defaults>
</compile_context>

<pallas_src>
import functools

import jax
import jax.numpy as jnp
from jax.experimental import pallas as pl
from jax.experimental.pallas import tpu as pltpu

BN_EPS = 1e-5


def _round_up(x, m):
    return (x + m - 1) // m * m


# ---------------------------------------------------------------------------
# Fused kernel: conv1+BN+ReLU -> conv4+BN+ReLU -> conv7(+bias)+BN+ReLU+softmax
# ---------------------------------------------------------------------------
def _fused_basec_kernel(mask_ref, x_ref, w1_ref, w2_ref, w3_ref, b3_ref, o_ref,
                        *, offsets, shift, guard, m_out, inv_n, eps):
    mask = mask_ref[...]                       # (1, m_out) f32; 1 on valid pixels

    def conv(act_bf16, w_ref, bias):
        # Lane-aligned zero guard on both sides so every conv tap is a static
        # slice of one padded value (no wrap-around; valid outputs never read
        # across images because the per-image zero ring is part of the canvas).
        cin = act_bf16.shape[0]
        zeros = jnp.zeros((cin, guard), jnp.bfloat16)
        xp = jnp.concatenate([zeros, act_bf16, zeros], axis=1)
        acc = None
        for t, off in enumerate(offsets):
            start = guard - shift + off        # static python int
            part = jnp.dot(w_ref[t], xp[:, start:start + m_out],
                           preferred_element_type=jnp.float32)
            acc = part if acc is None else acc + part
        if bias is not None:
            acc = acc + bias                   # (Cout, 1) broadcast
        return acc                             # (Cout, m_out) f32

    def bn_relu(acc):
        # Batch statistics over valid pixels only (mask kills ring / tail).
        am = acc * mask
        s = jnp.sum(am, axis=1, keepdims=True)
        ss = jnp.sum(am * acc, axis=1, keepdims=True)
        mean = s * inv_n
        var = jnp.maximum(ss * inv_n - mean * mean, 0.0)
        z = (acc - mean) * jax.lax.rsqrt(var + eps)
        return jnp.maximum(z, 0.0)

    # layer 1: conv1 + bn1 + relu
    z = bn_relu(conv(x_ref[...], w1_ref, None))
    a1 = (z * mask).astype(jnp.bfloat16)       # zero ring == next conv's padding
    # layer 2: conv4 + bn4 + relu
    z = bn_relu(conv(a1, w2_ref, None))
    a2 = (z * mask).astype(jnp.bfloat16)
    # layer 3: conv7 + bias + bn7 + relu + channel softmax (exact division)
    z = bn_relu(conv(a2, w3_ref, b3_ref[...]))
    mx = jnp.max(z, axis=0, keepdims=True)
    e = jnp.exp(z - mx)
    o_ref[...] = e / jnp.sum(e, axis=0, keepdims=True)


def _full_spec(arr):
    n = arr.ndim
    return pl.BlockSpec(arr.shape, lambda i: (0,) * n)


# ---------------------------------------------------------------------------
# Parameters + forward.
# ---------------------------------------------------------------------------
def make_basec_params(key, channels=8, pn_size=3, kernel_size=3, avg=0.0, std=0.1):
    k1, k2, k3 = jax.random.split(key, 3)
    conv1_kernel = avg + std * jax.random.normal(
        k1, (channels, 2, kernel_size, kernel_size), jnp.float32)
    conv4_kernel = avg + std * jax.random.normal(
        k2, (2 * channels, channels, kernel_size, kernel_size), jnp.float32)
    conv7_kernel = avg + std * jax.random.normal(
        k3, (pn_size * pn_size, 2 * channels, kernel_size, kernel_size), jnp.float32)
    assert (pn_size * pn_size) % 2 == 1
    conv7_bias = jnp.zeros((pn_size * pn_size,), jnp.float32)
    conv7_bias = conv7_bias.at[(pn_size * pn_size) // 2].set(1.0)
    return dict(conv1_kernel=conv1_kernel, conv4_kernel=conv4_kernel,
                conv7_kernel=conv7_kernel, conv7_bias=conv7_bias,
                kernel_size=kernel_size)


@functools.partial(jax.jit, static_argnames=("kernel_size",))
def _basec_forward_impl(conv1_k, conv4_k, conv7_k, conv7_b,
                        input_src, input_thin, *, kernel_size):
    input_all = jnp.concatenate([input_src, input_thin], axis=1)   # (N, 2, H, W)
    N, cin, H, W = input_all.shape
    assert cin == 2
    ks = kernel_size

    pad = ks // 2
    Hp, Wp = H + 2 * pad, W + 2 * pad
    shift = pad * Wp + pad                     # flat offset of the center tap
    m_canvas = N * Hp * Wp
    m_out = _round_up(m_canvas, 128)
    guard = max(128, _round_up(shift, 128))

    c1, c2, c3 = conv1_k.shape[0], conv4_k.shape[0], conv7_k.shape[0]
    # Whole-network fusion: everything VMEM-resident.  Fail loudly instead of
    # letting Mosaic OOM for very large problem sizes.
    approx_bytes = 6 * m_out * (2 + c1 + c2 + c3) * 4
    assert approx_bytes < 24 * 1024 * 1024, "fused baseC kernel too large for VMEM"

    # NCHW -> zero-padded, channel-major, flattened canvas (2, m_out) bf16.
    xpad = jnp.pad(input_all, ((0, 0), (0, 0), (pad, pad), (pad, pad)))
    canvas = jnp.transpose(xpad, (1, 0, 2, 3)).reshape(2, m_canvas)
    canvas = jnp.pad(canvas, ((0, 0), (0, m_out - m_canvas))).astype(jnp.bfloat16)

    # Validity mask: 1 on interior pixels, 0 on padding ring / lane tail.
    idx = jnp.arange(m_out, dtype=jnp.int32)
    rem = idx % (Hp * Wp)
    hp = rem // Wp
    wp = rem % Wp
    valid = ((idx < m_canvas) & (hp >= pad) & (hp < pad + H)
             & (wp >= pad) & (wp < pad + W))
    mask = valid.astype(jnp.float32)[None, :]                      # (1, m_out)

    def taps(w):   # (O, I, kh, kw) -> (ks*ks, O, I) bf16, tap-major (kh, kw)
        O, I = w.shape[0], w.shape[1]
        return jnp.transpose(w, (2, 3, 0, 1)).reshape(ks * ks, O, I).astype(jnp.bfloat16)

    w1, w2, w3 = taps(conv1_k), taps(conv4_k), taps(conv7_k)
    b3 = conv7_b.astype(jnp.float32)[:, None]                      # (c3, 1)

    offsets = tuple(kh * Wp + kw for kh in range(ks) for kw in range(ks))
    kern = functools.partial(
        _fused_basec_kernel, offsets=offsets, shift=shift, guard=guard,
        m_out=m_out, inv_n=1.0 / (N * H * W), eps=BN_EPS)

    out = pl.pallas_call(
        kern,
        grid=(1,),
        in_specs=[_full_spec(mask), _full_spec(canvas), _full_spec(w1),
                  _full_spec(w2), _full_spec(w3), _full_spec(b3)],
        out_specs=pl.BlockSpec((c3, m_out), lambda i: (0, 0)),
        out_shape=jax.ShapeDtypeStruct((c3, m_out), jnp.float32),
        compiler_params=pltpu.CompilerParams(
            dimension_semantics=("arbitrary",)),
    )(mask, canvas, w1, w2, w3, b3)

    # (c3, m_out) -> (N, c3, H, W): keep valid canvas region, drop padding ring.
    res = out[:, :m_canvas].reshape(c3, N, Hp, Wp)[:, :, pad:pad + H, pad:pad + W]
    return jnp.transpose(res, (1, 0, 2, 3))


def basec_forward(params, input_src, input_thin):
    """input_src, input_thin: NCHW with 1 channel each (PyTorch convention)."""
    # TODO(synk): BatchNorm running-stat (momentum) buffer updates are not
    # produced -- only the training-mode forward output, as in the reference.
    return _basec_forward_impl(params["conv1_kernel"], params["conv4_kernel"],
                               params["conv7_kernel"], params["conv7_bias"],
                               input_src, input_thin,
                               kernel_size=params["kernel_size"])


if __name__ == "__main__":
    key = jax.random.PRNGKey(0)
    kp, ki1, ki2 = jax.random.split(key, 3)

    channels, pn_size, kernel_size = 8, 3, 3
    N, H, W = 2, 16, 16

    params = make_basec_params(kp, channels=channels, pn_size=pn_size,
                               kernel_size=kernel_size, avg=0.0, std=0.1)

    input_src = jax.random.uniform(ki1, (N, 1, H, W), jnp.float32)
    input_thin = jax.random.uniform(ki2, (N, 1, H, W), jnp.float32)

    out = basec_forward(params, input_src, input_thin)
    out = jax.block_until_ready(out)

    assert out.shape == (N, pn_size * pn_size, H, W)
    assert bool(jnp.all(jnp.isfinite(out)))
    # channel softmax must sum to 1 (exact f32 division in-kernel)
    sums = jnp.sum(out, axis=1)
    assert jnp.allclose(sums, 1.0, atol=1e-4)

    print("KERNEL_OK")
</pallas_src>

<mosaic_0001>
module attributes {stable_mosaic.version = 11 : i64} {
  func.func @_fused_basec_kernel(%arg0: i32, %arg1: memref<1x768xf32, #tpu.memory_space<vmem>>, %arg2: memref<2x768xbf16, #tpu.memory_space<vmem>>, %arg3: memref<9x8x2xbf16, #tpu.memory_space<vmem>>, %arg4: memref<9x16x8xbf16, #tpu.memory_space<vmem>>, %arg5: memref<9x9x16xbf16, #tpu.memory_space<vmem>>, %arg6: memref<9x1xf32, #tpu.memory_space<vmem>>, %arg7: memref<9x768xf32, #tpu.memory_space<vmem>>) attributes {dimension_semantics = [#tpu.dimension_semantics<arbitrary>], iteration_bounds = array<i64: 1>, scalar_prefetch = 0 : i64, scratch_operands = 0 : i64, tpu.core_type = #tpu.core_type<tc>, window_params = [{pipeline_mode = #tpu.pipeline_mode<synchronous>, transform_indices = @transform_0, window_bounds = array<i64: 1, 768>}, {pipeline_mode = #tpu.pipeline_mode<synchronous>, transform_indices = @transform_1, window_bounds = array<i64: 2, 768>}, {pipeline_mode = #tpu.pipeline_mode<synchronous>, transform_indices = @transform_2, window_bounds = array<i64: 9, 8, 2>}, {pipeline_mode = #tpu.pipeline_mode<synchronous>, transform_indices = @transform_3, window_bounds = array<i64: 9, 16, 8>}, {pipeline_mode = #tpu.pipeline_mode<synchronous>, transform_indices = @transform_4, window_bounds = array<i64: 9, 9, 16>}, {pipeline_mode = #tpu.pipeline_mode<synchronous>, transform_indices = @transform_5, window_bounds = array<i64: 9, 1>}, {pipeline_mode = #tpu.pipeline_mode<synchronous>, transform_indices = @transform_6, window_bounds = array<i64: 9, 768>}]} {
    %c0 = arith.constant 0 : index
    %c0_0 = arith.constant 0 : index
    %0 = vector.load %arg1[%c0, %c0_0] : memref<1x768xf32, #tpu.memory_space<vmem>>, vector<1x768xf32>
    %c0_1 = arith.constant 0 : index
    %c0_2 = arith.constant 0 : index
    %1 = vector.load %arg2[%c0_1, %c0_2] : memref<2x768xbf16, #tpu.memory_space<vmem>>, vector<2x768xbf16>
    %cst = arith.constant 0.000000e+00 : bf16
    %2 = vector.broadcast %cst : bf16 to vector<2x128xbf16>
    %3 = tpu.concatenate %2, %1, %2 in 1 : vector<2x128xbf16>, vector<2x768xbf16>, vector<2x128xbf16> -> vector<2x1024xbf16>
    %c0_3 = arith.constant 0 : index
    %c0_4 = arith.constant 0 : index
    %c0_5 = arith.constant 0 : index
    %4 = vector.load %arg3[%c0_3, %c0_4, %c0_5] : memref<9x8x2xbf16, #tpu.memory_space<vmem>>, vector<1x8x2xbf16>
    %5 = vector.shape_cast %4 : vector<1x8x2xbf16> to vector<8x2xbf16>
    %6 = vector.extract_strided_slice %3 {offsets = [0, 109], sizes = [2, 768], strides = [1, 1]} : vector<2x1024xbf16> to vector<2x768xbf16>
    %cst_6 = arith.constant dense<0.000000e+00> : vector<8x768xf32>
    %7 = tpu.matmul %5, %6, %cst_6 {dimension_numbers = #tpu.dot_dimension_numbers<[1], [0], [0], [1], [0, 0, 1, 1], [], []>} : vector<8x2xbf16>, vector<2x768xbf16>, vector<8x768xf32> -> vector<8x768xf32>
    %c1 = arith.constant 1 : index
    %c0_7 = arith.constant 0 : index
    %c0_8 = arith.constant 0 : index
    %8 = vector.load %arg3[%c1, %c0_7, %c0_8] : memref<9x8x2xbf16, #tpu.memory_space<vmem>>, vector<1x8x2xbf16>
    %9 = vector.shape_cast %8 : vector<1x8x2xbf16> to vector<8x2xbf16>
    %10 = vector.extract_strided_slice %3 {offsets = [0, 110], sizes = [2, 768], strides = [1, 1]} : vector<2x1024xbf16> to vector<2x768xbf16>
    %cst_9 = arith.constant dense<0.000000e+00> : vector<8x768xf32>
    %11 = tpu.matmul %9, %10, %cst_9 {dimension_numbers = #tpu.dot_dimension_numbers<[1], [0], [0], [1], [0, 0, 1, 1], [], []>} : vector<8x2xbf16>, vector<2x768xbf16>, vector<8x768xf32> -> vector<8x768xf32>
    %12 = arith.addf %7, %11 : vector<8x768xf32>
    %c2 = arith.constant 2 : index
    %c0_10 = arith.constant 0 : index
    %c0_11 = arith.constant 0 : index
    %13 = vector.load %arg3[%c2, %c0_10, %c0_11] : memref<9x8x2xbf16, #tpu.memory_space<vmem>>, vector<1x8x2xbf16>
    %14 = vector.shape_cast %13 : vector<1x8x2xbf16> to vector<8x2xbf16>
    %15 = vector.extract_strided_slice %3 {offsets = [0, 111], sizes = [2, 768], strides = [1, 1]} : vector<2x1024xbf16> to vector<2x768xbf16>
    %cst_12 = arith.constant dense<0.000000e+00> : vector<8x768xf32>
    %16 = tpu.matmul %14, %15, %cst_12 {dimension_numbers = #tpu.dot_dimension_numbers<[1], [0], [0], [1], [0, 0, 1, 1], [], []>} : vector<8x2xbf16>, vector<2x768xbf16>, vector<8x768xf32> -> vector<8x768xf32>
    %17 = arith.addf %12, %16 : vector<8x768xf32>
    %c3 = arith.constant 3 : index
    %c0_13 = arith.constant 0 : index
    %c0_14 = arith.constant 0 : index
    %18 = vector.load %arg3[%c3, %c0_13, %c0_14] : memref<9x8x2xbf16, #tpu.memory_space<vmem>>, vector<1x8x2xbf16>
    %19 = vector.shape_cast %18 : vector<1x8x2xbf16> to vector<8x2xbf16>
    %20 = vector.extract_strided_slice %3 {offsets = [0, 127], sizes = [2, 768], strides = [1, 1]} : vector<2x1024xbf16> to vector<2x768xbf16>
    %cst_15 = arith.constant dense<0.000000e+00> : vector<8x768xf32>
    %21 = tpu.matmul %19, %20, %cst_15 {dimension_numbers = #tpu.dot_dimension_numbers<[1], [0], [0], [1], [0, 0, 1, 1], [], []>} : vector<8x2xbf16>, vector<2x768xbf16>, vector<8x768xf32> -> vector<8x768xf32>
    %22 = arith.addf %17, %21 : vector<8x768xf32>
    %c4 = arith.constant 4 : index
    %c0_16 = arith.constant 0 : index
    %c0_17 = arith.constant 0 : index
    %23 = vector.load %arg3[%c4, %c0_16, %c0_17] : memref<9x8x2xbf16, #tpu.memory_space<vmem>>, vector<1x8x2xbf16>
    %24 = vector.shape_cast %23 : vector<1x8x2xbf16> to vector<8x2xbf16>
    %25 = vector.extract_strided_slice %3 {offsets = [0, 128], sizes = [2, 768], strides = [1, 1]} : vector<2x1024xbf16> to vector<2x768xbf16>
    %cst_18 = arith.constant dense<0.000000e+00> : vector<8x768xf32>
    %26 = tpu.matmul %24, %25, %cst_18 {dimension_numbers = #tpu.dot_dimension_numbers<[1], [0], [0], [1], [0, 0, 1, 1], [], []>} : vector<8x2xbf16>, vector<2x768xbf16>, vector<8x768xf32> -> vector<8x768xf32>
    %27 = arith.addf %22, %26 : vector<8x768xf32>
    %c5 = arith.constant 5 : index
    %c0_19 = arith.constant 0 : index
    %c0_20 = arith.constant 0 : index
    %28 = vector.load %arg3[%c5, %c0_19, %c0_20] : memref<9x8x2xbf16, #tpu.memory_space<vmem>>, vector<1x8x2xbf16>
    %29 = vector.shape_cast %28 : vector<1x8x2xbf16> to vector<8x2xbf16>
    %30 = vector.extract_strided_slice %3 {offsets = [0, 129], sizes = [2, 768], strides = [1, 1]} : vector<2x1024xbf16> to vector<2x768xbf16>
    %cst_21 = arith.constant dense<0.000000e+00> : vector<8x768xf32>
    %31 = tpu.matmul %29, %30, %cst_21 {dimension_numbers = #tpu.dot_dimension_numbers<[1], [0], [0], [1], [0, 0, 1, 1], [], []>} : vector<8x2xbf16>, vector<2x768xbf16>, vector<8x768xf32> -> vector<8x768xf32>
    %32 = arith.addf %27, %31 : vector<8x768xf32>
    %c6 = arith.constant 6 : index
    %c0_22 = arith.constant 0 : index
    %c0_23 = arith.constant 0 : index
    %33 = vector.load %arg3[%c6, %c0_22, %c0_23] : memref<9x8x2xbf16, #tpu.memory_space<vmem>>, vector<1x8x2xbf16>
    %34 = vector.shape_cast %33 : vector<1x8x2xbf16> to vector<8x2xbf16>
    %35 = vector.extract_strided_slice %3 {offsets = [0, 145], sizes = [2, 768], strides = [1, 1]} : vector<2x1024xbf16> to vector<2x768xbf16>
    %cst_24 = arith.constant dense<0.000000e+00> : vector<8x768xf32>
    %36 = tpu.matmul %34, %35, %cst_24 {dimension_numbers = #tpu.dot_dimension_numbers<[1], [0], [0], [1], [0, 0, 1, 1], [], []>} : vector<8x2xbf16>, vector<2x768xbf16>, vector<8x768xf32> -> vector<8x768xf32>
    %37 = arith.addf %32, %36 : vector<8x768xf32>
    %c7 = arith.constant 7 : index
    %c0_25 = arith.constant 0 : index
    %c0_26 = arith.constant 0 : index
    %38 = vector.load %arg3[%c7, %c0_25, %c0_26] : memref<9x8x2xbf16, #tpu.memory_space<vmem>>, vector<1x8x2xbf16>
    %39 = vector.shape_cast %38 : vector<1x8x2xbf16> to vector<8x2xbf16>
    %40 = vector.extract_strided_slice %3 {offsets = [0, 146], sizes = [2, 768], strides = [1, 1]} : vector<2x1024xbf16> to vector<2x768xbf16>
    %cst_27 = arith.constant dense<0.000000e+00> : vector<8x768xf32>
    %41 = tpu.matmul %39, %40, %cst_27 {dimension_numbers = #tpu.dot_dimension_numbers<[1], [0], [0], [1], [0, 0, 1, 1], [], []>} : vector<8x2xbf16>, vector<2x768xbf16>, vector<8x768xf32> -> vector<8x768xf32>
    %42 = arith.addf %37, %41 : vector<8x768xf32>
    %c8 = arith.constant 8 : index
    %c0_28 = arith.constant 0 : index
    %c0_29 = arith.constant 0 : index
    %43 = vector.load %arg3[%c8, %c0_28, %c0_29] : memref<9x8x2xbf16, #tpu.memory_space<vmem>>, vector<1x8x2xbf16>
    %44 = vector.shape_cast %43 : vector<1x8x2xbf16> to vector<8x2xbf16>
    %45 = vector.extract_strided_slice %3 {offsets = [0, 147], sizes = [2, 768], strides = [1, 1]} : vector<2x1024xbf16> to vector<2x768xbf16>
    %cst_30 = arith.constant dense<0.000000e+00> : vector<8x768xf32>
    %46 = tpu.matmul %44, %45, %cst_30 {dimension_numbers = #tpu.dot_dimension_numbers<[1], [0], [0], [1], [0, 0, 1, 1], [], []>} : vector<8x2xbf16>, vector<2x768xbf16>, vector<8x768xf32> -> vector<8x768xf32>
    %47 = arith.addf %42, %46 : vector<8x768xf32>
    %48 = vector.broadcast %0 : vector<1x768xf32> to vector<8x768xf32>
    %49 = arith.mulf %47, %48 : vector<8x768xf32>
    %cst_31 = arith.constant dense<0.000000e+00> : vector<8xf32>
    %50 = vector.multi_reduction <add>, %49, %cst_31 [1] : vector<8x768xf32> to vector<8xf32>
    %51 = vector.shape_cast %50 : vector<8xf32> to vector<8x1xf32>
    %52 = arith.mulf %49, %47 : vector<8x768xf32>
    %cst_32 = arith.constant dense<0.000000e+00> : vector<8xf32>
    %53 = vector.multi_reduction <add>, %52, %cst_32 [1] : vector<8x768xf32> to vector<8xf32>
    %54 = vector.shape_cast %53 : vector<8xf32> to vector<8x1xf32>
    %cst_33 = arith.constant 0.001953125 : f32
    %55 = vector.broadcast %cst_33 : f32 to vector<8x1xf32>
    %56 = arith.mulf %51, %55 : vector<8x1xf32>
    %cst_34 = arith.constant 0.001953125 : f32
    %57 = vector.broadcast %cst_34 : f32 to vector<8x1xf32>
    %58 = arith.mulf %54, %57 : vector<8x1xf32>
    %59 = arith.mulf %56, %56 : vector<8x1xf32>
    %60 = arith.subf %58, %59 : vector<8x1xf32>
    %cst_35 = arith.constant 0.000000e+00 : f32
    %61 = vector.broadcast %cst_35 : f32 to vector<8x1xf32>
    %62 = arith.maximumf %60, %61 : vector<8x1xf32>
    %63 = vector.broadcast %56 : vector<8x1xf32> to vector<8x768xf32>
    %64 = arith.subf %47, %63 : vector<8x768xf32>
    %cst_36 = arith.constant 9.99999974E-6 : f32
    %65 = vector.broadcast %cst_36 : f32 to vector<8x1xf32>
    %66 = arith.addf %62, %65 : vector<8x1xf32>
    %67 = math.rsqrt %66 : vector<8x1xf32>
    %68 = vector.broadcast %67 : vector<8x1xf32> to vector<8x768xf32>
    %69 = arith.mulf %64, %68 : vector<8x768xf32>
    %cst_37 = arith.constant 0.000000e+00 : f32
    %70 = vector.broadcast %cst_37 : f32 to vector<8x768xf32>
    %71 = arith.maximumf %69, %70 : vector<8x768xf32>
    %72 = vector.broadcast %0 : vector<1x768xf32> to vector<8x768xf32>
    %73 = arith.mulf %71, %72 : vector<8x768xf32>
    %74 = arith.truncf %73 : vector<8x768xf32> to vector<8x768xbf16>
    %cst_38 = arith.constant 0.000000e+00 : bf16
    %75 = vector.broadcast %cst_38 : bf16 to vector<8x128xbf16>
    %76 = tpu.concatenate %75, %74, %75 in 1 : vector<8x128xbf16>, vector<8x768xbf16>, vector<8x128xbf16> -> vector<8x1024xbf16>
    %c0_39 = arith.constant 0 : index
    %c0_40 = arith.constant 0 : index
    %c0_41 = arith.constant 0 : index
    %77 = vector.load %arg4[%c0_39, %c0_40, %c0_41] : memref<9x16x8xbf16, #tpu.memory_space<vmem>>, vector<1x16x8xbf16>
    %78 = vector.shape_cast %77 : vector<1x16x8xbf16> to vector<16x8xbf16>
    %79 = vector.extract_strided_slice %76 {offsets = [0, 109], sizes = [8, 768], strides = [1, 1]} : vector<8x1024xbf16> to vector<8x768xbf16>
    %cst_42 = arith.constant dense<0.000000e+00> : vector<16x768xf32>
    %80 = tpu.matmul %78, %79, %cst_42 {dimension_numbers = #tpu.dot_dimension_numbers<[1], [0], [0], [1], [0, 0, 1, 1], [], []>} : vector<16x8xbf16>, vector<8x768xbf16>, vector<16x768xf32> -> vector<16x768xf32>
    %c1_43 = arith.constant 1 : index
    %c0_44 = arith.constant 0 : index
    %c0_45 = arith.constant 0 : index
    %81 = vector.load %arg4[%c1_43, %c0_44, %c0_45] : memref<9x16x8xbf16, #tpu.memory_space<vmem>>, vector<1x16x8xbf16>
    %82 = vector.shape_cast %81 : vector<1x16x8xbf16> to vector<16x8xbf16>
    %83 = vector.extract_strided_slice %76 {offsets = [0, 110], sizes = [8, 768], strides = [1, 1]} : vector<8x1024xbf16> to vector<8x768xbf16>
    %cst_46 = arith.constant dense<0.000000e+00> : vector<16x768xf32>
    %84 = tpu.matmul %82, %83, %cst_46 {dimension_numbers = #tpu.dot_dimension_numbers<[1], [0], [0], [1], [0, 0, 1, 1], [], []>} : vector<16x8xbf16>, vector<8x768xbf16>, vector<16x768xf32> -> vector<16x768xf32>
    %85 = arith.addf %80, %84 : vector<16x768xf32>
    %c2_47 = arith.constant 2 : index
    %c0_48 = arith.constant 0 : index
    %c0_49 = arith.constant 0 : index
    %86 = vector.load %arg4[%c2_47, %c0_48, %c0_49] : memref<9x16x8xbf16, #tpu.memory_space<vmem>>, vector<1x16x8xbf16>
    %87 = vector.shape_cast %86 : vector<1x16x8xbf16> to vector<16x8xbf16>
    %88 = vector.extract_strided_slice %76 {offsets = [0, 111], sizes = [8, 768], strides = [1, 1]} : vector<8x1024xbf16> to vector<8x768xbf16>
    %cst_50 = arith.constant dense<0.000000e+00> : vector<16x768xf32>
    %89 = tpu.matmul %87, %88, %cst_50 {dimension_numbers = #tpu.dot_dimension_numbers<[1], [0], [0], [1], [0, 0, 1, 1], [], []>} : vector<16x8xbf16>, vector<8x768xbf16>, vector<16x768xf32> -> vector<16x768xf32>
    %90 = arith.addf %85, %89 : vector<16x768xf32>
    %c3_51 = arith.constant 3 : index
    %c0_52 = arith.constant 0 : index
    %c0_53 = arith.constant 0 : index
    %91 = vector.load %arg4[%c3_51, %c0_52, %c0_53] : memref<9x16x8xbf16, #tpu.memory_space<vmem>>, vector<1x16x8xbf16>
    %92 = vector.shape_cast %91 : vector<1x16x8xbf16> to vector<16x8xbf16>
    %93 = vector.extract_strided_slice %76 {offsets = [0, 127], sizes = [8, 768], strides = [1, 1]} : vector<8x1024xbf16> to vector<8x768xbf16>
    %cst_54 = arith.constant dense<0.000000e+00> : vector<16x768xf32>
    %94 = tpu.matmul %92, %93, %cst_54 {dimension_numbers = #tpu.dot_dimension_numbers<[1], [0], [0], [1], [0, 0, 1, 1], [], []>} : vector<16x8xbf16>, vector<8x768xbf16>, vector<16x768xf32> -> vector<16x768xf32>
    %95 = arith.addf %90, %94 : vector<16x768xf32>
    %c4_55 = arith.constant 4 : index
    %c0_56 = arith.constant 0 : index
    %c0_57 = arith.constant 0 : index
    %96 = vector.load %arg4[%c4_55, %c0_56, %c0_57] : memref<9x16x8xbf16, #tpu.memory_space<vmem>>, vector<1x16x8xbf16>
    %97 = vector.shape_cast %96 : vector<1x16x8xbf16> to vector<16x8xbf16>
    %98 = vector.extract_strided_slice %76 {offsets = [0, 128], sizes = [8, 768], strides = [1, 1]} : vector<8x1024xbf16> to vector<8x768xbf16>
    %cst_58 = arith.constant dense<0.000000e+00> : vector<16x768xf32>
    %99 = tpu.matmul %97, %98, %cst_58 {dimension_numbers = #tpu.dot_dimension_numbers<[1], [0], [0], [1], [0, 0, 1, 1], [], []>} : vector<16x8xbf16>, vector<8x768xbf16>, vector<16x768xf32> -> vector<16x768xf32>
    %100 = arith.addf %95, %99 : vector<16x768xf32>
    %c5_59 = arith.constant 5 : index
    %c0_60 = arith.constant 0 : index
    %c0_61 = arith.constant 0 : index
    %101 = vector.load %arg4[%c5_59, %c0_60, %c0_61] : memref<9x16x8xbf16, #tpu.memory_space<vmem>>, vector<1x16x8xbf16>
    %102 = vector.shape_cast %101 : vector<1x16x8xbf16> to vector<16x8xbf16>
    %103 = vector.extract_strided_slice %76 {offsets = [0, 129], sizes = [8, 768], strides = [1, 1]} : vector<8x1024xbf16> to vector<8x768xbf16>
    %cst_62 = arith.constant dense<0.000000e+00> : vector<16x768xf32>
    %104 = tpu.matmul %102, %103, %cst_62 {dimension_numbers = #tpu.dot_dimension_numbers<[1], [0], [0], [1], [0, 0, 1, 1], [], []>} : vector<16x8xbf16>, vector<8x768xbf16>, vector<16x768xf32> -> vector<16x768xf32>
    %105 = arith.addf %100, %104 : vector<16x768xf32>
    %c6_63 = arith.constant 6 : index
    %c0_64 = arith.constant 0 : index
    %c0_65 = arith.constant 0 : index
    %106 = vector.load %arg4[%c6_63, %c0_64, %c0_65] : memref<9x16x8xbf16, #tpu.memory_space<vmem>>, vector<1x16x8xbf16>
    %107 = vector.shape_cast %106 : vector<1x16x8xbf16> to vector<16x8xbf16>
    %108 = vector.extract_strided_slice %76 {offsets = [0, 145], sizes = [8, 768], strides = [1, 1]} : vector<8x1024xbf16> to vector<8x768xbf16>
    %cst_66 = arith.constant dense<0.000000e+00> : vector<16x768xf32>
    %109 = tpu.matmul %107, %108, %cst_66 {dimension_numbers = #tpu.dot_dimension_numbers<[1], [0], [0], [1], [0, 0, 1, 1], [], []>} : vector<16x8xbf16>, vector<8x768xbf16>, vector<16x768xf32> -> vector<16x768xf32>
    %110 = arith.addf %105, %109 : vector<16x768xf32>
    %c7_67 = arith.constant 7 : index
    %c0_68 = arith.constant 0 : index
    %c0_69 = arith.constant 0 : index
    %111 = vector.load %arg4[%c7_67, %c0_68, %c0_69] : memref<9x16x8xbf16, #tpu.memory_space<vmem>>, vector<1x16x8xbf16>
    %112 = vector.shape_cast %111 : vector<1x16x8xbf16> to vector<16x8xbf16>
    %113 = vector.extract_strided_slice %76 {offsets = [0, 146], sizes = [8, 768], strides = [1, 1]} : vector<8x1024xbf16> to vector<8x768xbf16>
    %cst_70 = arith.constant dense<0.000000e+00> : vector<16x768xf32>
    %114 = tpu.matmul %112, %113, %cst_70 {dimension_numbers = #tpu.dot_dimension_numbers<[1], [0], [0], [1], [0, 0, 1, 1], [], []>} : vector<16x8xbf16>, vector<8x768xbf16>, vector<16x768xf32> -> vector<16x768xf32>
    %115 = arith.addf %110, %114 : vector<16x768xf32>
    %c8_71 = arith.constant 8 : index
    %c0_72 = arith.constant 0 : index
    %c0_73 = arith.constant 0 : index
    %116 = vector.load %arg4[%c8_71, %c0_72, %c0_73] : memref<9x16x8xbf16, #tpu.memory_space<vmem>>, vector<1x16x8xbf16>
    %117 = vector.shape_cast %116 : vector<1x16x8xbf16> to vector<16x8xbf16>
    %118 = vector.extract_strided_slice %76 {offsets = [0, 147], sizes = [8, 768], strides = [1, 1]} : vector<8x1024xbf16> to vector<8x768xbf16>
    %cst_74 = arith.constant dense<0.000000e+00> : vector<16x768xf32>
    %119 = tpu.matmul %117, %118, %cst_74 {dimension_numbers = #tpu.dot_dimension_numbers<[1], [0], [0], [1], [0, 0, 1, 1], [], []>} : vector<16x8xbf16>, vector<8x768xbf16>, vector<16x768xf32> -> vector<16x768xf32>
    %120 = arith.addf %115, %119 : vector<16x768xf32>
    %121 = vector.broadcast %0 : vector<1x768xf32> to vector<16x768xf32>
    %122 = arith.mulf %120, %121 : vector<16x768xf32>
    %cst_75 = arith.constant dense<0.000000e+00> : vector<16xf32>
    %123 = vector.multi_reduction <add>, %122, %cst_75 [1] : vector<16x768xf32> to vector<16xf32>
    %124 = vector.shape_cast %123 : vector<16xf32> to vector<16x1xf32>
    %125 = arith.mulf %122, %120 : vector<16x768xf32>
    %cst_76 = arith.constant dense<0.000000e+00> : vector<16xf32>
    %126 = vector.multi_reduction <add>, %125, %cst_76 [1] : vector<16x768xf32> to vector<16xf32>
    %127 = vector.shape_cast %126 : vector<16xf32> to vector<16x1xf32>
    %cst_77 = arith.constant 0.001953125 : f32
    %128 = vector.broadcast %cst_77 : f32 to vector<16x1xf32>
    %129 = arith.mulf %124, %128 : vector<16x1xf32>
    %cst_78 = arith.constant 0.001953125 : f32
    %130 = vector.broadcast %cst_78 : f32 to vector<16x1xf32>
    %131 = arith.mulf %127, %130 : vector<16x1xf32>
    %132 = arith.mulf %129, %129 : vector<16x1xf32>
    %133 = arith.subf %131, %132 : vector<16x1xf32>
    %cst_79 = arith.constant 0.000000e+00 : f32
    %134 = vector.broadcast %cst_79 : f32 to vector<16x1xf32>
    %135 = arith.maximumf %133, %134 : vector<16x1xf32>
    %136 = vector.broadcast %129 : vector<16x1xf32> to vector<16x768xf32>
    %137 = arith.subf %120, %136 : vector<16x768xf32>
    %cst_80 = arith.constant 9.99999974E-6 : f32
    %138 = vector.broadcast %cst_80 : f32 to vector<16x1xf32>
    %139 = arith.addf %135, %138 : vector<16x1xf32>
    %140 = math.rsqrt %139 : vector<16x1xf32>
    %141 = vector.broadcast %140 : vector<16x1xf32> to vector<16x768xf32>
    %142 = arith.mulf %137, %141 : vector<16x768xf32>
    %cst_81 = arith.constant 0.000000e+00 : f32
    %143 = vector.broadcast %cst_81 : f32 to vector<16x768xf32>
    %144 = arith.maximumf %142, %143 : vector<16x768xf32>
    %145 = vector.broadcast %0 : vector<1x768xf32> to vector<16x768xf32>
    %146 = arith.mulf %144, %145 : vector<16x768xf32>
    %147 = arith.truncf %146 : vector<16x768xf32> to vector<16x768xbf16>
    %c0_82 = arith.constant 0 : index
    %c0_83 = arith.constant 0 : index
    %148 = vector.load %arg6[%c0_82, %c0_83] : memref<9x1xf32, #tpu.memory_space<vmem>>, vector<9x1xf32>
    %cst_84 = arith.constant 0.000000e+00 : bf16
    %149 = vector.broadcast %cst_84 : bf16 to vector<16x128xbf16>
    %150 = tpu.concatenate %149, %147, %149 in 1 : vector<16x128xbf16>, vector<16x768xbf16>, vector<16x128xbf16> -> vector<16x1024xbf16>
    %c0_85 = arith.constant 0 : index
    %c0_86 = arith.constant 0 : index
    %c0_87 = arith.constant 0 : index
    %151 = vector.load %arg5[%c0_85, %c0_86, %c0_87] : memref<9x9x16xbf16, #tpu.memory_space<vmem>>, vector<1x9x16xbf16>
    %152 = vector.shape_cast %151 : vector<1x9x16xbf16> to vector<9x16xbf16>
    %153 = vector.extract_strided_slice %150 {offsets = [0, 109], sizes = [16, 768], strides = [1, 1]} : vector<16x1024xbf16> to vector<16x768xbf16>
    %cst_88 = arith.constant dense<0.000000e+00> : vector<9x768xf32>
    %154 = tpu.matmul %152, %153, %cst_88 {dimension_numbers = #tpu.dot_dimension_numbers<[1], [0], [0], [1], [0, 0, 1, 1], [], []>} : vector<9x16xbf16>, vector<16x768xbf16>, vector<9x768xf32> -> vector<9x768xf32>
    %c1_89 = arith.constant 1 : index
    %c0_90 = arith.constant 0 : index
    %c0_91 = arith.constant 0 : index
    %155 = vector.load %arg5[%c1_89, %c0_90, %c0_91] : memref<9x9x16xbf16, #tpu.memory_space<vmem>>, vector<1x9x16xbf16>
    %156 = vector.shape_cast %155 : vector<1x9x16xbf16> to vector<9x16xbf16>
    %157 = vector.extract_strided_slice %150 {offsets = [0, 110], sizes = [16, 768], strides = [1, 1]} : vector<16x1024xbf16> to vector<16x768xbf16>
    %cst_92 = arith.constant dense<0.000000e+00> : vector<9x768xf32>
    %158 = tpu.matmul %156, %157, %cst_92 {dimension_numbers = #tpu.dot_dimension_numbers<[1], [0], [0], [1], [0, 0, 1, 1], [], []>} : vector<9x16xbf16>, vector<16x768xbf16>, vector<9x768xf32> -> vector<9x768xf32>
    %159 = arith.addf %154, %158 : vector<9x768xf32>
    %c2_93 = arith.constant 2 : index
    %c0_94 = arith.constant 0 : index
    %c0_95 = arith.constant 0 : index
    %160 = vector.load %arg5[%c2_93, %c0_94, %c0_95] : memref<9x9x16xbf16, #tpu.memory_space<vmem>>, vector<1x9x16xbf16>
    %161 = vector.shape_cast %160 : vector<1x9x16xbf16> to vector<9x16xbf16>
    %162 = vector.extract_strided_slice %150 {offsets = [0, 111], sizes = [16, 768], strides = [1, 1]} : vector<16x1024xbf16> to vector<16x768xbf16>
    %cst_96 = arith.constant dense<0.000000e+00> : vector<9x768xf32>
    %163 = tpu.matmul %161, %162, %cst_96 {dimension_numbers = #tpu.dot_dimension_numbers<[1], [0], [0], [1], [0, 0, 1, 1], [], []>} : vector<9x16xbf16>, vector<16x768xbf16>, vector<9x768xf32> -> vector<9x768xf32>
    %164 = arith.addf %159, %163 : vector<9x768xf32>
    %c3_97 = arith.constant 3 : index
    %c0_98 = arith.constant 0 : index
    %c0_99 = arith.constant 0 : index
    %165 = vector.load %arg5[%c3_97, %c0_98, %c0_99] : memref<9x9x16xbf16, #tpu.memory_space<vmem>>, vector<1x9x16xbf16>
    %166 = vector.shape_cast %165 : vector<1x9x16xbf16> to vector<9x16xbf16>
    %167 = vector.extract_strided_slice %150 {offsets = [0, 127], sizes = [16, 768], strides = [1, 1]} : vector<16x1024xbf16> to vector<16x768xbf16>
    %cst_100 = arith.constant dense<0.000000e+00> : vector<9x768xf32>
    %168 = tpu.matmul %166, %167, %cst_100 {dimension_numbers = #tpu.dot_dimension_numbers<[1], [0], [0], [1], [0, 0, 1, 1], [], []>} : vector<9x16xbf16>, vector<16x768xbf16>, vector<9x768xf32> -> vector<9x768xf32>
    %169 = arith.addf %164, %168 : vector<9x768xf32>
    %c4_101 = arith.constant 4 : index
    %c0_102 = arith.constant 0 : index
    %c0_103 = arith.constant 0 : index
    %170 = vector.load %arg5[%c4_101, %c0_102, %c0_103] : memref<9x9x16xbf16, #tpu.memory_space<vmem>>, vector<1x9x16xbf16>
    %171 = vector.shape_cast %170 : vector<1x9x16xbf16> to vector<9x16xbf16>
    %172 = vector.extract_strided_slice %150 {offsets = [0, 128], sizes = [16, 768], strides = [1, 1]} : vector<16x1024xbf16> to vector<16x768xbf16>
    %cst_104 = arith.constant dense<0.000000e+00> : vector<9x768xf32>
    %173 = tpu.matmul %171, %172, %cst_104 {dimension_numbers = #tpu.dot_dimension_numbers<[1], [0], [0], [1], [0, 0, 1, 1], [], []>} : vector<9x16xbf16>, vector<16x768xbf16>, vector<9x768xf32> -> vector<9x768xf32>
    %174 = arith.addf %169, %173 : vector<9x768xf32>
    %c5_105 = arith.constant 5 : index
    %c0_106 = arith.constant 0 : index
    %c0_107 = arith.constant 0 : index
    %175 = vector.load %arg5[%c5_105, %c0_106, %c0_107] : memref<9x9x16xbf16, #tpu.memory_space<vmem>>, vector<1x9x16xbf16>
    %176 = vector.shape_cast %175 : vector<1x9x16xbf16> to vector<9x16xbf16>
    %177 = vector.extract_strided_slice %150 {offsets = [0, 129], sizes = [16, 768], strides = [1, 1]} : vector<16x1024xbf16> to vector<16x768xbf16>
    %cst_108 = arith.constant dense<0.000000e+00> : vector<9x768xf32>
    %178 = tpu.matmul %176, %177, %cst_108 {dimension_numbers = #tpu.dot_dimension_numbers<[1], [0], [0], [1], [0, 0, 1, 1], [], []>} : vector<9x16xbf16>, vector<16x768xbf16>, vector<9x768xf32> -> vector<9x768xf32>
    %179 = arith.addf %174, %178 : vector<9x768xf32>
    %c6_109 = arith.constant 6 : index
    %c0_110 = arith.constant 0 : index
    %c0_111 = arith.constant 0 : index
    %180 = vector.load %arg5[%c6_109, %c0_110, %c0_111] : memref<9x9x16xbf16, #tpu.memory_space<vmem>>, vector<1x9x16xbf16>
    %181 = vector.shape_cast %180 : vector<1x9x16xbf16> to vector<9x16xbf16>
    %182 = vector.extract_strided_slice %150 {offsets = [0, 145], sizes = [16, 768], strides = [1, 1]} : vector<16x1024xbf16> to vector<16x768xbf16>
    %cst_112 = arith.constant dense<0.000000e+00> : vector<9x768xf32>
    %183 = tpu.matmul %181, %182, %cst_112 {dimension_numbers = #tpu.dot_dimension_numbers<[1], [0], [0], [1], [0, 0, 1, 1], [], []>} : vector<9x16xbf16>, vector<16x768xbf16>, vector<9x768xf32> -> vector<9x768xf32>
    %184 = arith.addf %179, %183 : vector<9x768xf32>
    %c7_113 = arith.constant 7 : index
    %c0_114 = arith.constant 0 : index
    %c0_115 = arith.constant 0 : index
    %185 = vector.load %arg5[%c7_113, %c0_114, %c0_115] : memref<9x9x16xbf16, #tpu.memory_space<vmem>>, vector<1x9x16xbf16>
    %186 = vector.shape_cast %185 : vector<1x9x16xbf16> to vector<9x16xbf16>
    %187 = vector.extract_strided_slice %150 {offsets = [0, 146], sizes = [16, 768], strides = [1, 1]} : vector<16x1024xbf16> to vector<16x768xbf16>
    %cst_116 = arith.constant dense<0.000000e+00> : vector<9x768xf32>
    %188 = tpu.matmul %186, %187, %cst_116 {dimension_numbers = #tpu.dot_dimension_numbers<[1], [0], [0], [1], [0, 0, 1, 1], [], []>} : vector<9x16xbf16>, vector<16x768xbf16>, vector<9x768xf32> -> vector<9x768xf32>
    %189 = arith.addf %184, %188 : vector<9x768xf32>
    %c8_117 = arith.constant 8 : index
    %c0_118 = arith.constant 0 : index
    %c0_119 = arith.constant 0 : index
    %190 = vector.load %arg5[%c8_117, %c0_118, %c0_119] : memref<9x9x16xbf16, #tpu.memory_space<vmem>>, vector<1x9x16xbf16>
    %191 = vector.shape_cast %190 : vector<1x9x16xbf16> to vector<9x16xbf16>
    %192 = vector.extract_strided_slice %150 {offsets = [0, 147], sizes = [16, 768], strides = [1, 1]} : vector<16x1024xbf16> to vector<16x768xbf16>
    %cst_120 = arith.constant dense<0.000000e+00> : vector<9x768xf32>
    %193 = tpu.matmul %191, %192, %cst_120 {dimension_numbers = #tpu.dot_dimension_numbers<[1], [0], [0], [1], [0, 0, 1, 1], [], []>} : vector<9x16xbf16>, vector<16x768xbf16>, vector<9x768xf32> -> vector<9x768xf32>
    %194 = arith.addf %189, %193 : vector<9x768xf32>
    %195 = vector.broadcast %148 : vector<9x1xf32> to vector<9x768xf32>
    %196 = arith.addf %194, %195 : vector<9x768xf32>
    %197 = vector.broadcast %0 : vector<1x768xf32> to vector<9x768xf32>
    %198 = arith.mulf %196, %197 : vector<9x768xf32>
    %cst_121 = arith.constant dense<0.000000e+00> : vector<9xf32>
    %199 = vector.multi_reduction <add>, %198, %cst_121 [1] : vector<9x768xf32> to vector<9xf32>
    %200 = vector.shape_cast %199 : vector<9xf32> to vector<9x1xf32>
    %201 = arith.mulf %198, %196 : vector<9x768xf32>
    %cst_122 = arith.constant dense<0.000000e+00> : vector<9xf32>
    %202 = vector.multi_reduction <add>, %201, %cst_122 [1] : vector<9x768xf32> to vector<9xf32>
    %203 = vector.shape_cast %202 : vector<9xf32> to vector<9x1xf32>
    %cst_123 = arith.constant 0.001953125 : f32
    %204 = vector.broadcast %cst_123 : f32 to vector<9x1xf32>
    %205 = arith.mulf %200, %204 : vector<9x1xf32>
    %cst_124 = arith.constant 0.001953125 : f32
    %206 = vector.broadcast %cst_124 : f32 to vector<9x1xf32>
    %207 = arith.mulf %203, %206 : vector<9x1xf32>
    %208 = arith.mulf %205, %205 : vector<9x1xf32>
    %209 = arith.subf %207, %208 : vector<9x1xf32>
    %cst_125 = arith.constant 0.000000e+00 : f32
    %210 = vector.broadcast %cst_125 : f32 to vector<9x1xf32>
    %211 = arith.maximumf %209, %210 : vector<9x1xf32>
    %212 = vector.broadcast %205 : vector<9x1xf32> to vector<9x768xf32>
    %213 = arith.subf %196, %212 : vector<9x768xf32>
    %cst_126 = arith.constant 9.99999974E-6 : f32
    %214 = vector.broadcast %cst_126 : f32 to vector<9x1xf32>
    %215 = arith.addf %211, %214 : vector<9x1xf32>
    %216 = math.rsqrt %215 : vector<9x1xf32>
    %217 = vector.broadcast %216 : vector<9x1xf32> to vector<9x768xf32>
    %218 = arith.mulf %213, %217 : vector<9x768xf32>
    %cst_127 = arith.constant 0.000000e+00 : f32
    %219 = vector.broadcast %cst_127 : f32 to vector<9x768xf32>
    %220 = arith.maximumf %218, %219 : vector<9x768xf32>
    %cst_128 = arith.constant dense<0xFF800000> : vector<768xf32>
    %221 = vector.multi_reduction <maximumf>, %220, %cst_128 [0] : vector<9x768xf32> to vector<768xf32>
    %222 = vector.shape_cast %221 : vector<768xf32> to vector<1x768xf32>
    %223 = vector.broadcast %222 : vector<1x768xf32> to vector<9x768xf32>
    %224 = arith.subf %220, %223 : vector<9x768xf32>
    %225 = math.exp %224 : vector<9x768xf32>
    %cst_129 = arith.constant dense<0.000000e+00> : vector<768xf32>
    %226 = vector.multi_reduction <add>, %225, %cst_129 [0] : vector<9x768xf32> to vector<768xf32>
    %227 = vector.shape_cast %226 : vector<768xf32> to vector<1x768xf32>
    %228 = vector.broadcast %227 : vector<1x768xf32> to vector<9x768xf32>
    %229 = arith.divf %225, %228 : vector<9x768xf32>
    %c0_130 = arith.constant 0 : index
    %c0_131 = arith.constant 0 : index
    %230 = vector.load %arg7[%c0_130, %c0_131] : memref<9x768xf32, #tpu.memory_space<vmem>>, vector<9x768xf32>
    tpu.vector_store %arg7[%c0_130, %c0_131], %229 {strides = array<i32>} : memref<9x768xf32, #tpu.memory_space<vmem>>, vector<9x768xf32>,
    return
  }
  func.func @transform_0(%arg0: i32) -> (i32, i32) {
    %c0_i32 = arith.constant 0 : i32
    %c0_i32_0 = arith.constant 0 : i32
    %c0_i32_1 = arith.constant 0 : i32
    return %c0_i32, %c0_i32_0 : i32, i32
  }
  func.func @transform_1(%arg0: i32) -> (i32, i32) {
    %c0_i32 = arith.constant 0 : i32
    %c0_i32_0 = arith.constant 0 : i32
    %c0_i32_1 = arith.constant 0 : i32
    return %c0_i32, %c0_i32_0 : i32, i32
  }
  func.func @transform_2(%arg0: i32) -> (i32, i32, i32) {
    %c0_i32 = arith.constant 0 : i32
    %c0_i32_0 = arith.constant 0 : i32
    %c0_i32_1 = arith.constant 0 : i32
    %c0_i32_2 = arith.constant 0 : i32
    return %c0_i32, %c0_i32_0, %c0_i32_1 : i32, i32, i32
  }
  func.func @transform_3(%arg0: i32) -> (i32, i32, i32) {
    %c0_i32 = arith.constant 0 : i32
    %c0_i32_0 = arith.constant 0 : i32
    %c0_i32_1 = arith.constant 0 : i32
    %c0_i32_2 = arith.constant 0 : i32
    return %c0_i32, %c0_i32_0, %c0_i32_1 : i32, i32, i32
  }
  func.func @transform_4(%arg0: i32) -> (i32, i32, i32) {
    %c0_i32 = arith.constant 0 : i32
    %c0_i32_0 = arith.constant 0 : i32
    %c0_i32_1 = arith.constant 0 : i32
    %c0_i32_2 = arith.constant 0 : i32
    return %c0_i32, %c0_i32_0, %c0_i32_1 : i32, i32, i32
  }
  func.func @transform_5(%arg0: i32) -> (i32, i32) {
    %c0_i32 = arith.constant 0 : i32
    %c0_i32_0 = arith.constant 0 : i32
    %c0_i32_1 = arith.constant 0 : i32
    return %c0_i32, %c0_i32_0 : i32, i32
  }
  func.func @transform_6(%arg0: i32) -> (i32, i32) {
    %c0_i32 = arith.constant 0 : i32
    %c0_i32_0 = arith.constant 0 : i32
    %c0_i32_1 = arith.constant 0 : i32
    return %c0_i32, %c0_i32_0 : i32, i32
  }
}

</mosaic_0001>

<bundles_post_ra>
// kernel: _basec_forward_impl.1
= control target key start
LH: loop header
LB: loop body
LE: loop exit
PB: predicated region body
PF: predicated region fallthrough
CT: control target
= control target key end

     0   :  { %v31_v0 = vlaneseq  ;;  %v7294_v1 = vmov 0   ;;  %s5588_s21 = smov 19   ;;  %s5589_s22 = smov 18   ;;  %v5590_v3 = vmov 1966171168   ;;  %vm92_vm0 = vcmask 146432   ;;  %s7287_s1 = inlined_call_operand.vmem [shape: bf16[2,768], index: 1, kind: input, shape index: {}]   ;;  %s7288_s2 = inlined_call_operand.vmem [shape: bf16[9,8,2], index: 2, kind: input, shape index: {}]   ;;  %s7289_s0 = inlined_call_operand.vmem [shape: f32[1,768], index: 0, kind: input, shape index: {}]   ;;  %s7290_s3 = inlined_call_operand.vmem [shape: bf16[9,16,8], index: 3, kind: input, shape index: {}]   ;;  %s7291_s4 = inlined_call_operand.vmem [shape: bf16[9,9,16], index: 4, kind: input, shape index: {}]   ;;  %s7292_s5 = inlined_call_operand.vmem [shape: f32[9,1], index: 5, kind: input, shape index: {}]   ;;  %s7293_s6 = inlined_call_operand.vmem [shape: f32[9,768], index: 6, kind: output, shape index: {}]  }
   0x1   :  { %245 = vrot.lane.b32.xlu1 %v7294_v1, %s5588_s21  ;;  %78 = vrot.lane.b32.xlu0 %v7294_v1, %s5589_s22  ;;  %v25_v2 = vld [vmem:[%s7287_s1] sm:$0x3f]  ;;  %v29_v4 = vunpack.c.l.s4 %v5590_v3  ;;  %s5591_s1 = smov 17   ;;  %s5592_s25 = smov 1   ;;  %vm103_vm1 = vcmask 1040384   ;;  %vm99_vm2 = vcmask 15360  }
   0x2   :  { %v5639_v5 = vshrl.u32 %v31_v0, 7  ;;  %154 = vmatprep.mubr.bf16.mxu0 %v7294_v1  ;;  %195 = vmatprep.mubr.bf16.mxu1 %v7294_v1  ;;  %v27_v7 = vcombine.high %v25_v2, %v25_v2  ;;  %s5593_s26 = smov 127   ;;  %s5594_s27 = smov 111   ;;  %v5317_v29 = vld [vmem:[%s7288_s2 + $0x4] sm:$0xf]  ;;  %vm259_vm3 = vcmask 154624  }
   0x3   :  { %v30_v6 = vunpack.c.0.s8 %v29_v4  ;;  %5521 = vset.pattern.permute.xlu1 %v7294_v1  ;;  %5520 = vset.pattern.permute.xlu0 %v7294_v1  ;;  %s5595_s28 = smov 110   ;;  %s5596_s29 = smov 109   ;;  %v74_v47 = vld [vmem:[%s7288_s2] sm:$0xf]  ;;  %vm426_vm4 = vcmask 138240   ;;  %vm599_vm5 = vcmask 7168  }
   0x4   :  { %v5330_v61 = vld [vmem:[%s7288_s2 + $0x8] sm:$0xf]  ;;  %vm924_vm6 = vcmask 1039360   ;;  %vm1097_vm7 = vcmask 908288   ;;  %vm1270_vm8 = vcmask 900096   ;;  %vm1443_vm9 = vcmask 891904  }
   0x5   :  { %v33_v8 = vsub.s32 %v30_v6, %v5639_v5  ;;  %vm1732_vm10 = vcmask 1043456   ;;  %vm1728_vm11 = vcmask 64512   ;;  %vm3513_vm12 = vcmask 130048  }
   0x7   :  { %v34_v9 = vrot.slane %v25_v2, %v33_v8  ;;  %v41_v10 = vrot.slane %v27_v7, %v33_v8 }
   0x9   :  { %v5646_v11 = vrot.slane %v34_v9, %v33_v8  ;;  %v5648_v12 = vrot.slane %v41_v10, %v33_v8  ;;  %v42_v13 = vcombine.high %v34_v9, %v34_v9  ;;  %v43_v14 = vcombine.high %v41_v10, %v41_v10 }
   0xb   :  { %80 = vrot.lane.b32.xlu0 %v5646_v11, %s5589_s22  ;;  %88 = vrot.lane.b32.xlu1 %v5648_v12, %s5589_s22  ;;  %v5654_v15 = vrot.slane %v42_v13, %v33_v8  ;;  %v5656_v16 = vrot.slane %v43_v14, %v33_v8  ;;  %v5664_v17 = vcombine.high %v5646_v11, %v5646_v11 }
   0xd   :  { %v5668_v18 = vcombine.high %v5654_v15, %v5654_v15 }
   0xf   :  { %82 = vrot.lane.b32.xlu1 %v5654_v15, %s5589_s22  ;;  %90 = vrot.lane.b32.xlu0 %v5656_v16, %s5589_s22 }
  0x13   :  { %84 = vrot.lane.b32.xlu1 %v5664_v17, %s5589_s22  ;;  %86 = vrot.lane.b32.xlu0 %v5668_v18, %s5589_s22 }
  0x17   :  { %249 = vrot.lane.b32.xlu1 %v5654_v15, %s5588_s21  ;;  %247 = vrot.lane.b32.xlu0 %v5646_v11, %s5588_s21 }
  0x1b   :  { %253 = vrot.lane.b32.xlu1 %v5668_v18, %s5588_s21  ;;  %251 = vrot.lane.b32.xlu0 %v5664_v17, %s5588_s21 }
  0x1f   :  { %257 = vrot.lane.b32.xlu1 %v5656_v16, %s5588_s21  ;;  %255 = vrot.lane.b32.xlu0 %v5648_v12, %s5588_s21 }
  0x23   :  { %414 = vrot.lane.b32.xlu1 %v5646_v11, %s5591_s1  ;;  %412 = vrot.lane.b32.xlu0 %v7294_v1, %s5591_s1 }
  0x27   :  { %418 = vrot.lane.b32.xlu1 %v5664_v17, %s5591_s1  ;;  %416 = vrot.lane.b32.xlu0 %v5654_v15, %s5591_s1 }
  0x2b   :  { %422 = vrot.lane.b32.xlu1 %v5648_v12, %s5591_s1  ;;  %420 = vrot.lane.b32.xlu0 %v5668_v18, %s5591_s1 }
  0x2f   :  { %585 = vrot.lane.b32.xlu1 %v7294_v1, %s5592_s25  ;;  %424 = vrot.lane.b32.xlu0 %v5656_v16, %s5591_s1 }
  0x33   :  { %589 = vrot.lane.b32.xlu1 %v5654_v15, %s5592_s25  ;;  %587 = vrot.lane.b32.xlu0 %v5646_v11, %s5592_s25 }
  0x37   :  { %593 = vrot.lane.b32.xlu1 %v5668_v18, %s5592_s25  ;;  %591 = vrot.lane.b32.xlu0 %v5664_v17, %s5592_s25 }
  0x3b   :  { %597 = vrot.lane.b32.xlu1 %v5656_v16, %s5592_s25  ;;  %595 = vrot.lane.b32.xlu0 %v5648_v12, %s5592_s25 }
  0x3f   :  { %912 = vrot.lane.b32.xlu1 %v5654_v15, %s5593_s26  ;;  %910 = vrot.lane.b32.xlu0 %v5646_v11, %s5593_s26 }
  0x43   :  { %916 = vrot.lane.b32.xlu1 %v5668_v18, %s5593_s26  ;;  %914 = vrot.lane.b32.xlu0 %v5664_v17, %s5593_s26 }
  0x47   :  { %920 = vrot.lane.b32.xlu1 %v5656_v16, %s5593_s26  ;;  %918 = vrot.lane.b32.xlu0 %v5648_v12, %s5593_s26 }
  0x4b   :  { %1083 = vrot.lane.b32.xlu1 %v5646_v11, %s5594_s27  ;;  %922 = vrot.lane.b32.xlu0 %v7294_v1, %s5593_s26 }
  0x4f   :  { %1087 = vrot.lane.b32.xlu1 %v5664_v17, %s5594_s27  ;;  %1085 = vrot.lane.b32.xlu0 %v5654_v15, %s5594_s27 }
  0x53   :  { %1091 = vrot.lane.b32.xlu1 %v5648_v12, %s5594_s27  ;;  %1089 = vrot.lane.b32.xlu0 %v5668_v18, %s5594_s27 }
  0x57   :  { %1095 = vrot.lane.b32.xlu1 %v7294_v1, %s5594_s27  ;;  %1093 = vrot.lane.b32.xlu0 %v5656_v16, %s5594_s27 }
  0x5b   :  { %1258 = vrot.lane.b32.xlu1 %v5654_v15, %s5595_s28  ;;  %1256 = vrot.lane.b32.xlu0 %v5646_v11, %s5595_s28 }
  0x5f   :  { %1262 = vrot.lane.b32.xlu1 %v5668_v18, %s5595_s28  ;;  %1260 = vrot.lane.b32.xlu0 %v5664_v17, %s5595_s28 }
  0x63   :  { %1266 = vrot.lane.b32.xlu1 %v5656_v16, %s5595_s28  ;;  %1264 = vrot.lane.b32.xlu0 %v5648_v12, %s5595_s28 }
  0x67   :  { %1429 = vrot.lane.b32.xlu1 %v5646_v11, %s5596_s29  ;;  %1268 = vrot.lane.b32.xlu0 %v7294_v1, %s5595_s28 }
  0x6b   :  { %1433 = vrot.lane.b32.xlu1 %v5664_v17, %s5596_s29  ;;  %1431 = vrot.lane.b32.xlu0 %v5654_v15, %s5596_s29 }
  0x6f   :  { %1437 = vrot.lane.b32.xlu1 %v5648_v12, %s5596_s29  ;;  %1435 = vrot.lane.b32.xlu0 %v5668_v18, %s5596_s29 }
  0x73   :  { %1441 = vrot.lane.b32.xlu1 %v7294_v1, %s5596_s29  ;;  %1439 = vrot.lane.b32.xlu0 %v5656_v16, %s5596_s29  ;;  %v5770_v19 = vpop.permute.xlu1 %245  ;;  %v5772_v20 = vpop.permute.xlu0 %78 }
  0x74   :  { %7322 = vst [vmem:[#allocation2_spill] sm:$0xff] %v5770_v19  ;;  %7323 = vst [vmem:[#allocation3_spill] sm:$0xff] %v5772_v20 }
  0x7d   :  { %v81_v21 = vpop.permute.xlu0 %80  ;;  %v89_v22 = vpop.permute.xlu1 %88 }
  0x7e   :  { %v93_v23 = vsel %vm92_vm0, %v5772_v20, %v81_v21 }
  0x7f   :  { %v105_v27 = vsel %vm103_vm1, %v93_v23, 0 }
  0x81   :  { %v83_v24 = vpop.permute.xlu1 %82  ;;  %v91_v25 = vpop.permute.xlu0 %90 }
  0x82   :  { %v94_v26 = vsel %vm92_vm0, %v81_v21, %v83_v24  ;;  %v98_v28 = vsel %vm92_vm0, %v89_v22, %v91_v25 }
  0x83   :  { %5318 = vmatprep.subr.msk.bf16.mxu0 %vm103_vm1, %v94_v26 }
  0x84   :  { %137 = vmatpush1.bf16.msra.mxu0 %v105_v27 }
  0x85   :  { %v85_v30 = vpop.permute.xlu1 %84  ;;  %5322 = vmatprep.subr.msk.bf16.mxu0 %vm103_vm1, %v98_v28  ;;  %v87_v31 = vpop.permute.xlu0 %86 }
  0x86   :  { %v97_v32 = vsel %vm92_vm0, %v87_v31, %v89_v22  ;;  %v96_v33 = vsel %vm92_vm0, %v85_v30, %v87_v31  ;;  %v95_v34 = vsel %vm92_vm0, %v83_v24, %v85_v30  ;;  %v5337_v22 = vld [vmem:[%s7288_s2 + $0xc] sm:$0xf]  ;;  %v762_v30 = vsel %vm103_vm1, %v5646_v11, 0 }
  0x87   :  { %5319 = vmatmul.mubr.msk.bf16.vlgmr.msra.gmra.mxu0 %vm99_vm2, %v5317_v29  ;;  %5320 = vmatprep.subr.msk.bf16.mxu1 %vm103_vm1, %v96_v33  ;;  %v111_v35 = vsel %vm103_vm1, %v95_v34, 0  ;;  %v117_v36 = vsel %vm103_vm1, %v97_v32, 0  ;;  %v768_v11 = vsel %vm103_vm1, %v5664_v17, 0 }
  0x88   :  { %178 = vmatpush1.bf16.msra.mxu1 %v111_v35  ;;  %219 = vmatpush1.bf16.msra.mxu0 %v117_v36 }
  0x89   :  { %v250_v37 = vpop.permute.xlu1 %249  ;;  %v248_v38 = vpop.permute.xlu0 %247  ;;  %236 = vmatprep.mubr.bf16.mxu0 %v7294_v1 }
  0x8a   :  { %v260_v39 = vsel %vm259_vm3, %v5770_v19, %v248_v38  ;;  %v261_v40 = vsel %vm259_vm3, %v248_v38, %v250_v37 }
  0x8b   :  { %5321 = vmatmul.mubr.msk.bf16.vlgmr.msra.gmra.mxu1 %vm99_vm2, %v5317_v29  ;;  %5324 = vmatprep.subr.msk.bf16.mxu1 %vm103_vm1, %v261_v40  ;;  %v270_v41 = vsel %vm103_vm1, %v260_v39, 0 }
  0x8c   :  { %302 = vmatpush1.bf16.msra.mxu1 %v270_v41  ;;  %319 = vmatprep.mubr.bf16.mxu1 %v7294_v1 }
  0x8d   :  { %v254_v42 = vpop.permute.xlu1 %253  ;;  %v252_v43 = vpop.permute.xlu0 %251 }
  0x8e   :  { %v262_v44 = vsel %vm259_vm3, %v250_v37, %v252_v43  ;;  %v263_v45 = vsel %vm259_vm3, %v252_v43, %v254_v42  ;;  %v774_v37 = vsel %vm103_vm1, %v5648_v12, 0 }
  0x8f   :  { %5323 = vmatmul.mubr.msk.bf16.vlgmr.msra.gmra.mxu0 %vm99_vm2, %v5317_v29  ;;  %5326 = vmatprep.subr.msk.bf16.mxu0 %vm103_vm1, %v263_v45  ;;  %v276_v46 = vsel %vm103_vm1, %v262_v44, 0 }
  0x90   :  { %343 = vmatpush1.bf16.msra.mxu0 %v276_v46  ;;  %360 = vmatprep.mubr.bf16.mxu0 %v7294_v1 }
  0x91   :  { %v258_v48 = vpop.permute.xlu1 %257  ;;  %v256_v49 = vpop.permute.xlu0 %255 }
  0x92   :  { %v264_v50 = vsel %vm259_vm3, %v254_v42, %v256_v49  ;;  %v265_v51 = vsel %vm259_vm3, %v256_v49, %v258_v48 }
  0x93   :  { %5325 = vmatmul.mubr.msk.bf16.vlgmr.msra.gmra.mxu1 %vm99_vm2, %v74_v47  ;;  %5328 = vmatprep.subr.msk.bf16.mxu1 %vm103_vm1, %v265_v51  ;;  %v282_v52 = vsel %vm103_vm1, %v264_v50, 0 }
  0x94   :  { %384 = vmatpush1.bf16.msra.mxu1 %v282_v52  ;;  %401 = vmatprep.mubr.bf16.mxu1 %v7294_v1 }
  0x95   :  { %v415_v53 = vpop.permute.xlu1 %414  ;;  %v5814_v54 = vpop.permute.xlu0 %412 }
  0x96   :  { %7324 = vst [vmem:[#allocation4_spill] sm:$0xff] %v5814_v54  ;;  %v427_v55 = vsel %vm426_vm4, %v5814_v54, %v415_v53 }
  0x97   :  { %5327 = vmatmul.mubr.msk.bf16.vlgmr.msra.gmra.mxu0 %vm99_vm2, %v74_v47  ;;  %v437_v59 = vsel %vm103_vm1, %v427_v55, 0 }
  0x98   :  { %486 = vmatprep.mubr.bf16.mxu0 %v7294_v1 }
  0x99   :  { %v419_v56 = vpop.permute.xlu1 %418  ;;  %v417_v57 = vpop.permute.xlu0 %416 }
  0x9a   :  { %v428_v58 = vsel %vm426_vm4, %v415_v53, %v417_v57  ;;  %v429_v60 = vsel %vm426_vm4, %v417_v57, %v419_v56 }
  0x9b   :  { %5329 = vmatmul.mubr.msk.bf16.vlgmr.msra.gmra.mxu1 %vm99_vm2, %v74_v47  ;;  %5331 = vmatprep.subr.msk.bf16.mxu0 %vm103_vm1, %v428_v58  ;;  %v443_v2 = vsel %vm103_vm1, %v429_v60, 0  ;;  %v5351_v47 = vld [vmem:[%s7288_s2 + $0x14] sm:$0xf] }
  0x9c   :  { %469 = vmatpush1.bf16.msra.mxu0 %v437_v59  ;;  %527 = vmatprep.mubr.bf16.mxu1 %v7294_v1 }
  0x9d   :  { %v423_v62 = vpop.permute.xlu1 %422  ;;  %v421_v63 = vpop.permute.xlu0 %420 }
  0x9e   :  { %v430_v0 = vsel %vm426_vm4, %v419_v56, %v421_v63  ;;  %v431_v3 = vsel %vm426_vm4, %v421_v63, %v423_v62 }
  0x9f   :  { %5332 = vmatmul.mubr.msk.bf16.vlgmr.msra.gmra.mxu0 %vm99_vm2, %v5330_v61  ;;  %5333 = vmatprep.subr.msk.bf16.mxu1 %vm103_vm1, %v430_v0  ;;  %v449_v8 = vsel %vm103_vm1, %v431_v3, 0  ;;  %v5358_v0 = vld [vmem:[%s7288_s2 + $0x18] sm:$0xf] }
  0xa0   :  { %510 = vmatpush1.bf16.msra.mxu1 %v443_v2  ;;  %568 = vmatprep.mubr.bf16.mxu0 %v7294_v1 }
  0xa1   :  { %v5835_v4 = vpop.permute.xlu1 %585  ;;  %v425_v6 = vpop.permute.xlu0 %424 }
  0xa2   :  { %7325 = vst [vmem:[#allocation5_spill] sm:$0xff] %v5835_v4  ;;  %v432_v7 = vsel %vm426_vm4, %v423_v62, %v425_v6 }
  0xa3   :  { %5334 = vmatmul.mubr.msk.bf16.vlgmr.msra.gmra.mxu1 %vm99_vm2, %v5330_v61  ;;  %5335 = vmatprep.subr.msk.bf16.mxu0 %vm103_vm1, %v432_v7 }
  0xa4   :  { %551 = vmatpush1.bf16.msra.mxu0 %v449_v8  ;;  %659 = vmatprep.mubr.bf16.mxu1 %v7294_v1 }
  0xa5   :  { %v590_v9 = vpop.permute.xlu1 %589  ;;  %v588_v10 = vpop.permute.xlu0 %587 }
  0xa6   :  { %v600_v13 = vsel %vm599_vm5, %v5835_v4, %v588_v10  ;;  %v601_v14 = vsel %vm599_vm5, %v588_v10, %v590_v9 }
  0xa7   :  { %5336 = vmatmul.mubr.msk.bf16.vlgmr.msra.gmra.mxu0 %vm99_vm2, %v5330_v61  ;;  %5338 = vmatprep.subr.msk.bf16.mxu1 %vm103_vm1, %v601_v14  ;;  %v610_v21 = vsel %vm103_vm1, %v600_v13, 0 }
  0xa8   :  { %642 = vmatpush1.bf16.msra.mxu1 %v610_v21  ;;  %700 = vmatprep.mubr.bf16.mxu0 %v7294_v1 }
  0xa9   :  { %v594_v23 = vpop.permute.xlu1 %593  ;;  %v592_v24 = vpop.permute.xlu0 %591 }
  0xaa   :  { %v602_v25 = vsel %vm599_vm5, %v590_v9, %v592_v24  ;;  %v603_v26 = vsel %vm599_vm5, %v592_v24, %v594_v23 }
  0xab   :  { %5339 = vmatmul.mubr.msk.bf16.vlgmr.msra.gmra.mxu1 %vm99_vm2, %v5337_v22  ;;  %5340 = vmatprep.subr.msk.bf16.mxu0 %vm103_vm1, %v603_v26  ;;  %v616_v27 = vsel %vm103_vm1, %v602_v25, 0  ;;  %v5365_v26 = vld [vmem:[%s7288_s2 + $0x1c] sm:$0xf] }
  0xac   :  { %683 = vmatpush1.bf16.msra.mxu0 %v616_v27  ;;  %741 = vmatprep.mubr.bf16.mxu1 %v7294_v1 }
  0xad   :  { %v598_v28 = vpop.permute.xlu1 %597  ;;  %v596_v29 = vpop.permute.xlu0 %595  ;;  %5345 = vmatprep.subr.msk.bf16.mxu0 %vm103_vm1, %v5654_v15  ;;  %v5344_v15 = vld [vmem:[%s7288_s2 + $0x10] sm:$0xf] }
  0xae   :  { %v604_v31 = vsel %vm599_vm5, %v594_v23, %v596_v29  ;;  %v605_v32 = vsel %vm599_vm5, %v596_v29, %v598_v28 }
  0xaf   :  { %5341 = vmatmul.mubr.msk.bf16.vlgmr.msra.gmra.mxu0 %vm99_vm2, %v5337_v22  ;;  %5342 = vmatprep.subr.msk.bf16.mxu1 %vm103_vm1, %v605_v32  ;;  %v622_v33 = vsel %vm103_vm1, %v604_v31, 0 }
  0xb0   :  { %724 = vmatpush1.bf16.msra.mxu1 %v622_v33  ;;  %794 = vmatpush1.bf16.msra.mxu0 %v762_v30 }
  0xb1   :  { %v913_v34 = vpop.permute.xlu1 %912  ;;  %v911_v35 = vpop.permute.xlu0 %910  ;;  %5347 = vmatprep.subr.msk.bf16.mxu1 %vm103_vm1, %v5668_v18  ;;  %811 = vmatprep.mubr.bf16.mxu0 %v7294_v1 }
  0xb2   :  { %5349 = vmatprep.subr.msk.bf16.mxu0 %vm103_vm1, %v5656_v16  ;;  %v925_v16 = vsel %vm924_vm6, %v911_v35, %v913_v34 }
  0xb3   :  { %5343 = vmatmul.mubr.msk.bf16.vlgmr.msra.gmra.mxu1 %vm99_vm2, %v5337_v22  ;;  %v935_v41 = vsel %vm103_vm1, %v925_v16, 0 }
  0xb4   :  { %835 = vmatpush1.bf16.msra.mxu1 %v768_v11  ;;  %852 = vmatprep.mubr.bf16.mxu1 %v7294_v1 }
  0xb5   :  { %v917_v36 = vpop.permute.xlu1 %916  ;;  %v915_v18 = vpop.permute.xlu0 %914 }
  0xb6   :  { %v926_v17 = vsel %vm924_vm6, %v913_v34, %v915_v18  ;;  %v927_v12 = vsel %vm924_vm6, %v915_v18, %v917_v36 }
  0xb7   :  { %5346 = vmatmul.mubr.msk.bf16.vlgmr.msra.gmra.mxu0 %vm99_vm2, %v5344_v15  ;;  %5352 = vmatprep.subr.msk.bf16.mxu1 %vm103_vm1, %v926_v17  ;;  %v941_v45 = vsel %vm103_vm1, %v927_v12, 0  ;;  %v5372_v17 = vld [vmem:[%s7288_s2 + $0x20] sm:$0xf] }
  0xb8   :  { %876 = vmatpush1.bf16.msra.mxu0 %v774_v37  ;;  %893 = vmatprep.mubr.bf16.mxu0 %v7294_v1 }
  0xb9   :  { %v921_v38 = vpop.permute.xlu1 %920  ;;  %v919_v39 = vpop.permute.xlu0 %918 }
  0xba   :  { %v928_v40 = vsel %vm924_vm6, %v917_v36, %v919_v39  ;;  %v929_v46 = vsel %vm924_vm6, %v919_v39, %v921_v38 }
  0xbb   :  { %5348 = vmatmul.mubr.msk.bf16.vlgmr.msra.gmra.mxu1 %vm99_vm2, %v5344_v15  ;;  %5354 = vmatprep.subr.msk.bf16.mxu0 %vm103_vm1, %v928_v40  ;;  %v947_v51 = vsel %vm103_vm1, %v929_v46, 0 }
  0xbc   :  { %967 = vmatpush1.bf16.msra.mxu1 %v935_v41  ;;  %984 = vmatprep.mubr.bf16.mxu1 %v7294_v1 }
  0xbd   :  { %v1084_v42 = vpop.permute.xlu1 %1083  ;;  %v5892_v43 = vpop.permute.xlu0 %922 }
  0xbe   :  { %7326 = vst [vmem:[#allocation6_spill] sm:$0xff] %v5892_v43  ;;  %v930_v44 = vsel %vm924_vm6, %v921_v38, %v5892_v43 }
  0xbf   :  { %5350 = vmatmul.mubr.msk.bf16.vlgmr.msra.gmra.mxu0 %vm99_vm2, %v5344_v15  ;;  %5356 = vmatprep.subr.msk.bf16.mxu1 %vm103_vm1, %v930_v44 }
  0xc0   :  { %1008 = vmatpush1.bf16.msra.mxu0 %v941_v45  ;;  %1025 = vmatprep.mubr.bf16.mxu0 %v7294_v1 }
  0xc1   :  { %v1088_v48 = vpop.permute.xlu1 %1087  ;;  %v1086_v49 = vpop.permute.xlu0 %1085 }
  0xc2   :  { %v1099_v50 = vsel %vm1097_vm7, %v1086_v49, %v1088_v48  ;;  %v1098_v52 = vsel %vm1097_vm7, %v1084_v42, %v1086_v49 }
  0xc3   :  { %5353 = vmatmul.mubr.msk.bf16.vlgmr.msra.gmra.mxu1 %vm99_vm2, %v5351_v47  ;;  %5359 = vmatprep.subr.msk.bf16.mxu0 %vm103_vm1, %v1099_v50  ;;  %v1108_v57 = vsel %vm103_vm1, %v1098_v52, 0 }
  0xc4   :  { %1049 = vmatpush1.bf16.msra.mxu1 %v947_v51  ;;  %1066 = vmatprep.mubr.bf16.mxu1 %v7294_v1 }
  0xc5   :  { %v1092_v53 = vpop.permute.xlu1 %1091  ;;  %v1090_v55 = vpop.permute.xlu0 %1089 }
  0xc6   :  { %v1101_v56 = vsel %vm1097_vm7, %v1090_v55, %v1092_v53  ;;  %v1100_v58 = vsel %vm1097_vm7, %v1088_v48, %v1090_v55 }
  0xc7   :  { %5355 = vmatmul.mubr.msk.bf16.vlgmr.msra.gmra.mxu0 %vm99_vm2, %v5351_v47  ;;  %5361 = vmatprep.subr.msk.bf16.mxu1 %vm103_vm1, %v1101_v56  ;;  %v1114_v62 = vsel %vm103_vm1, %v1100_v58, 0 }
  0xc8   :  { %1140 = vmatpush1.bf16.msra.mxu0 %v1108_v57  ;;  %1157 = vmatprep.mubr.bf16.mxu0 %v7294_v1 }
  0xc9   :  { %v5916_v59 = vpop.permute.xlu1 %1095  ;;  %v1094_v60 = vpop.permute.xlu0 %1093 }
  0xca   :  { %7327 = vst [vmem:[#allocation7_spill] sm:$0xff] %v5916_v59  ;;  %v1103_v61 = vsel %vm1097_vm7, %v1094_v60, %v5916_v59  ;;  %v1102_v63 = vsel %vm1097_vm7, %v1092_v53, %v1094_v60 }
  0xcb   :  { %5357 = vmatmul.mubr.msk.bf16.vlgmr.msra.gmra.mxu1 %vm99_vm2, %v5351_v47  ;;  %5363 = vmatprep.subr.msk.bf16.mxu0 %vm103_vm1, %v1103_v61  ;;  %v1120_v7 = vsel %vm103_vm1, %v1102_v63, 0 }
  0xcc   :  { %1181 = vmatpush1.bf16.msra.mxu1 %v1114_v62  ;;  %1198 = vmatprep.mubr.bf16.mxu1 %v7294_v1 }
  0xcd   :  { %v1259_v2 = vpop.permute.xlu1 %1258  ;;  %v1257_v3 = vpop.permute.xlu0 %1256 }
  0xce   :  { %v1271_v6 = vsel %vm1270_vm8, %v1257_v3, %v1259_v2 }
  0xcf   :  { %5360 = vmatmul.mubr.msk.bf16.vlgmr.msra.gmra.mxu0 %vm99_vm2, %v5358_v0  ;;  %v1281_v8 = vsel %vm103_vm1, %v1271_v6, 0 }
  0xd0   :  { %1222 = vmatpush1.bf16.msra.mxu0 %v1120_v7  ;;  %1239 = vmatprep.mubr.bf16.mxu0 %v7294_v1 }
  0xd1   :  { %v1263_v9 = vpop.permute.xlu1 %1262  ;;  %v1261_v10 = vpop.permute.xlu0 %1260 }
  0xd2   :  { %v1273_v13 = vsel %vm1270_vm8, %v1261_v10, %v1263_v9  ;;  %v1272_v14 = vsel %vm1270_vm8, %v1259_v2, %v1261_v10 }
  0xd3   :  { %5362 = vmatmul.mubr.msk.bf16.vlgmr.msra.gmra.mxu1 %vm99_vm2, %v5358_v0  ;;  %5366 = vmatprep.subr.msk.bf16.mxu1 %vm103_vm1, %v1272_v14  ;;  %v1287_v23 = vsel %vm103_vm1, %v1273_v13, 0 }
  0xd4   :  { %1313 = vmatpush1.bf16.msra.mxu1 %v1281_v8  ;;  %1330 = vmatprep.mubr.bf16.mxu1 %v7294_v1 }
  0xd5   :  { %v1267_v21 = vpop.permute.xlu1 %1266  ;;  %v1265_v22 = vpop.permute.xlu0 %1264 }
  0xd6   :  { %v1275_v24 = vsel %vm1270_vm8, %v1265_v22, %v1267_v21  ;;  %v1274_v25 = vsel %vm1270_vm8, %v1263_v9, %v1265_v22 }
  0xd7   :  { %5364 = vmatmul.mubr.msk.bf16.vlgmr.msra.gmra.mxu0 %vm99_vm2, %v5358_v0  ;;  %5368 = vmatprep.subr.msk.bf16.mxu0 %vm103_vm1, %v1274_v25  ;;  %v1293_v29 = vsel %vm103_vm1, %v1275_v24, 0 }
  0xd8   :  { %1354 = vmatpush1.bf16.msra.mxu0 %v1287_v23  ;;  %1371 = vmatprep.mubr.bf16.mxu0 %v7294_v1 }
  0xd9   :  { %v1430_v27 = vpop.permute.xlu1 %1429  ;;  %v5947_v28 = vpop.permute.xlu0 %1268 }
  0xda   :  { %7328 = vst [vmem:[#allocation8_spill] sm:$0xff] %v5947_v28  ;;  %v1276_v30 = vsel %vm1270_vm8, %v1267_v21, %v5947_v28 }
  0xdb   :  { %5367 = vmatmul.mubr.msk.bf16.vlgmr.msra.gmra.mxu1 %vm99_vm2, %v5365_v26  ;;  %5370 = vmatprep.subr.msk.bf16.mxu1 %vm103_vm1, %v1276_v30 }
  0xdc   :  { %1395 = vmatpush1.bf16.msra.mxu1 %v1293_v29  ;;  %1412 = vmatprep.mubr.bf16.mxu1 %v7294_v1 }
  0xdd   :  { %v1434_v31 = vpop.permute.xlu1 %1433  ;;  %v1432_v32 = vpop.permute.xlu0 %1431 }
  0xde   :  { %v1444_v33 = vsel %vm1443_vm9, %v1430_v27, %v1432_v32  ;;  %v1445_v34 = vsel %vm1443_vm9, %v1432_v32, %v1434_v31 }
  0xdf   :  { %5369 = vmatmul.mubr.msk.bf16.vlgmr.msra.gmra.mxu0 %vm99_vm2, %v5365_v26  ;;  %5373 = vmatprep.subr.msk.bf16.mxu0 %vm103_vm1, %v1445_v34  ;;  %v1454_v35 = vsel %vm103_vm1, %v1444_v33, 0 }
  0xe0   :  { %1486 = vmatpush1.bf16.msra.mxu0 %v1454_v35  ;;  %1503 = vmatprep.mubr.bf16.mxu0 %v7294_v1 }
  0xe1   :  { %v1438_v11 = vpop.permute.xlu1 %1437  ;;  %v1436_v15 = vpop.permute.xlu0 %1435 }
  0xe2   :  { %v1446_v36 = vsel %vm1443_vm9, %v1434_v31, %v1436_v15  ;;  %v1447_v18 = vsel %vm1443_vm9, %v1436_v15, %v1438_v11 }
  0xe3   :  { %5371 = vmatmul.mubr.msk.bf16.vlgmr.msra.gmra.mxu1 %vm99_vm2, %v5365_v26  ;;  %5375 = vmatprep.subr.msk.bf16.mxu1 %vm103_vm1, %v1447_v18  ;;  %v1460_v37 = vsel %vm103_vm1, %v1446_v36, 0 }
  0xe4   :  { %1527 = vmatpush1.bf16.msra.mxu1 %v1460_v37  ;;  %1544 = vmatprep.mubr.bf16.mxu1 %v7294_v1 }
  0xe5   :  { %v5970_v16 = vpop.permute.xlu1 %1441  ;;  %v1440_v38 = vpop.permute.xlu0 %1439 }
  0xe6   :  { %7329 = vst [vmem:[#allocation9_spill] sm:$0xff] %v5970_v16  ;;  %v1448_v39 = vsel %vm1443_vm9, %v1438_v11, %v1440_v38  ;;  %v1449_v40 = vsel %vm1443_vm9, %v1440_v38, %v5970_v16 }
  0xe7   :  { %5374 = vmatmul.mubr.msk.bf16.vlgmr.msra.gmra.mxu0 %vm99_vm2, %v5372_v17  ;;  %5377 = vmatprep.subr.msk.bf16.mxu0 %vm103_vm1, %v1449_v40  ;;  %v1466_v41 = vsel %vm103_vm1, %v1448_v39, 0 }
  0xe8   :  { %1568 = vmatpush1.bf16.msra.mxu0 %v1466_v41  ;;  %1585 = vmatprep.mubr.bf16.mxu0 %v7294_v1 }
  0xeb   :  { %5376 = vmatmul.mubr.msk.bf16.vlgmr.msra.gmra.mxu1 %vm99_vm2, %v5372_v17 }
  0xec   :  { %1783 = vmatprep.mubr.bf16.mxu1 %v7294_v1 }
  0xef   :  { %5378 = vmatmul.mubr.msk.bf16.vlgmr.msra.gmra.mxu0 %vm99_vm2, %v5372_v17 }
  0xf0   :  { %1826 = vmatprep.mubr.bf16.mxu0 %v7294_v1 }
 0x147   :  { %v156_v12 = vpop.f32.mrf.mxu0 }
 0x149   :  { %v158_v42 = vpop.f32.mrf.mxu0 }
 0x14b   :  { %v160_v44 = vpop.f32.mrf.mxu0  ;;  %v197_v45 = vpop.f32.mrf.mxu1 }
 0x14d   :  { %v161_v46 = vpop.f32.mrf.mxu0  ;;  %v199_v47 = vpop.f32.mrf.mxu1 }
 0x14f   :  { %v201_v48 = vpop.f32.mrf.mxu1  ;;  %v238_v49 = vpop.f32.mrf.mxu0 }
 0x151   :  { %v202_v50 = vpop.f32.mrf.mxu1  ;;  %v240_v51 = vpop.f32.mrf.mxu0 }
 0x153   :  { %v242_v52 = vpop.f32.mrf.mxu0  ;;  %v321_v53 = vpop.f32.mrf.mxu1 }
 0x154   :  { %v5983_v55 = vadd.f32 %v321_v53, %v156_v12 }
 0x155   :  { %v243_v56 = vpop.f32.mrf.mxu0  ;;  %v323_v57 = vpop.f32.mrf.mxu1 }
 0x156   :  { %v5985_v58 = vadd.f32 %v323_v57, %v158_v42 }
 0x157   :  { %v325_v60 = vpop.f32.mrf.mxu1  ;;  %v362_v61 = vpop.f32.mrf.mxu0 }
 0x158   :  { %v5987_v62 = vadd.f32 %v362_v61, %v197_v45 }
 0x159   :  { %v326_v63 = vpop.f32.mrf.mxu1  ;;  %v364_v0 = vpop.f32.mrf.mxu0 }
 0x15a   :  { %v5989_v2 = vadd.f32 %v364_v0, %v199_v47 }
 0x15b   :  { %v366_v3 = vpop.f32.mrf.mxu0  ;;  %v403_v6 = vpop.f32.mrf.mxu1 }
 0x15c   :  { %v5991_v7 = vadd.f32 %v403_v6, %v238_v49 }
 0x15d   :  { %v367_v8 = vpop.f32.mrf.mxu0  ;;  %v405_v9 = vpop.f32.mrf.mxu1 }
 0x15e   :  { %v5993_v10 = vadd.f32 %v405_v9, %v240_v51 }
 0x15f   :  { %v407_v13 = vpop.f32.mrf.mxu1  ;;  %v488_v14 = vpop.f32.mrf.mxu0 }
 0x161   :  { %v408_v21 = vpop.f32.mrf.mxu1  ;;  %v490_v22 = vpop.f32.mrf.mxu0 }
 0x163   :  { %v492_v23 = vpop.f32.mrf.mxu0  ;;  %v5995_v24 = vpop.f32.mrf.mxu1 }
 0x165   :  { %v493_v25 = vpop.f32.mrf.mxu0  ;;  %v5997_v26 = vpop.f32.mrf.mxu1 }
 0x167   :  { %v533_v27 = vpop.f32.mrf.mxu1  ;;  %v5999_v29 = vpop.f32.mrf.mxu0 }
 0x169   :  { %v534_v30 = vpop.f32.mrf.mxu1  ;;  %v6001_v31 = vpop.f32.mrf.mxu0 }
 0x16b   :  { %v574_v32 = vpop.f32.mrf.mxu0  ;;  %v661_v33 = vpop.f32.mrf.mxu1 }
 0x16d   :  { %v575_v34 = vpop.f32.mrf.mxu0  ;;  %v663_v35 = vpop.f32.mrf.mxu1 }
 0x16f   :  { %v665_v11 = vpop.f32.mrf.mxu1  ;;  %v702_v15 = vpop.f32.mrf.mxu0 }
 0x171   :  { %v666_v36 = vpop.f32.mrf.mxu1  ;;  %v6003_v18 = vpop.f32.mrf.mxu0 }
 0x173   :  { %v706_v37 = vpop.f32.mrf.mxu0  ;;  %v6005_v17 = vpop.f32.mrf.mxu1 }
 0x175   :  { %v707_v38 = vpop.f32.mrf.mxu0  ;;  %v6007_v39 = vpop.f32.mrf.mxu1 }
 0x177   :  { %v747_v40 = vpop.f32.mrf.mxu1  ;;  %v813_v41 = vpop.f32.mrf.mxu0 }
 0x179   :  { %v748_v12 = vpop.f32.mrf.mxu1  ;;  %v815_v42 = vpop.f32.mrf.mxu0 }
 0x17b   :  { %v817_v44 = vpop.f32.mrf.mxu0  ;;  %v854_v45 = vpop.f32.mrf.mxu1 }
 0x17c   :  { %v577_v44 = vadd.f32 %v488_v14, %v5983_v55 }
 0x17d   :  { %v818_v46 = vpop.f32.mrf.mxu0  ;;  %v6009_v47 = vpop.f32.mrf.mxu1 }
 0x17f   :  { %v858_v48 = vpop.f32.mrf.mxu1  ;;  %v6011_v49 = vpop.f32.mrf.mxu0 }
 0x181   :  { %v859_v50 = vpop.f32.mrf.mxu1  ;;  %v6013_v51 = vpop.f32.mrf.mxu0 }
 0x182   :  { %v578_v50 = vadd.f32 %v490_v22, %v5985_v58  ;;  %v24_v58 = vld [vmem:[%s7289_s0] sm:$0x3f] }
 0x183   :  { %v899_v52 = vpop.f32.mrf.mxu0  ;;  %v986_v53 = vpop.f32.mrf.mxu1 }
 0x184   :  { %v750_v52 = vadd.f32 %v661_v33, %v577_v44 }
 0x185   :  { %v900_v56 = vpop.f32.mrf.mxu0  ;;  %v988_v57 = vpop.f32.mrf.mxu1 }
 0x187   :  { %v990_v60 = vpop.f32.mrf.mxu1  ;;  %v1027_v61 = vpop.f32.mrf.mxu0 }
 0x189   :  { %v991_v63 = vpop.f32.mrf.mxu1  ;;  %v1029_v0 = vpop.f32.mrf.mxu0 }
 0x18a   :  { %v579_v63 = vadd.f32 %v5995_v24, %v5987_v62  ;;  %v1607_v62 = vsub.s32 1, %v5639_v5 }
 0x18b   :  { %v1031_v3 = vpop.f32.mrf.mxu0  ;;  %v6015_v6 = vpop.f32.mrf.mxu1 }
 0x18c   :  { %v751_v3 = vadd.f32 %v663_v35, %v578_v50  ;;  %v752_v55 = vadd.f32 %v702_v15, %v579_v63 }
 0x18d   :  { %v1032_v8 = vpop.f32.mrf.mxu0  ;;  %v6017_v9 = vpop.f32.mrf.mxu1 }
 0x18e   :  { %v902_v8 = vadd.f32 %v813_v41, %v750_v52  ;;  %v903_v14 = vadd.f32 %v815_v42, %v751_v3  ;;  %v904_v35 = vadd.f32 %v854_v45, %v752_v55 }
 0x18f   :  { %v1072_v13 = vpop.f32.mrf.mxu1  ;;  %v1159_v21 = vpop.f32.mrf.mxu0 }
 0x190   :  { %v1076_v41 = vadd.f32 %v988_v57, %v903_v14 }
 0x191   :  { %v1073_v23 = vpop.f32.mrf.mxu1  ;;  %v1161_v25 = vpop.f32.mrf.mxu0 }
 0x192   :  { %v1249_v50 = vadd.f32 %v1161_v25, %v1076_v41 }
 0x193   :  { %v1163_v27 = vpop.f32.mrf.mxu0  ;;  %v1200_v30 = vpop.f32.mrf.mxu1 }
 0x194   :  { %v1603_v27 = vsub.s32 0, %v5639_v5 }
 0x195   :  { %v1164_v32 = vpop.f32.mrf.mxu0  ;;  %v1202_v34 = vpop.f32.mrf.mxu1 }
 0x196   :  { %v580_v32 = vadd.f32 %v5997_v26, %v5989_v2  ;;  %v582_v2 = vadd.f32 %v6001_v31, %v5993_v10  ;;  %v6039_v42 = vrot.slane %v24_v58, %v1603_v27  ;;  %v1615_v10 = vsub.s32 3, %v5639_v5 }
 0x197   :  { %v1204_v11 = vpop.f32.mrf.mxu1  ;;  %v6019_v36 = vpop.f32.mrf.mxu0 }
 0x198   :  { %v1075_v11 = vadd.f32 %v986_v53, %v902_v8  ;;  %v753_v24 = vadd.f32 %v6003_v18, %v580_v32  ;;  %7330 = vst [vmem:[#allocation10_spill] sm:$0xff] %v6039_v42  ;;  %v1611_v53 = vsub.s32 2, %v5639_v5  ;;  %v755_v57 = vadd.f32 %v6007_v39, %v582_v2 }
 0x199   :  { %v1205_v37 = vpop.f32.mrf.mxu1  ;;  %v6021_v38 = vpop.f32.mrf.mxu0  ;;  %v6064_v55 = vrot.slane %v24_v58, %v1615_v10 }
 0x19a   :  { %v1248_v37 = vadd.f32 %v1159_v21, %v1075_v11  ;;  %v905_v44 = vadd.f32 %v6009_v47, %v753_v24 }
 0x19b   :  { %v1245_v40 = vpop.f32.mrf.mxu0  ;;  %v1332_v12 = vpop.f32.mrf.mxu1  ;;  %7333 = vst [vmem:[#allocation13_spill] sm:$0xff] %v6064_v55 }
 0x19c   :  { %v581_v40 = vadd.f32 %v5999_v29, %v5991_v7  ;;  %v1421_v18 = vadd.f32 %v1332_v12, %v1248_v37  ;;  %v6045_v29 = vrot.slane %v24_v58, %v1607_v62  ;;  %v1078_v31 = vadd.f32 %v1029_v0, %v905_v44 }
 0x19d   :  { %v1246_v46 = vpop.f32.mrf.mxu0  ;;  %v1334_v48 = vpop.f32.mrf.mxu1 }
 0x19e   :  { %v1077_v46 = vadd.f32 %v1027_v61, %v904_v35  ;;  %v754_v45 = vadd.f32 %v6005_v17, %v581_v40  ;;  %7331 = vst [vmem:[#allocation11_spill] sm:$0xff] %v6045_v29  ;;  %v907_v61 = vadd.f32 %v6013_v51, %v755_v57  ;;  %v6052_v17 = vrot.slane %v24_v58, %v1611_v53 }
 0x19f   :  { %v1336_v56 = vpop.f32.mrf.mxu1  ;;  %v1373_v60 = vpop.f32.mrf.mxu0  ;;  %v1251_v39 = vadd.f32 %v1202_v34, %v1078_v31  ;;  %v1623_v51 = vsub.s32 5, %v5639_v5 }
 0x1a0   :  { %v1250_v52 = vadd.f32 %v1200_v30, %v1077_v46  ;;  %v1422_v56 = vadd.f32 %v1334_v48, %v1249_v50  ;;  %v906_v47 = vadd.f32 %v6011_v49, %v754_v45  ;;  %7332 = vst [vmem:[#allocation12_spill] sm:$0xff] %v6052_v17  ;;  %v1080_v30 = vadd.f32 %v6017_v9, %v907_v61 }
 0x1a1   :  { %v1337_v13 = vpop.f32.mrf.mxu1  ;;  %v1375_v23 = vpop.f32.mrf.mxu0  ;;  %v1619_v49 = vsub.s32 4, %v5639_v5 }
 0x1a2   :  { %v1423_v3 = vadd.f32 %v1373_v60, %v1250_v52  ;;  %v1079_v0 = vadd.f32 %v6015_v6, %v906_v47  ;;  %v1424_v32 = vadd.f32 %v1375_v23, %v1251_v39  ;;  %v1253_v11 = vadd.f32 %v6021_v38, %v1080_v30 }
 0x1a3   :  { %v1377_v22 = vpop.f32.mrf.mxu0  ;;  %v1414_v33 = vpop.f32.mrf.mxu1  ;;  %v6071_v2 = vrot.slane %v24_v58, %v1619_v49 }
 0x1a4   :  { %v1252_v14 = vadd.f32 %v6019_v36, %v1079_v0 }
 0x1a5   :  { %v1378_v26 = vpop.f32.mrf.mxu0  ;;  %v1416_v15 = vpop.f32.mrf.mxu1  ;;  %7334 = vst [vmem:[#allocation14_spill] sm:$0xff] %v6071_v2 }
 0x1a6   :  { %v1425_v35 = vadd.f32 %v1414_v33, %v1252_v14  ;;  %v1426_v41 = vadd.f32 %v1416_v15, %v1253_v11  ;;  %v6073_v26 = vrot.slane %v24_v58, %v1623_v51 }
 0x1a7   :  { %v1418_v21 = vpop.f32.mrf.mxu1  ;;  %v1505_v7 = vpop.f32.mrf.mxu0 }
 0x1a8   :  { %v6048_v63 = vadd.f32 %v1505_v7, %v1421_v18  ;;  %7335 = vst [vmem:[#allocation15_spill] sm:$0xff] %v6073_v26 }
 0x1a9   :  { %v1419_v25 = vpop.f32.mrf.mxu1  ;;  %v1507_v12 = vpop.f32.mrf.mxu0 }
 0x1aa   :  { %v1631_v8 = vmul.f32 %v6039_v42, %v6048_v63  ;;  %v6056_v13 = vadd.f32 %v1507_v12, %v1422_v56 }
 0x1ab   :  { %v1509_v48 = vpop.f32.mrf.mxu0  ;;  %v1546_v27 = vpop.f32.mrf.mxu1 }
 0x1ac   :  { %v1632_v34 = vmul.f32 %v6045_v29, %v6056_v13  ;;  %v1596_v60 = vadd.f32 %v1546_v27, %v1423_v3  ;;  %v1644_v6 = vmul.f32 %v1631_v8, %v6048_v63 }
 0x1ad   :  { %v1510_v9 = vpop.f32.mrf.mxu0  ;;  %v1548_v22 = vpop.f32.mrf.mxu1 }
 0x1ae   :  { %v1637_v62 = vadd.f32 %v1632_v34, %v1631_v8  ;;  %v1645_v24 = vmul.f32 %v1632_v34, %v6056_v13  ;;  %v1633_v5 = vmul.f32 %v6052_v17, %v1596_v60  ;;  %v1597_v23 = vadd.f32 %v1548_v22, %v1424_v32 }
 0x1af   :  { %v1550_v37 = vpop.f32.mrf.mxu1  ;;  %v1587_v40 = vpop.f32.mrf.mxu0 }
 0x1b0   :  { %v1650_v36 = vadd.f32 %v1645_v24, %v1644_v6  ;;  %v1638_v38 = vadd.f32 %v1637_v62, %v1633_v5  ;;  %v1646_v53 = vmul.f32 %v1633_v5, %v1596_v60  ;;  %v1634_v44 = vmul.f32 %v6064_v55, %v1597_v23 }
 0x1b1   :  { %v1598_v46 = vadd.f32 %v1587_v40, %v1425_v35  ;;  %v1551_v50 = vpop.f32.mrf.mxu1  ;;  %v1589_v18 = vpop.f32.mrf.mxu0 }
 0x1b2   :  { %v1651_v45 = vadd.f32 %v1650_v36, %v1646_v53  ;;  %v1647_v57 = vmul.f32 %v1634_v44, %v1597_v23  ;;  %v1599_v21 = vadd.f32 %v1589_v18, %v1426_v41  ;;  %v1639_v7 = vadd.f32 %v1638_v38, %v1634_v44 }
 0x1b3   :  { %v1635_v33 = vmul.f32 %v6071_v2, %v1598_v46  ;;  %v1591_v15 = vpop.f32.mrf.mxu0 }
 0x1b4   :  { %v1636_v10 = vmul.f32 %v6073_v26, %v1599_v21  ;;  %v1652_v31 = vadd.f32 %v1651_v45, %v1647_v57 }
 0x1b5   :  { %v1648_v58 = vmul.f32 %v1635_v33, %v1598_v46  ;;  %v1592_v52 = vpop.f32.mrf.mxu0  ;;  %v1640_v56 = vadd.f32 %v1639_v7, %v1635_v33 }
 0x1b6   :  { %v1649_v47 = vmul.f32 %v1636_v10, %v1599_v21 }
 0x1b7   :  { %v1641_v61 = vadd.f32 %v1640_v56, %v1636_v10  ;;  %v1653_v25 = vadd.f32 %v1652_v31, %v1648_v58  ;;  %v5523_v56 = vld [vmem:[%s7290_s3 + $0x8] sm:$0xff]  }
 0x1b9   :  { %1642 = vadd.xlane.f32.xlu0 %v1641_v61  ;;  %v1654_v12 = vadd.f32 %v1653_v25, %v1649_v47 }
 0x1bb   :  { %1655 = vadd.xlane.f32.xlu1 %v1654_v12 }
 0x242   :  { %v1643_v39 = vpop.xlane.xlu0 %1642 }
 0x243   :  { %v1657_v3 = vmul.f32 0.001953125, %v1643_v39 }
 0x244   :  { %v1656_v8 = vpop.xlane.xlu1 %1655 }
 0x245   :  { %v1658_v0 = vmul.f32 0.001953125, %v1656_v8  ;;  %v1659_v30 = vmul.f32 %v1657_v3, %v1657_v3  ;;  %v1662_v51 = vsub.f32 %v6048_v63, %v1657_v3  ;;  %v1663_v32 = vsub.f32 %v6056_v13, %v1657_v3 }
 0x246   :  { %v1664_v34 = vsub.f32 %v1596_v60, %v1657_v3  ;;  %v1665_v14 = vsub.f32 %v1597_v23, %v1657_v3  ;;  %v1666_v6 = vsub.f32 %v1598_v46, %v1657_v3  ;;  %v1667_v9 = vsub.f32 %v1599_v21, %v1657_v3 }
 0x247   :  { %v1660_v48 = vsub.f32 %v1658_v0, %v1659_v30 }
 0x249   :  { %v1661_v27 = vmax.f32 %v1660_v48, 0.0 }
 0x24b   :  { %v1668_v49 = vadd.f32 1e-05, %v1661_v27 }
 0x24d   :  { %5541 = vrsqrt.f32 %v1668_v49 }
 0x25a   :  { %v5542_v11 = vpop.eup %5541 }
 0x25b   :  { %v1671_v22 = vmul.f32 %v5542_v11, %v1663_v32  ;;  %v1670_v62 = vmul.f32 %v5542_v11, %v1662_v51  ;;  %v1673_v24 = vmul.f32 %v5542_v11, %v1665_v14  ;;  %v1672_v5 = vmul.f32 %v5542_v11, %v1664_v34  ;;  %v5524_v14 = vld [vmem:[%s7290_s3] sm:$0xff]  }
 0x25c   :  { %v1675_v35 = vmul.f32 %v5542_v11, %v1667_v9  ;;  %v1674_v41 = vmul.f32 %v5542_v11, %v1666_v6 }
 0x25d   :  { %v1677_v37 = vmax.f32 %v1671_v22, 0.0  ;;  %v1676_v40 = vmax.f32 %v1670_v62, 0.0  ;;  %v1679_v36 = vmax.f32 %v1673_v24, 0.0  ;;  %v1678_v38 = vmax.f32 %v1672_v5, 0.0 }
 0x25e   :  { %v1681_v53 = vmax.f32 %v1675_v35, 0.0  ;;  %v1680_v44 = vmax.f32 %v1674_v41, 0.0 }
 0x25f   :  { %v1683_v63 = vmul.f32 %v1677_v37, %v6045_v29  ;;  %v1682_v13 = vmul.f32 %v1676_v40, %v6039_v42  ;;  %v1685_v46 = vmul.f32 %v1679_v36, %v6064_v55  ;;  %v1684_v50 = vmul.f32 %v1678_v38, %v6052_v17 }
 0x260   :  { %v1687_v57 = vmul.f32 %v1681_v53, %v6073_v26  ;;  %v1686_v21 = vmul.f32 %v1680_v44, %v6071_v2 }
 0x261   :  { %v6082_v60 = vpack.c.bf16 %v1683_v63, %v1683_v63  ;;  %v6084_v23 = vpack.c.bf16 %v1682_v13, %v1682_v13  ;;  %v6092_v18 = vpack.c.bf16 %v1685_v46, %v1685_v46  ;;  %v6094_v45 = vpack.c.bf16 %v1684_v50, %v1684_v50  ;;  %v5525_v63 = vld [vmem:[%s7290_s3 + $0x10] sm:$0xff]  }
 0x262   :  { %v6102_v7 = vpack.c.bf16 %v1687_v57, %v1687_v57  ;;  %v6104_v33 = vpack.c.bf16 %v1686_v21, %v1686_v21 }
 0x263   :  { %1712 = vrot.lane.b32.xlu1 %v6082_v60, %s5589_s22  ;;  %1710 = vrot.lane.b32.xlu0 %v6084_v23, %s5589_s22 }
 0x267   :  { %1716 = vrot.lane.b32.xlu1 %v6092_v18, %s5589_s22  ;;  %1714 = vrot.lane.b32.xlu0 %v6094_v45, %s5589_s22 }
 0x26b   :  { %1720 = vrot.lane.b32.xlu1 %v6102_v7, %s5589_s22  ;;  %1718 = vrot.lane.b32.xlu0 %v6104_v33, %s5589_s22 }
 0x26f   :  { %1887 = vrot.lane.b32.xlu1 %v6082_v60, %s5588_s21  ;;  %1885 = vrot.lane.b32.xlu0 %v6084_v23, %s5588_s21 }
 0x273   :  { %1891 = vrot.lane.b32.xlu1 %v6092_v18, %s5588_s21  ;;  %1889 = vrot.lane.b32.xlu0 %v6094_v45, %s5588_s21 }
 0x277   :  { %1895 = vrot.lane.b32.xlu1 %v6102_v7, %s5588_s21  ;;  %1893 = vrot.lane.b32.xlu0 %v6104_v33, %s5588_s21 }
 0x27b   :  { %2063 = vrot.lane.b32.xlu1 %v6082_v60, %s5591_s1  ;;  %2061 = vrot.lane.b32.xlu0 %v6084_v23, %s5591_s1 }
 0x27f   :  { %2067 = vrot.lane.b32.xlu1 %v6092_v18, %s5591_s1  ;;  %2065 = vrot.lane.b32.xlu0 %v6094_v45, %s5591_s1 }
 0x283   :  { %2071 = vrot.lane.b32.xlu1 %v6102_v7, %s5591_s1  ;;  %2069 = vrot.lane.b32.xlu0 %v6104_v33, %s5591_s1 }
 0x287   :  { %2251 = vrot.lane.b32.xlu1 %v6082_v60, %s5592_s25  ;;  %2249 = vrot.lane.b32.xlu0 %v6084_v23, %s5592_s25 }
 0x28b   :  { %2255 = vrot.lane.b32.xlu1 %v6092_v18, %s5592_s25  ;;  %2253 = vrot.lane.b32.xlu0 %v6094_v45, %s5592_s25 }
 0x28f   :  { %2259 = vrot.lane.b32.xlu1 %v6102_v7, %s5592_s25  ;;  %2257 = vrot.lane.b32.xlu0 %v6104_v33, %s5592_s25 }
 0x293   :  { %2609 = vrot.lane.b32.xlu1 %v6082_v60, %s5593_s26  ;;  %2607 = vrot.lane.b32.xlu0 %v6084_v23, %s5593_s26 }
 0x297   :  { %2613 = vrot.lane.b32.xlu1 %v6092_v18, %s5593_s26  ;;  %2611 = vrot.lane.b32.xlu0 %v6094_v45, %s5593_s26 }
 0x29b   :  { %2617 = vrot.lane.b32.xlu1 %v6102_v7, %s5593_s26  ;;  %2615 = vrot.lane.b32.xlu0 %v6104_v33, %s5593_s26 }
 0x29f   :  { %2797 = vrot.lane.b32.xlu1 %v6082_v60, %s5594_s27  ;;  %2795 = vrot.lane.b32.xlu0 %v6084_v23, %s5594_s27 }
 0x2a3   :  { %2801 = vrot.lane.b32.xlu1 %v6092_v18, %s5594_s27  ;;  %2799 = vrot.lane.b32.xlu0 %v6094_v45, %s5594_s27 }
 0x2a7   :  { %2805 = vrot.lane.b32.xlu1 %v6102_v7, %s5594_s27  ;;  %2803 = vrot.lane.b32.xlu0 %v6104_v33, %s5594_s27 }
 0x2ab   :  { %2985 = vrot.lane.b32.xlu1 %v6082_v60, %s5595_s28  ;;  %2983 = vrot.lane.b32.xlu0 %v6084_v23, %s5595_s28 }
 0x2af   :  { %2989 = vrot.lane.b32.xlu1 %v6092_v18, %s5595_s28  ;;  %2987 = vrot.lane.b32.xlu0 %v6094_v45, %s5595_s28 }
 0x2b3   :  { %2993 = vrot.lane.b32.xlu1 %v6102_v7, %s5595_s28  ;;  %2991 = vrot.lane.b32.xlu0 %v6104_v33, %s5595_s28 }
 0x2b7   :  { %3173 = vrot.lane.b32.xlu1 %v6082_v60, %s5596_s29  ;;  %3171 = vrot.lane.b32.xlu0 %v6084_v23, %s5596_s29 }
 0x2bb   :  { %3177 = vrot.lane.b32.xlu1 %v6092_v18, %s5596_s29  ;;  %3175 = vrot.lane.b32.xlu0 %v6094_v45, %s5596_s29 }
 0x2bf   :  { %3181 = vrot.lane.b32.xlu1 %v6102_v7, %s5596_s29  ;;  %3179 = vrot.lane.b32.xlu0 %v6104_v33, %s5596_s29 }
 0x2d5   :  { %v1713_v15 = vpop.permute.xlu1 %1712  ;;  %v1711_v10 = vpop.permute.xlu0 %1710 }
 0x2d6   :  { %v1722_v31 = vsel %vm92_vm0, %v5772_v20, %v1711_v10  ;;  %v1723_v58 = vsel %vm92_vm0, %v1711_v10, %v1713_v15 }
 0x2d7   :  { %5382 = vmatprep.subr.msk.bf16.mxu1 %vm1732_vm10, %v1723_v58  ;;  %v1734_v52 = vsel %vm1732_vm10, %v1722_v31, 0 }
 0x2d8   :  { %1766 = vmatpush1.bf16.msra.mxu1 %v1734_v52 }
 0x2d9   :  { %v1717_v47 = vpop.permute.xlu1 %1716  ;;  %v1715_v61 = vpop.permute.xlu0 %1714 }
 0x2da   :  { %v1724_v25 = vsel %vm92_vm0, %v1713_v15, %v1715_v61  ;;  %v1725_v12 = vsel %vm92_vm0, %v1715_v61, %v1717_v47 }
 0x2db   :  { %5383 = vmatmul.mubr.msk.bf16.vlgmr.msra.gmra.mxu1 %vm1728_vm11, %v5523_v56  ;;  %5384 = vmatprep.subr.msk.bf16.mxu0 %vm1732_vm10, %v1725_v12  ;;  %v1740_v39 = vsel %vm1732_vm10, %v1724_v25, 0 }
 0x2dc   :  { %1809 = vmatpush1.bf16.msra.mxu0 %v1740_v39  ;;  %1869 = vmatprep.mubr.bf16.mxu1 %v7294_v1  ;;  %v5526_v39 = vld [vmem:[%s7290_s3 + $0x18] sm:$0xff]  }
 0x2dd   :  { %v1721_v3 = vpop.permute.xlu1 %1720  ;;  %v1719_v8 = vpop.permute.xlu0 %1718 }
 0x2de   :  { %v1726_v0 = vsel %vm92_vm0, %v1717_v47, %v1719_v8  ;;  %v1727_v30 = vsel %vm92_vm0, %v1719_v8, %v1721_v3 }
 0x2df   :  { %5385 = vmatmul.mubr.msk.bf16.vlgmr.msra.gmra.mxu0 %vm1728_vm11, %v5523_v56  ;;  %5386 = vmatprep.subr.msk.bf16.mxu1 %vm1732_vm10, %v1727_v30  ;;  %v1746_v48 = vsel %vm1732_vm10, %v1726_v0, 0 }
 0x2e0   :  { %1852 = vmatpush1.bf16.msra.mxu1 %v1746_v48  ;;  %1956 = vmatprep.mubr.bf16.mxu0 %v7294_v1 }
 0x2e1   :  { %v1888_v27 = vpop.permute.xlu1 %1887  ;;  %v1886_v49 = vpop.permute.xlu0 %1885 }
 0x2e2   :  { %v1897_v51 = vsel %vm259_vm3, %v5770_v19, %v1886_v49  ;;  %v1898_v32 = vsel %vm259_vm3, %v1886_v49, %v1888_v27 }
 0x2e3   :  { %5387 = vmatmul.mubr.msk.bf16.vlgmr.msra.gmra.mxu1 %vm1728_vm11, %v5523_v56  ;;  %5389 = vmatprep.subr.msk.bf16.mxu0 %vm1732_vm10, %v1898_v32  ;;  %v1907_v34 = vsel %vm1732_vm10, %v1897_v51, 0 }
 0x2e4   :  { %1939 = vmatpush1.bf16.msra.mxu0 %v1907_v34  ;;  %1999 = vmatprep.mubr.bf16.mxu1 %v7294_v1 }
 0x2e5   :  { %v1892_v11 = vpop.permute.xlu1 %1891  ;;  %v1890_v6 = vpop.permute.xlu0 %1889 }
 0x2e6   :  { %v1899_v9 = vsel %vm259_vm3, %v1888_v27, %v1890_v6  ;;  %v1900_v22 = vsel %vm259_vm3, %v1890_v6, %v1892_v11  ;;  %v2447_v6 = vsel %vm1732_vm10, %v6094_v45, 0 }
 0x2e7   :  { %v1913_v62 = vsel %vm1732_vm10, %v1899_v9, 0  ;;  %5390 = vmatmul.mubr.msk.bf16.vlgmr.msra.gmra.mxu0 %vm1728_vm11, %v5524_v14  ;;  %5391 = vmatprep.subr.msk.bf16.mxu1 %vm1732_vm10, %v1900_v22 }
 0x2e8   :  { %1982 = vmatpush1.bf16.msra.mxu1 %v1913_v62  ;;  %2042 = vmatprep.mubr.bf16.mxu0 %v7294_v1 }
 0x2e9   :  { %v1896_v24 = vpop.permute.xlu1 %1895  ;;  %v1894_v5 = vpop.permute.xlu0 %1893 }
 0x2ea   :  { %v1901_v35 = vsel %vm259_vm3, %v1892_v11, %v1894_v5  ;;  %v1902_v41 = vsel %vm259_vm3, %v1894_v5, %v1896_v24 }
 0x2eb   :  { %v1919_v37 = vsel %vm1732_vm10, %v1901_v35, 0  ;;  %5392 = vmatmul.mubr.msk.bf16.vlgmr.msra.gmra.mxu1 %vm1728_vm11, %v5524_v14  ;;  %5393 = vmatprep.subr.msk.bf16.mxu0 %vm1732_vm10, %v1902_v41 }
 0x2ec   :  { %2025 = vmatpush1.bf16.msra.mxu0 %v1919_v37  ;;  %2132 = vmatprep.mubr.bf16.mxu1 %v7294_v1 }
 0x2ed   :  { %v2064_v40 = vpop.permute.xlu1 %2063  ;;  %v2062_v36 = vpop.permute.xlu0 %2061 }
 0x2ee   :  { %v2073_v38 = vsel %vm426_vm4, %v5814_v54, %v2062_v36  ;;  %v2074_v53 = vsel %vm426_vm4, %v2062_v36, %v2064_v40 }
 0x2ef   :  { %v2083_v44 = vsel %vm1732_vm10, %v2073_v38, 0  ;;  %5394 = vmatmul.mubr.msk.bf16.vlgmr.msra.gmra.mxu0 %vm1728_vm11, %v5524_v14  ;;  %5398 = vmatprep.subr.msk.bf16.mxu1 %vm1732_vm10, %v2074_v53  ;;  %v2441_v14 = vsel %vm1732_vm10, %v6084_v23, 0  ;;  %v5527_v23 = vld [vmem:[%s7290_s3 + $0x20] sm:$0xff]   ;;  %v5528_v38 = vld [vmem:[%s7290_s3 + $0x28] sm:$0xff]  }
 0x2f0   :  { %2115 = vmatpush1.bf16.msra.mxu1 %v2083_v44  ;;  %2175 = vmatprep.mubr.bf16.mxu0 %v7294_v1 }
 0x2f1   :  { %v2068_v13 = vpop.permute.xlu1 %2067  ;;  %v2066_v46 = vpop.permute.xlu0 %2065 }
 0x2f2   :  { %v2075_v50 = vsel %vm426_vm4, %v2064_v40, %v2066_v46  ;;  %v2076_v57 = vsel %vm426_vm4, %v2066_v46, %v2068_v13 }
 0x2f3   :  { %v2089_v21 = vsel %vm1732_vm10, %v2075_v50, 0  ;;  %5399 = vmatmul.mubr.msk.bf16.vlgmr.msra.gmra.mxu1 %vm1728_vm11, %v5525_v63  ;;  %5400 = vmatprep.subr.msk.bf16.mxu0 %vm1732_vm10, %v2076_v57 }
 0x2f4   :  { %2158 = vmatpush1.bf16.msra.mxu0 %v2089_v21  ;;  %2218 = vmatprep.mubr.bf16.mxu1 %v7294_v1 }
 0x2f5   :  { %v2072_v15 = vpop.permute.xlu1 %2071  ;;  %v2070_v10 = vpop.permute.xlu0 %2069 }
 0x2f6   :  { %v2077_v31 = vsel %vm426_vm4, %v2068_v13, %v2070_v10  ;;  %v2078_v58 = vsel %vm426_vm4, %v2070_v10, %v2072_v15 }
 0x2f7   :  { %v2095_v52 = vsel %vm1732_vm10, %v2077_v31, 0  ;;  %5401 = vmatmul.mubr.msk.bf16.vlgmr.msra.gmra.mxu0 %vm1728_vm11, %v5525_v63  ;;  %5402 = vmatprep.subr.msk.bf16.mxu1 %vm1732_vm10, %v2078_v58 }
 0x2f8   :  { %2201 = vmatpush1.bf16.msra.mxu1 %v2095_v52  ;;  %2320 = vmatprep.mubr.bf16.mxu0 %v7294_v1 }
 0x2f9   :  { %v2252_v56 = vpop.permute.xlu1 %2251  ;;  %v2250_v47 = vpop.permute.xlu0 %2249 }
 0x2fa   :  { %v2261_v61 = vsel %vm599_vm5, %v5835_v4, %v2250_v47  ;;  %v2262_v25 = vsel %vm599_vm5, %v2250_v47, %v2252_v56 }
 0x2fb   :  { %v2271_v12 = vsel %vm1732_vm10, %v2261_v61, 0  ;;  %5403 = vmatmul.mubr.msk.bf16.vlgmr.msra.gmra.mxu1 %vm1728_vm11, %v5525_v63  ;;  %5407 = vmatprep.subr.msk.bf16.mxu0 %vm1732_vm10, %v2262_v25  ;;  %v5529_v61 = vld [vmem:[%s7290_s3 + $0x30] sm:$0xff]  }
 0x2fc   :  { %2303 = vmatpush1.bf16.msra.mxu0 %v2271_v12  ;;  %2363 = vmatprep.mubr.bf16.mxu1 %v7294_v1 }
 0x2fd   :  { %v2256_v3 = vpop.permute.xlu1 %2255  ;;  %v2254_v8 = vpop.permute.xlu0 %2253 }
 0x2fe   :  { %v2263_v0 = vsel %vm599_vm5, %v2252_v56, %v2254_v8  ;;  %v2264_v30 = vsel %vm599_vm5, %v2254_v8, %v2256_v3 }
 0x2ff   :  { %v2277_v48 = vsel %vm1732_vm10, %v2263_v0, 0  ;;  %5408 = vmatmul.mubr.msk.bf16.vlgmr.msra.gmra.mxu0 %vm1728_vm11, %v5526_v39  ;;  %5409 = vmatprep.subr.msk.bf16.mxu1 %vm1732_vm10, %v2264_v30 }
 0x300   :  { %2346 = vmatpush1.bf16.msra.mxu1 %v2277_v48  ;;  %2406 = vmatprep.mubr.bf16.mxu0 %v7294_v1 }
 0x301   :  { %v2260_v27 = vpop.permute.xlu1 %2259  ;;  %5416 = vmatprep.subr.msk.bf16.mxu1 %vm1732_vm10, %v6082_v60  ;;  %v2258_v49 = vpop.permute.xlu0 %2257 }
 0x302   :  { %v2265_v51 = vsel %vm599_vm5, %v2256_v3, %v2258_v49  ;;  %v2266_v32 = vsel %vm599_vm5, %v2258_v49, %v2260_v27 }
 0x303   :  { %v2283_v34 = vsel %vm1732_vm10, %v2265_v51, 0  ;;  %5410 = vmatmul.mubr.msk.bf16.vlgmr.msra.gmra.mxu1 %vm1728_vm11, %v5526_v39  ;;  %5411 = vmatprep.subr.msk.bf16.mxu0 %vm1732_vm10, %v2266_v32 }
 0x304   :  { %2389 = vmatpush1.bf16.msra.mxu0 %v2283_v34  ;;  %2473 = vmatpush1.bf16.msra.mxu1 %v2441_v14 }
 0x305   :  { %v2610_v11 = vpop.permute.xlu1 %2609  ;;  %5418 = vmatprep.subr.msk.bf16.mxu0 %vm1732_vm10, %v6092_v18  ;;  %v2608_v60 = vpop.permute.xlu0 %2607  ;;  %5420 = vmatprep.subr.msk.bf16.mxu1 %vm1732_vm10, %v6102_v7  ;;  %v2453_v7 = vsel %vm1732_vm10, %v6104_v33, 0 }
 0x306   :  { %2490 = vmatprep.mubr.bf16.mxu1 %v7294_v1  ;;  %v2619_v45 = vsel %vm924_vm6, %v2608_v60, %v2610_v11  ;;  %v5530_v60 = vld [vmem:[%s7290_s3 + $0x38] sm:$0xff]  }
 0x307   :  { %5412 = vmatmul.mubr.msk.bf16.vlgmr.msra.gmra.mxu0 %vm1728_vm11, %v5526_v39  ;;  %v2629_v41 = vsel %vm1732_vm10, %v2619_v45, 0 }
 0x308   :  { %2516 = vmatpush1.bf16.msra.mxu0 %v2447_v6  ;;  %2533 = vmatprep.mubr.bf16.mxu0 %v7294_v1 }
 0x309   :  { %v2614_v9 = vpop.permute.xlu1 %2613  ;;  %v2612_v18 = vpop.permute.xlu0 %2611 }
 0x30a   :  { %v2620_v22 = vsel %vm924_vm6, %v2610_v11, %v2612_v18  ;;  %v2621_v33 = vsel %vm924_vm6, %v2612_v18, %v2614_v9 }
 0x30b   :  { %5417 = vmatmul.mubr.msk.bf16.vlgmr.msra.gmra.mxu1 %vm1728_vm11, %v5527_v23  ;;  %5425 = vmatprep.subr.msk.bf16.mxu0 %vm1732_vm10, %v2620_v22  ;;  %v2635_v36 = vsel %vm1732_vm10, %v2621_v33, 0 }
 0x30c   :  { %2559 = vmatpush1.bf16.msra.mxu1 %v2453_v7  ;;  %2576 = vmatprep.mubr.bf16.mxu1 %v7294_v1 }
 0x30d   :  { %v2618_v62 = vpop.permute.xlu1 %2617  ;;  %v2616_v24 = vpop.permute.xlu0 %2615 }
 0x30e   :  { %v2624_v5 = vsel %vm924_vm6, %v2618_v62, %v5892_v43  ;;  %v2622_v35 = vsel %vm924_vm6, %v2614_v9, %v2616_v24  ;;  %v2623_v53 = vsel %vm924_vm6, %v2616_v24, %v2618_v62 }
 0x30f   :  { %5419 = vmatmul.mubr.msk.bf16.vlgmr.msra.gmra.mxu0 %vm1728_vm11, %v5527_v23  ;;  %5427 = vmatprep.subr.msk.bf16.mxu1 %vm1732_vm10, %v2622_v35  ;;  %v2641_v46 = vsel %vm1732_vm10, %v2623_v53, 0 }
 0x310   :  { %2661 = vmatpush1.bf16.msra.mxu0 %v2629_v41  ;;  %2678 = vmatprep.mubr.bf16.mxu0 %v7294_v1 }
 0x311   :  { %5429 = vmatprep.subr.msk.bf16.mxu0 %vm1732_vm10, %v2624_v5  ;;  %v2798_v37 = vpop.permute.xlu1 %2797  ;;  %v2796_v40 = vpop.permute.xlu0 %2795 }
 0x312   :  { %v2807_v50 = vsel %vm1097_vm7, %v2796_v40, %v2798_v37 }
 0x313   :  { %5421 = vmatmul.mubr.msk.bf16.vlgmr.msra.gmra.mxu1 %vm1728_vm11, %v5527_v23  ;;  %v2817_v31 = vsel %vm1732_vm10, %v2807_v50, 0 }
 0x314   :  { %2704 = vmatpush1.bf16.msra.mxu1 %v2635_v36  ;;  %2721 = vmatprep.mubr.bf16.mxu1 %v7294_v1 }
 0x315   :  { %v2802_v44 = vpop.permute.xlu1 %2801  ;;  %v2800_v63 = vpop.permute.xlu0 %2799 }
 0x316   :  { %v2808_v13 = vsel %vm1097_vm7, %v2798_v37, %v2800_v63  ;;  %v2809_v58 = vsel %vm1097_vm7, %v2800_v63, %v2802_v44  ;;  %v5531_v37 = vld [vmem:[%s7290_s3 + $0x40] sm:$0xff]  }
 0x317   :  { %5426 = vmatmul.mubr.msk.bf16.vlgmr.msra.gmra.mxu0 %vm1728_vm11, %v5528_v38  ;;  %5434 = vmatprep.subr.msk.bf16.mxu1 %vm1732_vm10, %v2808_v13  ;;  %v2823_v47 = vsel %vm1732_vm10, %v2809_v58, 0 }
 0x318   :  { %2747 = vmatpush1.bf16.msra.mxu0 %v2641_v46  ;;  %2764 = vmatprep.mubr.bf16.mxu0 %v7294_v1 }
 0x319   :  { %v2806_v57 = vpop.permute.xlu1 %2805  ;;  %v2804_v21 = vpop.permute.xlu0 %2803 }
 0x31a   :  { %v2812_v15 = vsel %vm1097_vm7, %v2806_v57, %v5916_v59  ;;  %v2810_v10 = vsel %vm1097_vm7, %v2802_v44, %v2804_v21  ;;  %v2811_v25 = vsel %vm1097_vm7, %v2804_v21, %v2806_v57 }
 0x31b   :  { %5428 = vmatmul.mubr.msk.bf16.vlgmr.msra.gmra.mxu1 %vm1728_vm11, %v5528_v38  ;;  %5436 = vmatprep.subr.msk.bf16.mxu0 %vm1732_vm10, %v2810_v10  ;;  %v2829_v8 = vsel %vm1732_vm10, %v2811_v25, 0 }
 0x31c   :  { %2849 = vmatpush1.bf16.msra.mxu1 %v2817_v31  ;;  %2866 = vmatprep.mubr.bf16.mxu1 %v7294_v1 }
 0x31d   :  { %5438 = vmatprep.subr.msk.bf16.mxu1 %vm1732_vm10, %v2812_v15  ;;  %v2986_v52 = vpop.permute.xlu1 %2985  ;;  %v2984_v56 = vpop.permute.xlu0 %2983 }
 0x31e   :  { %v2995_v0 = vsel %vm1270_vm8, %v2984_v56, %v2986_v52 }
 0x31f   :  { %5430 = vmatmul.mubr.msk.bf16.vlgmr.msra.gmra.mxu0 %vm1728_vm11, %v5528_v38  ;;  %v3005_v51 = vsel %vm1732_vm10, %v2995_v0, 0 }
 0x320   :  { %2892 = vmatpush1.bf16.msra.mxu0 %v2823_v47  ;;  %2909 = vmatprep.mubr.bf16.mxu0 %v7294_v1 }
 0x321   :  { %v2990_v12 = vpop.permute.xlu1 %2989  ;;  %v2988_v39 = vpop.permute.xlu0 %2987 }
 0x322   :  { %v2996_v3 = vsel %vm1270_vm8, %v2986_v52, %v2988_v39  ;;  %v2997_v32 = vsel %vm1270_vm8, %v2988_v39, %v2990_v12 }
 0x323   :  { %5435 = vmatmul.mubr.msk.bf16.vlgmr.msra.gmra.mxu1 %vm1728_vm11, %v5529_v61  ;;  %5443 = vmatprep.subr.msk.bf16.mxu0 %vm1732_vm10, %v2996_v3  ;;  %v3011_v11 = vsel %vm1732_vm10, %v2997_v32, 0 }
 0x324   :  { %2935 = vmatpush1.bf16.msra.mxu1 %v2829_v8  ;;  %2952 = vmatprep.mubr.bf16.mxu1 %v7294_v1 }
 0x325   :  { %v2994_v30 = vpop.permute.xlu1 %2993  ;;  %v2992_v48 = vpop.permute.xlu0 %2991 }
 0x326   :  { %v3000_v27 = vsel %vm1270_vm8, %v2994_v30, %v5947_v28  ;;  %v2998_v49 = vsel %vm1270_vm8, %v2990_v12, %v2992_v48  ;;  %v2999_v6 = vsel %vm1270_vm8, %v2992_v48, %v2994_v30 }
 0x327   :  { %5437 = vmatmul.mubr.msk.bf16.vlgmr.msra.gmra.mxu0 %vm1728_vm11, %v5529_v61  ;;  %5445 = vmatprep.subr.msk.bf16.mxu1 %vm1732_vm10, %v2998_v49  ;;  %v3017_v22 = vsel %vm1732_vm10, %v2999_v6, 0 }
 0x328   :  { %3037 = vmatpush1.bf16.msra.mxu0 %v3005_v51  ;;  %3054 = vmatprep.mubr.bf16.mxu0 %v7294_v1 }
 0x329   :  { %5447 = vmatprep.subr.msk.bf16.mxu0 %vm1732_vm10, %v3000_v27  ;;  %v3174_v34 = vpop.permute.xlu1 %3173  ;;  %v3172_v14 = vpop.permute.xlu0 %3171 }
 0x32a   :  { %v3183_v7 = vsel %vm1443_vm9, %v3172_v14, %v3174_v34 }
 0x32b   :  { %5439 = vmatmul.mubr.msk.bf16.vlgmr.msra.gmra.mxu1 %vm1728_vm11, %v5529_v61  ;;  %v3193_v35 = vsel %vm1732_vm10, %v3183_v7, 0 }
 0x32c   :  { %3080 = vmatpush1.bf16.msra.mxu1 %v3011_v11  ;;  %3097 = vmatprep.mubr.bf16.mxu1 %v7294_v1 }
 0x32d   :  { %v3178_v23 = vpop.permute.xlu1 %3177  ;;  %v3176_v9 = vpop.permute.xlu0 %3175 }
 0x32e   :  { %v3184_v18 = vsel %vm1443_vm9, %v3174_v34, %v3176_v9  ;;  %v3185_v41 = vsel %vm1443_vm9, %v3176_v9, %v3178_v23 }
 0x32f   :  { %5444 = vmatmul.mubr.msk.bf16.vlgmr.msra.gmra.mxu0 %vm1728_vm11, %v5530_v60  ;;  %5452 = vmatprep.subr.msk.bf16.mxu1 %vm1732_vm10, %v3184_v18  ;;  %v3199_v33 = vsel %vm1732_vm10, %v3185_v41, 0 }
 0x330   :  { %3123 = vmatpush1.bf16.msra.mxu0 %v3017_v22  ;;  %3140 = vmatprep.mubr.bf16.mxu0 %v7294_v1 }
 0x331   :  { %v3182_v45 = vpop.permute.xlu1 %3181  ;;  %v3180_v62 = vpop.permute.xlu0 %3179 }
 0x332   :  { %v3188_v24 = vsel %vm1443_vm9, %v3182_v45, %v5970_v16  ;;  %v3186_v5 = vsel %vm1443_vm9, %v3178_v23, %v3180_v62  ;;  %v3187_v40 = vsel %vm1443_vm9, %v3180_v62, %v3182_v45 }
 0x333   :  { %5446 = vmatmul.mubr.msk.bf16.vlgmr.msra.gmra.mxu1 %vm1728_vm11, %v5530_v60  ;;  %5454 = vmatprep.subr.msk.bf16.mxu0 %vm1732_vm10, %v3186_v5  ;;  %v3205_v36 = vsel %vm1732_vm10, %v3187_v40, 0 }
 0x334   :  { %3225 = vmatpush1.bf16.msra.mxu1 %v3193_v35  ;;  %3242 = vmatprep.mubr.bf16.mxu1 %v7294_v1 }
 0x335   :  { %5456 = vmatprep.subr.msk.bf16.mxu1 %vm1732_vm10, %v3188_v24 }
 0x337   :  { %5448 = vmatmul.mubr.msk.bf16.vlgmr.msra.gmra.mxu0 %vm1728_vm11, %v5530_v60 }
 0x338   :  { %3268 = vmatpush1.bf16.msra.mxu0 %v3199_v33  ;;  %3285 = vmatprep.mubr.bf16.mxu0 %v7294_v1 }
 0x33b   :  { %5453 = vmatmul.mubr.msk.bf16.vlgmr.msra.gmra.mxu1 %vm1728_vm11, %v5531_v37 }
 0x33c   :  { %3311 = vmatpush1.bf16.msra.mxu1 %v3205_v36  ;;  %3328 = vmatprep.mubr.bf16.mxu1 %v7294_v1 }
 0x33f   :  { %5455 = vmatmul.mubr.msk.bf16.vlgmr.msra.gmra.mxu0 %vm1728_vm11, %v5531_v37 }
 0x340   :  { %3549 = vmatprep.mubr.bf16.mxu0 %v7294_v1 }
 0x343   :  { %5457 = vmatmul.mubr.msk.bf16.vlgmr.msra.gmra.mxu1 %vm1728_vm11, %v5531_v37 }
 0x344   :  { %3592 = vmatprep.mubr.bf16.mxu1 %v7294_v1 }
 0x39b   :  { %v1785_v38 = vpop.f32.mrf.mxu1 }
 0x39d   :  { %v1787_v53 = vpop.f32.mrf.mxu1 }
 0x39f   :  { %v1789_v44 = vpop.f32.mrf.mxu1  ;;  %v1828_v63 = vpop.f32.mrf.mxu0 }
 0x3a1   :  { %v1791_v13 = vpop.f32.mrf.mxu1  ;;  %v1830_v46 = vpop.f32.mrf.mxu0 }
 0x3a3   :  { %v1832_v50 = vpop.f32.mrf.mxu0  ;;  %v1871_v57 = vpop.f32.mrf.mxu1 }
 0x3a5   :  { %v1834_v21 = vpop.f32.mrf.mxu0  ;;  %v1873_v15 = vpop.f32.mrf.mxu1 }
 0x3a7   :  { %v1875_v10 = vpop.f32.mrf.mxu1  ;;  %v1958_v31 = vpop.f32.mrf.mxu0 }
 0x3a8   :  { %v6391_v58 = vadd.f32 %v1958_v31, %v1785_v38 }
 0x3a9   :  { %v1877_v52 = vpop.f32.mrf.mxu1  ;;  %v1960_v56 = vpop.f32.mrf.mxu0 }
 0x3aa   :  { %v6393_v47 = vadd.f32 %v1960_v56, %v1787_v53 }
 0x3ab   :  { %v1962_v61 = vpop.f32.mrf.mxu0  ;;  %v2001_v25 = vpop.f32.mrf.mxu1 }
 0x3ac   :  { %v6395_v12 = vadd.f32 %v1962_v61, %v1789_v44  ;;  %v6397_v39 = vadd.f32 %v2001_v25, %v1828_v63 }
 0x3ad   :  { %v1964_v3 = vpop.f32.mrf.mxu0  ;;  %v2003_v8 = vpop.f32.mrf.mxu1 }
 0x3ae   :  { %v6399_v0 = vadd.f32 %v1964_v3, %v1791_v13  ;;  %v6401_v30 = vadd.f32 %v2003_v8, %v1830_v46 }
 0x3af   :  { %v2005_v48 = vpop.f32.mrf.mxu1  ;;  %v2044_v27 = vpop.f32.mrf.mxu0 }
 0x3b0   :  { %v6403_v49 = vadd.f32 %v2005_v48, %v1832_v50  ;;  %v6405_v51 = vadd.f32 %v2044_v27, %v1871_v57 }
 0x3b1   :  { %v2007_v32 = vpop.f32.mrf.mxu1  ;;  %v2046_v34 = vpop.f32.mrf.mxu0 }
 0x3b2   :  { %v6407_v14 = vadd.f32 %v2007_v32, %v1834_v21  ;;  %v6409_v11 = vadd.f32 %v2046_v34, %v1873_v15 }
 0x3b3   :  { %v2048_v60 = vpop.f32.mrf.mxu0  ;;  %v2134_v6 = vpop.f32.mrf.mxu1 }
 0x3b4   :  { %v6411_v23 = vadd.f32 %v2048_v60, %v1875_v10 }
 0x3b5   :  { %v2050_v9 = vpop.f32.mrf.mxu0  ;;  %v2136_v18 = vpop.f32.mrf.mxu1 }
 0x3b6   :  { %v6413_v22 = vadd.f32 %v2050_v9, %v1877_v52 }
 0x3b7   :  { %v2138_v7 = vpop.f32.mrf.mxu1  ;;  %v2177_v45 = vpop.f32.mrf.mxu0 }
 0x3b9   :  { %v2140_v62 = vpop.f32.mrf.mxu1  ;;  %v2179_v24 = vpop.f32.mrf.mxu0 }
 0x3bb   :  { %v2181_v5 = vpop.f32.mrf.mxu0  ;;  %v2220_v35 = vpop.f32.mrf.mxu1 }
 0x3bd   :  { %v2183_v41 = vpop.f32.mrf.mxu0  ;;  %v2222_v33 = vpop.f32.mrf.mxu1 }
 0x3bf   :  { %v2224_v37 = vpop.f32.mrf.mxu1  ;;  %v2322_v40 = vpop.f32.mrf.mxu0 }
 0x3c1   :  { %v2226_v36 = vpop.f32.mrf.mxu1  ;;  %v2324_v38 = vpop.f32.mrf.mxu0 }
 0x3c3   :  { %v2326_v53 = vpop.f32.mrf.mxu0  ;;  %v2365_v44 = vpop.f32.mrf.mxu1 }
 0x3c5   :  { %v2328_v63 = vpop.f32.mrf.mxu0  ;;  %v2367_v13 = vpop.f32.mrf.mxu1 }
 0x3c7   :  { %v2369_v46 = vpop.f32.mrf.mxu1  ;;  %v6415_v50 = vpop.f32.mrf.mxu0 }
 0x3c9   :  { %v6417_v57 = vpop.f32.mrf.mxu1  ;;  %v6419_v21 = vpop.f32.mrf.mxu0 }
 0x3cb   :  { %v6421_v15 = vpop.f32.mrf.mxu0  ;;  %v6423_v10 = vpop.f32.mrf.mxu1 }
 0x3cd   :  { %v6425_v31 = vpop.f32.mrf.mxu0  ;;  %v6427_v52 = vpop.f32.mrf.mxu1 }
 0x3cf   :  { %v6429_v56 = vpop.f32.mrf.mxu1  ;;  %v6431_v61 = vpop.f32.mrf.mxu0 }
 0x3d1   :  { %v6433_v25 = vpop.f32.mrf.mxu1  ;;  %v6435_v3 = vpop.f32.mrf.mxu0 }
 0x3d3   :  { %v6437_v8 = vpop.f32.mrf.mxu0  ;;  %v6439_v48 = vpop.f32.mrf.mxu1 }
 0x3d5   :  { %v6441_v27 = vpop.f32.mrf.mxu0  ;;  %v6443_v32 = vpop.f32.mrf.mxu1 }
 0x3d7   :  { %v6445_v34 = vpop.f32.mrf.mxu1  ;;  %v2680_v60 = vpop.f32.mrf.mxu0 }
 0x3d9   :  { %v6447_v9 = vpop.f32.mrf.mxu1  ;;  %v6449_v1 = vpop.f32.mrf.mxu0 }
 0x3db   :  { %v6451_v16 = vpop.f32.mrf.mxu0  ;;  %v6453_v28 = vpop.f32.mrf.mxu1 }
 0x3dd   :  { %v6455_v59 = vpop.f32.mrf.mxu0  ;;  %v6457_v43 = vpop.f32.mrf.mxu1 }
 0x3de   :  { %7336 = vst [vmem:[#allocation16_spill] sm:$0xff] %v6455_v59  ;;  %7337 = vst [vmem:[#allocation17_spill] sm:$0xff] %v6457_v43 }
 0x3df   :  { %v6459_v4 = vpop.f32.mrf.mxu1  ;;  %v6461_v54 = vpop.f32.mrf.mxu0 }
 0x3e0   :  { %7338 = vst [vmem:[#allocation18_spill] sm:$0xff] %v6459_v4  ;;  %7339 = vst [vmem:[#allocation19_spill] sm:$0xff] %v6461_v54 }
 0x3e1   :  { %v6463_v19 = vpop.f32.mrf.mxu1  ;;  %v6465_v20 = vpop.f32.mrf.mxu0 }
 0x3e2   :  { %7340 = vst [vmem:[#allocation20_spill] sm:$0xff] %v6463_v19  ;;  %7341 = vst [vmem:[#allocation21_spill] sm:$0xff] %v6465_v20 }
 0x3e3   :  { %v6467_v26 = vpop.f32.mrf.mxu0  ;;  %v2868_v2 = vpop.f32.mrf.mxu1 }
 0x3e4   :  { %7342 = vst [vmem:[#allocation22_spill] sm:$0xff] %v6467_v26 }
 0x3e5   :  { %v6469_v55 = vpop.f32.mrf.mxu0  ;;  %v6471_v17 = vpop.f32.mrf.mxu1 }
 0x3e6   :  { %7343 = vst [vmem:[#allocation23_spill] sm:$0xff] %v6469_v55  ;;  %7344 = vst [vmem:[#allocation24_spill] sm:$0xff] %v6471_v17  ;;  %v2229_v55 = vadd.f32 %v2134_v6, %v6391_v58  ;;  %v2230_v17 = vadd.f32 %v2136_v18, %v6393_v47  ;;  %v2234_v58 = vadd.f32 %v2222_v33, %v6409_v11 }
 0x3e7   :  { %v6473_v29 = vpop.f32.mrf.mxu1  ;;  %v6475_v42 = vpop.f32.mrf.mxu0  ;;  %v2239_v47 = vadd.f32 %v2224_v37, %v6411_v23 }
 0x3e8   :  { %7345 = vst [vmem:[#allocation25_spill] sm:$0xff] %v6473_v29  ;;  %7346 = vst [vmem:[#allocation26_spill] sm:$0xff] %v6475_v42  ;;  %v2235_v29 = vadd.f32 %v2138_v7, %v6395_v12  ;;  %v2417_v18 = vadd.f32 %v2322_v40, %v2229_v55  ;;  %v2418_v7 = vadd.f32 %v2324_v38, %v2230_v17 }
 0x3e9   :  { %v6477_v43 = vpop.f32.mrf.mxu1  ;;  %v6479_v4 = vpop.f32.mrf.mxu0  ;;  %v2422_v23 = vadd.f32 %v6419_v21, %v2234_v58  ;;  %v2427_v55 = vadd.f32 %v6421_v15, %v2239_v47  ;;  %v7354_v21 = vld [vmem:[#allocation17_spill] sm:$0xff] }
 0x3ea   :  { %7347 = vst [vmem:[#allocation27_spill] sm:$0xff] %v6477_v43  ;;  %7348 = vst [vmem:[#allocation28_spill] sm:$0xff] %v6479_v4  ;;  %v2231_v43 = vadd.f32 %v2177_v45, %v6397_v39  ;;  %v2236_v4 = vadd.f32 %v2140_v62, %v6399_v0  ;;  %v2240_v39 = vadd.f32 %v2226_v36, %v6413_v22 }
 0x3eb   :  { %v6481_v54 = vpop.f32.mrf.mxu0  ;;  %v6483_v19 = vpop.f32.mrf.mxu1  ;;  %v2423_v0 = vadd.f32 %v2326_v53, %v2235_v29  ;;  %v2588_v29 = vadd.f32 %v6427_v52, %v2418_v7  ;;  %v2592_v37 = vadd.f32 %v6443_v32, %v2422_v23  ;;  %v2597_v38 = vadd.f32 %v6445_v34, %v2427_v55  ;;  %v7355_v52 = vld [vmem:[#allocation18_spill] sm:$0xff] }
 0x3ec   :  { %7349 = vst [vmem:[#allocation29_spill] sm:$0xff] %v6481_v54  ;;  %7350 = vst [vmem:[#allocation30_spill] sm:$0xff] %v6483_v19  ;;  %v2232_v54 = vadd.f32 %v2179_v24, %v6401_v30  ;;  %v2237_v19 = vadd.f32 %v2181_v5, %v6403_v49  ;;  %v2419_v45 = vadd.f32 %v2365_v44, %v2231_v43 }
 0x3ed   :  { %v6485_v20 = vpop.f32.mrf.mxu0  ;;  %v6487_v26 = vpop.f32.mrf.mxu1  ;;  %v2424_v30 = vadd.f32 %v2328_v63, %v2236_v4  ;;  %v2587_v5 = vadd.f32 %v6423_v10, %v2417_v18  ;;  %v2428_v22 = vadd.f32 %v6425_v31, %v2240_v39  ;;  %v2593_v4 = vadd.f32 %v6429_v56, %v2423_v0 }
 0x3ee   :  { %7351 = vst [vmem:[#allocation31_spill] sm:$0xff] %v6485_v20  ;;  %7352 = vst [vmem:[#allocation32_spill] sm:$0xff] %v6487_v26  ;;  %v2233_v20 = vadd.f32 %v2220_v35, %v6405_v51  ;;  %v2238_v26 = vadd.f32 %v2183_v41, %v6407_v14  ;;  %v2420_v62 = vadd.f32 %v2367_v13, %v2232_v54 }
 0x3ef   :  { %v6492_v59 = vpop.f32.mrf.mxu1  ;;  %v3056_v42 = vpop.f32.mrf.mxu0  ;;  %v2425_v49 = vadd.f32 %v2369_v46, %v2237_v19  ;;  %v2589_v43 = vadd.f32 %v6431_v61, %v2419_v45  ;;  %v2598_v53 = vadd.f32 %v6447_v9, %v2428_v22  ;;  %v2776_v44 = vadd.f32 %v6449_v1, %v2588_v29  ;;  %v7356_v61 = vld [vmem:[#allocation19_spill] sm:$0xff]  ;;  %v7362_v47 = vld [vmem:[#allocation25_spill] sm:$0xff]  ;;  %v7363_v39 = vld [vmem:[#allocation26_spill] sm:$0xff] }
 0x3f0   :  { %v2421_v14 = vadd.f32 %v6415_v50, %v2233_v20  ;;  %v2426_v11 = vadd.f32 %v6417_v57, %v2238_v26  ;;  %v2594_v20 = vadd.f32 %v6433_v25, %v2424_v30  ;;  %v2590_v17 = vadd.f32 %v6435_v3, %v2420_v62  ;;  %v7353_v50 = vld [vmem:[#allocation16_spill] sm:$0xff] }
 0x3f1   :  { %v6502_v12 = vpop.f32.mrf.mxu1  ;;  %v3058_v6 = vpop.f32.mrf.mxu0  ;;  %v2775_v26 = vadd.f32 %v2680_v60, %v2587_v5  ;;  %v2595_v35 = vadd.f32 %v6437_v8, %v2425_v49  ;;  %v2781_v13 = vadd.f32 %v6451_v16, %v2593_v4  ;;  %v2777_v46 = vadd.f32 %v6453_v28, %v2589_v43  ;;  %v7357_v3 = vld [vmem:[#allocation24_spill] sm:$0xff]  ;;  %v7360_v16 = vld [vmem:[#allocation22_spill] sm:$0xff]  ;;  %v7361_v28 = vld [vmem:[#allocation23_spill] sm:$0xff] }
 0x3f2   :  { %v2591_v41 = vadd.f32 %v6439_v48, %v2421_v14  ;;  %v2596_v33 = vadd.f32 %v6441_v27, %v2426_v11  ;;  %v2782_v57 = vadd.f32 %v7353_v50, %v2594_v20  ;;  %v2778_v15 = vadd.f32 %v7354_v21, %v2590_v17  ;;  %v7358_v27 = vld [vmem:[#allocation20_spill] sm:$0xff]  ;;  %v7364_v30 = vld [vmem:[#allocation27_spill] sm:$0xff]  ;;  %v7368_v43 = vld [vmem:[#allocation10_spill] sm:$0xff] }
 0x3f3   :  { %v3060_v24 = vpop.f32.mrf.mxu0  ;;  %v3099_v51 = vpop.f32.mrf.mxu1  ;;  %v2963_v63 = vadd.f32 %v2868_v2, %v2775_v26  ;;  %v2783_v56 = vadd.f32 %v7355_v52, %v2595_v35  ;;  %v2964_v8 = vadd.f32 %v7357_v3, %v2776_v44  ;;  %v7359_v2 = vld [vmem:[#allocation21_spill] sm:$0xff]  ;;  %v2785_v34 = vadd.f32 %v7360_v16, %v2597_v38  ;;  %v7367_v23 = vld [vmem:[#allocation30_spill] sm:$0xff] }
 0x3f4   :  { %v2779_v25 = vadd.f32 %v7356_v61, %v2591_v41  ;;  %v2784_v1 = vadd.f32 %v7358_v27, %v2596_v33  ;;  %v2780_v32 = vadd.f32 %v7359_v2, %v2592_v37  ;;  %v2786_v60 = vadd.f32 %v7361_v28, %v2598_v53  ;;  %v7366_v14 = vld [vmem:[#allocation29_spill] sm:$0xff] }
 0x3f5   :  { %v3062_v54 = vpop.f32.mrf.mxu0  ;;  %v3101_v19 = vpop.f32.mrf.mxu1  ;;  %v3151_v48 = vadd.f32 %v3056_v42, %v2963_v63  ;;  %v2969_v18 = vadd.f32 %v7362_v47, %v2781_v13  ;;  %v2965_v7 = vadd.f32 %v7363_v39, %v2777_v46  ;;  %v3152_v0 = vadd.f32 %v3058_v6, %v2964_v8  ;;  %v7365_v42 = vld [vmem:[#allocation28_spill] sm:$0xff]  ;;  %v7369_v6 = vld [vmem:[#allocation31_spill] sm:$0xff]  ;;  %v7373_v16 = vld [vmem:[#allocation13_spill] sm:$0xff] }
 0x3f6   :  { %v2970_v62 = vadd.f32 %v7364_v30, %v2782_v57  ;;  %v2966_v49 = vadd.f32 %v7365_v42, %v2778_v15  ;;  %v2971_v11 = vadd.f32 %v7366_v14, %v2783_v56  ;;  %v2967_v5 = vadd.f32 %v7367_v23, %v2779_v25  ;;  %v7370_v35 = vld [vmem:[#allocation32_spill] sm:$0xff]  ;;  %v7371_v63 = vld [vmem:[#allocation11_spill] sm:$0xff] }
 0x3f7   :  { %v3103_v40 = vpop.f32.mrf.mxu1  ;;  %v3142_v36 = vpop.f32.mrf.mxu0  ;;  %v3157_v29 = vadd.f32 %v3060_v24, %v2969_v18  ;;  %v3153_v4 = vadd.f32 %v3099_v51, %v2965_v7  ;;  %v2972_v26 = vadd.f32 %v7369_v6, %v2784_v1  ;;  %v2968_v41 = vadd.f32 %v7370_v35, %v2780_v32  ;;  %v7372_v56 = vld [vmem:[#allocation12_spill] sm:$0xff]  ;;  %v7375_v23 = vld [vmem:[#allocation15_spill] sm:$0xff] }
 0x3f8   :  { %v2973_v33 = vadd.f32 %v6492_v59, %v2785_v34  ;;  %v2974_v37 = vadd.f32 %v6502_v12, %v2786_v60  ;;  %v3158_v44 = vadd.f32 %v3062_v54, %v2970_v62  ;;  %v3154_v46 = vadd.f32 %v3101_v19, %v2966_v49  ;;  %v7374_v49 = vld [vmem:[#allocation14_spill] sm:$0xff] }
 0x3f9   :  { %v3105_v10 = vpop.f32.mrf.mxu1  ;;  %v3144_v31 = vpop.f32.mrf.mxu0  ;;  %v3159_v50 = vadd.f32 %v3103_v40, %v2971_v11  ;;  %v3155_v57 = vadd.f32 %v3142_v36, %v2967_v5 }
 0x3fa   :  { %v3160_v25 = vadd.f32 %v3105_v10, %v2972_v26  ;;  %v3156_v3 = vadd.f32 %v3144_v31, %v2968_v41 }
 0x3fb   :  { %v3146_v9 = vpop.f32.mrf.mxu0  ;;  %v3244_v58 = vpop.f32.mrf.mxu1 }
 0x3fc   :  { %v6536_v45 = vadd.f32 %v3244_v58, %v3151_v48  ;;  %v3161_v48 = vadd.f32 %v3146_v9, %v2973_v33 }
 0x3fd   :  { %v3148_v55 = vpop.f32.mrf.mxu0  ;;  %v3246_v22 = vpop.f32.mrf.mxu1 }
 0x3fe   :  { %v3351_v20 = vmul.f32 %v6536_v45, %v7368_v43  ;;  %v6544_v17 = vadd.f32 %v3246_v22, %v3152_v0  ;;  %v3162_v22 = vadd.f32 %v3148_v55, %v2974_v37 }
 0x3ff   :  { %v3248_v38 = vpop.f32.mrf.mxu1  ;;  %v3287_v53 = vpop.f32.mrf.mxu0 }
 0x400   :  { %v3352_v24 = vmul.f32 %v6544_v17, %v7371_v63  ;;  %v6552_v51 = vadd.f32 %v3248_v38, %v3157_v29  ;;  %v6554_v13 = vadd.f32 %v3287_v53, %v3153_v4  ;;  %v3377_v21 = vmul.f32 %v3351_v20, %v6536_v45 }
 0x401   :  { %v3250_v15 = vpop.f32.mrf.mxu1  ;;  %v3289_v52 = vpop.f32.mrf.mxu0 }
 0x402   :  { %v3363_v59 = vadd.f32 %v3352_v24, %v3351_v20  ;;  %v3378_v12 = vmul.f32 %v3352_v24, %v6544_v17  ;;  %v3357_v54 = vmul.f32 %v6552_v51, %v7368_v43  ;;  %v3353_v61 = vmul.f32 %v6554_v13, %v7372_v56 }
 0x403   :  { %v6562_v8 = vadd.f32 %v3250_v15, %v3158_v44  ;;  %v6564_v19 = vadd.f32 %v3289_v52, %v3154_v46  ;;  %v3291_v40 = vpop.f32.mrf.mxu0  ;;  %v3330_v36 = vpop.f32.mrf.mxu1 }
 0x404   :  { %v3389_v27 = vadd.f32 %v3378_v12, %v3377_v21  ;;  %v3364_v1 = vadd.f32 %v3363_v59, %v3353_v61  ;;  %v3379_v2 = vmul.f32 %v3353_v61, %v6554_v13  ;;  %v6571_v28 = vadd.f32 %v3291_v40, %v3159_v50 }
 0x405   :  { %v3358_v32 = vmul.f32 %v6562_v8, %v7371_v63  ;;  %v3354_v34 = vmul.f32 %v6564_v19, %v7373_v16  ;;  %v6573_v10 = vadd.f32 %v3330_v36, %v3155_v57  ;;  %v3293_v31 = vpop.f32.mrf.mxu0  ;;  %v3332_v60 = vpop.f32.mrf.mxu1  ;;  %v3383_v58 = vmul.f32 %v3357_v54, %v6552_v51 }
 0x406   :  { %v3390_v47 = vadd.f32 %v3389_v27, %v3379_v2  ;;  %v6576_v9 = vadd.f32 %v3293_v31, %v3160_v25  ;;  %v6578_v18 = vadd.f32 %v3332_v60, %v3156_v3  ;;  %v3359_v42 = vmul.f32 %v6571_v28, %v7372_v56 }
 0x407   :  { %v3370_v39 = vadd.f32 %v3358_v32, %v3357_v54  ;;  %v3384_v7 = vmul.f32 %v3358_v32, %v6562_v8  ;;  %v3365_v0 = vadd.f32 %v3364_v1, %v3354_v34  ;;  %v3380_v30 = vmul.f32 %v3354_v34, %v6564_v19  ;;  %v3334_v62 = vpop.f32.mrf.mxu1 }
 0x408   :  { %v3355_v14 = vmul.f32 %v6573_v10, %v7374_v49  ;;  %v3360_v11 = vmul.f32 %v6576_v9, %v7373_v16  ;;  %v3356_v5 = vmul.f32 %v6578_v18, %v7375_v23  ;;  %v6590_v20 = vadd.f32 %v3334_v62, %v3161_v48 }
 0x409   :  { %v3396_v29 = vadd.f32 %v3384_v7, %v3383_v58  ;;  %v3391_v4 = vadd.f32 %v3390_v47, %v3380_v30  ;;  %v3336_v6 = vpop.f32.mrf.mxu1  ;;  %v3371_v26 = vadd.f32 %v3370_v39, %v3359_v42  ;;  %v3385_v35 = vmul.f32 %v3359_v42, %v6571_v28 }
 0x40a   :  { %v3381_v41 = vmul.f32 %v3355_v14, %v6573_v10  ;;  %v3386_v33 = vmul.f32 %v3360_v11, %v6576_v9  ;;  %v3361_v38 = vmul.f32 %v6590_v20, %v7374_v49  ;;  %v6597_v53 = vadd.f32 %v3336_v6, %v3162_v22 }
 0x40b   :  { %v3366_v44 = vadd.f32 %v3365_v0, %v3355_v14  ;;  %v3397_v24 = vadd.f32 %v3396_v29, %v3385_v35  ;;  %v3372_v55 = vadd.f32 %v3371_v26, %v3360_v11  ;;  %v3382_v37 = vmul.f32 %v3356_v5, %v6578_v18 }
 0x40c   :  { %v3387_v46 = vmul.f32 %v3361_v38, %v6590_v20  ;;  %v3362_v50 = vmul.f32 %v6597_v53, %v7375_v23  ;;  %v3392_v21 = vadd.f32 %v3391_v4, %v3381_v41 }
 0x40d   :  { %v3367_v57 = vadd.f32 %v3366_v44, %v3356_v5  ;;  %v3398_v15 = vadd.f32 %v3397_v24, %v3386_v33  ;;  %v3373_v52 = vadd.f32 %v3372_v55, %v3361_v38 }
 0x40e   :  { %v3388_v12 = vmul.f32 %v3362_v50, %v6597_v53  ;;  %v3393_v54 = vadd.f32 %v3392_v21, %v3382_v37 }
 0x40f   :  { %3368 = vadd.xlane.f32.xlu0 %v3367_v57  ;;  %v3374_v59 = vadd.f32 %v3373_v52, %v3362_v50  ;;  %v3399_v61 = vadd.f32 %v3398_v15, %v3387_v46 }
 0x411   :  { %3375 = vadd.xlane.f32.xlu1 %v3374_v59  ;;  %v3400_v25 = vadd.f32 %v3399_v61, %v3388_v12 }
 0x413   :  { %3394 = vadd.xlane.f32.xlu0 %v3393_v54 }
 0x417   :  { %3401 = vadd.xlane.f32.xlu0 %v3400_v25 }
 0x498   :  { %v3369_v3 = vpop.xlane.xlu0 %3368 }
 0x499   :  { %v6604_v40 = vmul.f32 0.001953125, %v3369_v3 }
 0x49a   :  { %v3376_v36 = vpop.xlane.xlu1 %3375 }
 0x49b   :  { %v3407_v27 = vmul.f32 %v6604_v40, %v6604_v40  ;;  %v3404_v2 = vmul.f32 0.001953125, %v3376_v36  ;;  %v3413_v30 = vsub.f32 %v6536_v45, %v6604_v40  ;;  %v3414_v62 = vsub.f32 %v6544_v17, %v6604_v40 }
 0x49c   :  { %v3395_v48 = vpop.xlane.xlu0 %3394  ;;  %v3415_v14 = vsub.f32 %v6554_v13, %v6604_v40  ;;  %v3417_v11 = vsub.f32 %v6573_v10, %v6604_v40  ;;  %v3416_v45 = vsub.f32 %v6564_v19, %v6604_v40  ;;  %v3418_v59 = vsub.f32 %v6578_v18, %v6604_v40 }
 0x49d   :  { %v3405_v1 = vmul.f32 0.001953125, %v3395_v48  ;;  %v3408_v58 = vmul.f32 %v3404_v2, %v3404_v2  ;;  %v3419_v6 = vsub.f32 %v6552_v51, %v3404_v2  ;;  %v3420_v26 = vsub.f32 %v6562_v8, %v3404_v2 }
 0x49e   :  { %v3421_v17 = vsub.f32 %v6571_v28, %v3404_v2  ;;  %v3422_v41 = vsub.f32 %v6576_v9, %v3404_v2  ;;  %v3423_v13 = vsub.f32 %v6590_v20, %v3404_v2  ;;  %v3424_v57 = vsub.f32 %v6597_v53, %v3404_v2 }
 0x49f   :  { %v3409_v32 = vsub.f32 %v3405_v1, %v3407_v27 }
 0x4a0   :  { %v3402_v34 = vpop.xlane.xlu0 %3401 }
 0x4a1   :  { %v3411_v31 = vmax.f32 %v3409_v32, 0.0  ;;  %v3406_v60 = vmul.f32 0.001953125, %v3402_v34 }
 0x4a3   :  { %v3425_v47 = vadd.f32 1e-05, %v3411_v31  ;;  %v3410_v39 = vsub.f32 %v3406_v60, %v3408_v58 }
 0x4a5   :  { %5543 = vrsqrt.f32 %v3425_v47  ;;  %v3412_v7 = vmax.f32 %v3410_v39, 0.0 }
 0x4a7   :  { %v3426_v0 = vadd.f32 1e-05, %v3412_v7  ;;  %v3471_v7 = vld [vmem:[%s7292_s5] sm:$0xff] }
 0x4a9   :  { %5545 = vrsqrt.f32 %v3426_v0  ;;  %v3472_v0 = vld [vmem:[%s7292_s5 + $0x8] sm:$0x1] }
 0x4b2   :  { %v5544_v42 = vpop.eup %5543 }
 0x4b3   :  { %v3430_v5 = vmul.f32 %v5544_v42, %v3414_v62  ;;  %v3429_v22 = vmul.f32 %v5544_v42, %v3413_v30  ;;  %v3433_v29 = vmul.f32 %v5544_v42, %v3417_v11  ;;  %v3431_v4 = vmul.f32 %v5544_v42, %v3415_v14 }
 0x4b4   :  { %v3432_v28 = vmul.f32 %v5544_v42, %v3416_v45  ;;  %v3434_v48 = vmul.f32 %v5544_v42, %v3418_v59  ;;  %v7376_v42 = vld [vmem:[#allocation3_spill] sm:$0xff] }
 0x4b5   :  { %v3442_v10 = vmax.f32 %v3430_v5, 0.0  ;;  %v3441_v44 = vmax.f32 %v3429_v22, 0.0  ;;  %v3445_v55 = vmax.f32 %v3433_v29, 0.0  ;;  %v3443_v51 = vmax.f32 %v3431_v4, 0.0  ;;  %v5532_v5 = vld [vmem:[%s7291_s4 + $0x8] sm:$0x1f]  }
 0x4b6   :  { %v5546_v35 = vpop.eup %5545  ;;  %v3444_v40 = vmax.f32 %v3432_v28, 0.0  ;;  %v3446_v31 = vmax.f32 %v3434_v48, 0.0  ;;  %v7377_v4 = vmov 0  }
 0x4b7   :  { %v3436_v33 = vmul.f32 %v5546_v35, %v3420_v26  ;;  %v3435_v38 = vmul.f32 %v5546_v35, %v3419_v6  ;;  %v3439_v24 = vmul.f32 %v5546_v35, %v3423_v13  ;;  %v3437_v37 = vmul.f32 %v5546_v35, %v3421_v17 }
 0x4b8   :  { %v3438_v50 = vmul.f32 %v5546_v35, %v3422_v41  ;;  %v3454_v9 = vmul.f32 %v3442_v10, %v7371_v63  ;;  %v3453_v15 = vmul.f32 %v3441_v44, %v7368_v43  ;;  %v3440_v54 = vmul.f32 %v5546_v35, %v3424_v57 }
 0x4b9   :  { %v3448_v46 = vmax.f32 %v3436_v33, 0.0  ;;  %v3447_v8 = vmax.f32 %v3435_v38, 0.0  ;;  %v3451_v19 = vmax.f32 %v3439_v24, 0.0  ;;  %v3449_v21 = vmax.f32 %v3437_v37, 0.0  ;;  %v7378_v24 = vld [vmem:[#allocation2_spill] sm:$0xff] }
 0x4ba   :  { %v3450_v12 = vmax.f32 %v3438_v50, 0.0  ;;  %v3457_v36 = vmul.f32 %v3445_v55, %v7374_v49  ;;  %v3455_v18 = vmul.f32 %v3443_v51, %v7372_v56  ;;  %v3452_v32 = vmax.f32 %v3440_v54, 0.0  ;;  %v5533_v37 = vld [vmem:[%s7291_s4] sm:$0x1f]  }
 0x4bb   :  { %v3460_v20 = vmul.f32 %v3448_v46, %v7371_v63  ;;  %v3459_v52 = vmul.f32 %v3447_v8, %v7368_v43  ;;  %v3463_v53 = vmul.f32 %v3451_v19, %v7374_v49  ;;  %v3461_v3 = vmul.f32 %v3449_v21, %v7372_v56 }
 0x4bc   :  { %v3462_v2 = vmul.f32 %v3450_v12, %v7373_v16  ;;  %v3456_v34 = vmul.f32 %v3444_v40, %v7373_v16  ;;  %v3464_v58 = vmul.f32 %v3452_v32, %v7375_v23  ;;  %v3458_v47 = vmul.f32 %v3446_v31, %v7375_v23  ;;  %v5534_v12 = vld [vmem:[%s7291_s4 + $0x10] sm:$0x1f]  }
 0x4bd   :  { %v6630_v61 = vpack.c.bf16 %v3460_v20, %v3454_v9  ;;  %v6632_v25 = vpack.c.bf16 %v3459_v52, %v3453_v15  ;;  %v6642_v27 = vpack.c.bf16 %v3463_v53, %v3457_v36  ;;  %v6644_v1 = vpack.c.bf16 %v3461_v3, %v3455_v18  ;;  %v7379_v52 = vld [vmem:[#allocation4_spill] sm:$0xff] }
 0x4be   :  { %v6652_v60 = vpack.c.bf16 %v3462_v2, %v3456_v34  ;;  %v6660_v39 = vpack.c.bf16 %v3464_v58, %v3458_v47  ;;  %v7380_v58 = vld [vmem:[#allocation5_spill] sm:$0xff] }
 0x4bf   :  { %3491 = vrot.lane.b32.xlu0 %v6630_v61, %s5589_s22  ;;  %3489 = vrot.lane.b32.xlu1 %v6632_v25, %s5589_s22 }
 0x4c3   :  { %3497 = vrot.lane.b32.xlu0 %v6642_v27, %s5589_s22  ;;  %3493 = vrot.lane.b32.xlu1 %v6644_v1, %s5589_s22 }
 0x4c7   :  { %3651 = vrot.lane.b32.xlu0 %v6632_v25, %s5588_s21  ;;  %3495 = vrot.lane.b32.xlu1 %v6652_v60, %s5589_s22 }
 0x4cb   :  { %3655 = vrot.lane.b32.xlu0 %v6644_v1, %s5588_s21  ;;  %3499 = vrot.lane.b32.xlu1 %v6660_v39, %s5589_s22 }
 0x4cf   :  { %3659 = vrot.lane.b32.xlu0 %v6642_v27, %s5588_s21  ;;  %3653 = vrot.lane.b32.xlu1 %v6630_v61, %s5588_s21 }
 0x4d3   :  { %3815 = vrot.lane.b32.xlu0 %v6632_v25, %s5591_s1  ;;  %3657 = vrot.lane.b32.xlu1 %v6652_v60, %s5588_s21 }
 0x4d7   :  { %3819 = vrot.lane.b32.xlu0 %v6644_v1, %s5591_s1  ;;  %3661 = vrot.lane.b32.xlu1 %v6660_v39, %s5588_s21 }
 0x4db   :  { %3823 = vrot.lane.b32.xlu0 %v6642_v27, %s5591_s1  ;;  %3817 = vrot.lane.b32.xlu1 %v6630_v61, %s5591_s1 }
 0x4df   :  { %3991 = vrot.lane.b32.xlu0 %v6632_v25, %s5592_s25  ;;  %3821 = vrot.lane.b32.xlu1 %v6652_v60, %s5591_s1 }
 0x4e3   :  { %3995 = vrot.lane.b32.xlu0 %v6644_v1, %s5592_s25  ;;  %3825 = vrot.lane.b32.xlu1 %v6660_v39, %s5591_s1 }
 0x4e7   :  { %3999 = vrot.lane.b32.xlu0 %v6642_v27, %s5592_s25  ;;  %3993 = vrot.lane.b32.xlu1 %v6630_v61, %s5592_s25 }
 0x4eb   :  { %4321 = vrot.lane.b32.xlu0 %v6630_v61, %s5593_s26  ;;  %3997 = vrot.lane.b32.xlu1 %v6652_v60, %s5592_s25 }
 0x4ef   :  { %4319 = vrot.lane.b32.xlu0 %v6632_v25, %s5593_s26  ;;  %4001 = vrot.lane.b32.xlu1 %v6660_v39, %s5592_s25 }
 0x4f3   :  { %4327 = vrot.lane.b32.xlu0 %v6642_v27, %s5593_s26  ;;  %4323 = vrot.lane.b32.xlu1 %v6644_v1, %s5593_s26 }
 0x4f7   :  { %4497 = vrot.lane.b32.xlu0 %v6630_v61, %s5594_s27  ;;  %4325 = vrot.lane.b32.xlu1 %v6652_v60, %s5593_s26 }
 0x4fb   :  { %4495 = vrot.lane.b32.xlu0 %v6632_v25, %s5594_s27  ;;  %4329 = vrot.lane.b32.xlu1 %v6660_v39, %s5593_s26 }
 0x4ff   :  { %4503 = vrot.lane.b32.xlu0 %v6642_v27, %s5594_s27  ;;  %4499 = vrot.lane.b32.xlu1 %v6644_v1, %s5594_s27 }
 0x503   :  { %4673 = vrot.lane.b32.xlu0 %v6630_v61, %s5595_s28  ;;  %4501 = vrot.lane.b32.xlu1 %v6652_v60, %s5594_s27 }
 0x507   :  { %4671 = vrot.lane.b32.xlu0 %v6632_v25, %s5595_s28  ;;  %4505 = vrot.lane.b32.xlu1 %v6660_v39, %s5594_s27 }
 0x50b   :  { %4679 = vrot.lane.b32.xlu0 %v6642_v27, %s5595_s28  ;;  %4675 = vrot.lane.b32.xlu1 %v6644_v1, %s5595_s28 }
 0x50f   :  { %4849 = vrot.lane.b32.xlu0 %v6630_v61, %s5596_s29  ;;  %4677 = vrot.lane.b32.xlu1 %v6652_v60, %s5595_s28 }
 0x513   :  { %4847 = vrot.lane.b32.xlu0 %v6632_v25, %s5596_s29  ;;  %4681 = vrot.lane.b32.xlu1 %v6660_v39, %s5595_s28 }
 0x517   :  { %4855 = vrot.lane.b32.xlu0 %v6642_v27, %s5596_s29  ;;  %4851 = vrot.lane.b32.xlu1 %v6644_v1, %s5596_s29 }
 0x51b   :  { %4853 = vrot.lane.b32.xlu1 %v6652_v60, %s5596_s29  ;;  %5022 = vperm.xlu0 %5520, %v3472_v0  }
 0x51f   :  { %4857 = vrot.lane.b32.xlu1 %v6660_v39, %s5596_s29 }
 0x523   :  { %5017 = vperm.xlu1 %5521, %v3471_v7   ;;  %v5535_v7 = vld [vmem:[%s7291_s4 + $0x18] sm:$0x1f]  }
 0x531   :  { %v3492_v30 = vpop.permute.xlu0 %3491  ;;  %v3490_v62 = vpop.permute.xlu1 %3489 }
 0x532   :  { %v3501_v14 = vsel %vm92_vm0, %v7376_v42, %v3490_v62  ;;  %v3502_v11 = vsel %vm92_vm0, %v3490_v62, %v3492_v30 }
 0x533   :  { %3531 = vmatprep.subr.bf16.mxu0 %v3502_v11 }
 0x534   :  { %3532 = vmatpush1.bf16.msra.mxu0 %v3501_v14 }
 0x535   :  { %v3498_v22 = vpop.permute.xlu0 %3497  ;;  %v3494_v29 = vpop.permute.xlu1 %3493 }
 0x536   :  { %v3503_v45 = vsel %vm92_vm0, %v3492_v30, %v3494_v29 }
 0x537   :  { %5461 = vmatmul.mubr.msk.bf16.vlgmr.msra.gmra.mxu0 %vm3513_vm12, %v5532_v5 }
 0x538   :  { %3635 = vmatprep.mubr.bf16.mxu0 %v7377_v4 }
 0x539   :  { %v3652_v6 = vpop.permute.xlu0 %3651  ;;  %v3496_v26 = vpop.permute.xlu1 %3495 }
 0x53a   :  { %v3504_v35 = vsel %vm92_vm0, %v3494_v29, %v3496_v26  ;;  %v3505_v33 = vsel %vm92_vm0, %v3496_v26, %v3498_v22  ;;  %v3663_v55 = vsel %vm259_vm3, %v7378_v24, %v3652_v6 }
 0x53b   :  { %3574 = vmatprep.subr.bf16.mxu1 %v3504_v35 }
 0x53c   :  { %3575 = vmatpush1.bf16.msra.mxu1 %v3503_v45 }
 0x53d   :  { %v3656_v17 = vpop.permute.xlu0 %3655  ;;  %v3500_v41 = vpop.permute.xlu1 %3499 }
 0x53e   :  { %v3506_v13 = vsel %vm92_vm0, %v3498_v22, %v3500_v41 }
 0x53f   :  { %5462 = vmatmul.mubr.msk.bf16.vlgmr.msra.gmra.mxu1 %vm3513_vm12, %v5532_v5  ;;  %3617 = vmatprep.subr.bf16.mxu0 %v3506_v13 }
 0x540   :  { %3618 = vmatpush1.bf16.msra.mxu0 %v3505_v33  ;;  %3710 = vmatprep.mubr.bf16.mxu1 %v7377_v4 }
 0x541   :  { %v3660_v10 = vpop.permute.xlu0 %3659  ;;  %v3654_v38 = vpop.permute.xlu1 %3653 }
 0x542   :  { %v3664_v44 = vsel %vm259_vm3, %v3652_v6, %v3654_v38  ;;  %v3665_v50 = vsel %vm259_vm3, %v3654_v38, %v3656_v17  ;;  %v5537_v38 = vld [vmem:[%s7291_s4 + $0x28] sm:$0x1f]  }
 0x543   :  { %5463 = vmatmul.mubr.msk.bf16.vlgmr.msra.gmra.mxu0 %vm3513_vm12, %v5532_v5  ;;  %3692 = vmatprep.subr.bf16.mxu1 %v3664_v44 }
 0x544   :  { %3693 = vmatpush1.bf16.msra.mxu1 %v3663_v55  ;;  %3753 = vmatprep.mubr.bf16.mxu0 %v7377_v4 }
 0x545   :  { %v3816_v51 = vpop.permute.xlu0 %3815  ;;  %v3658_v46 = vpop.permute.xlu1 %3657 }
 0x546   :  { %v3666_v8 = vsel %vm259_vm3, %v3656_v17, %v3658_v46  ;;  %v3667_v28 = vsel %vm259_vm3, %v3658_v46, %v3660_v10  ;;  %v3827_v59 = vsel %vm426_vm4, %v7379_v52, %v3816_v51  ;;  %v7381_v17 = vld [vmem:[#allocation6_spill] sm:$0xff] }
 0x547   :  { %5465 = vmatmul.mubr.msk.bf16.vlgmr.msra.gmra.mxu1 %vm3513_vm12, %v5533_v37  ;;  %3735 = vmatprep.subr.bf16.mxu0 %v3666_v8  ;;  %v7382_v8 = vld [vmem:[#allocation7_spill] sm:$0xff] }
 0x548   :  { %3736 = vmatpush1.bf16.msra.mxu0 %v3665_v50  ;;  %3796 = vmatprep.mubr.bf16.mxu1 %v7377_v4 }
 0x549   :  { %v3820_v57 = vpop.permute.xlu0 %3819  ;;  %v3662_v19 = vpop.permute.xlu1 %3661 }
 0x54a   :  { %v3668_v21 = vsel %vm259_vm3, %v3660_v10, %v3662_v19 }
 0x54b   :  { %5466 = vmatmul.mubr.msk.bf16.vlgmr.msra.gmra.mxu0 %vm3513_vm12, %v5533_v37  ;;  %3778 = vmatprep.subr.bf16.mxu1 %v3668_v21 }
 0x54c   :  { %3779 = vmatpush1.bf16.msra.mxu1 %v3667_v28  ;;  %3874 = vmatprep.mubr.bf16.mxu0 %v7377_v4 }
 0x54d   :  { %v3824_v9 = vpop.permute.xlu0 %3823  ;;  %v3818_v20 = vpop.permute.xlu1 %3817 }
 0x54e   :  { %v3828_v15 = vsel %vm426_vm4, %v3816_v51, %v3818_v20  ;;  %v3829_v36 = vsel %vm426_vm4, %v3818_v20, %v3820_v57  ;;  %v5538_v20 = vld [vmem:[%s7291_s4 + $0x30] sm:$0x1f]  }
 0x54f   :  { %5467 = vmatmul.mubr.msk.bf16.vlgmr.msra.gmra.mxu1 %vm3513_vm12, %v5533_v37  ;;  %3856 = vmatprep.subr.bf16.mxu0 %v3828_v15 }
 0x550   :  { %3857 = vmatpush1.bf16.msra.mxu0 %v3827_v59  ;;  %3917 = vmatprep.mubr.bf16.mxu1 %v7377_v4 }
 0x551   :  { %v3992_v54 = vpop.permute.xlu0 %3991  ;;  %v3822_v53 = vpop.permute.xlu1 %3821 }
 0x552   :  { %v3830_v3 = vsel %vm426_vm4, %v3820_v57, %v3822_v53  ;;  %v3831_v2 = vsel %vm426_vm4, %v3822_v53, %v3824_v9  ;;  %v4003_v47 = vsel %vm599_vm5, %v7380_v58, %v3992_v54  ;;  %v7383_v53 = vld [vmem:[#allocation8_spill] sm:$0xff] }
 0x553   :  { %5471 = vmatmul.mubr.msk.bf16.vlgmr.msra.gmra.mxu0 %vm3513_vm12, %v5534_v12  ;;  %3899 = vmatprep.subr.bf16.mxu1 %v3830_v3 }
 0x554   :  { %3900 = vmatpush1.bf16.msra.mxu1 %v3829_v36  ;;  %3960 = vmatprep.mubr.bf16.mxu0 %v7377_v4 }
 0x555   :  { %v3996_v18 = vpop.permute.xlu0 %3995  ;;  %v3826_v40 = vpop.permute.xlu1 %3825 }
 0x556   :  { %v3832_v48 = vsel %vm426_vm4, %v3824_v9, %v3826_v40 }
 0x557   :  { %5472 = vmatmul.mubr.msk.bf16.vlgmr.msra.gmra.mxu1 %vm3513_vm12, %v5534_v12  ;;  %3942 = vmatprep.subr.bf16.mxu0 %v3832_v48 }
 0x558   :  { %3943 = vmatpush1.bf16.msra.mxu0 %v3831_v2  ;;  %4050 = vmatprep.mubr.bf16.mxu1 %v7377_v4 }
 0x559   :  { %v4000_v32 = vpop.permute.xlu0 %3999  ;;  %v3994_v34 = vpop.permute.xlu1 %3993 }
 0x55a   :  { %v4004_v31 = vsel %vm599_vm5, %v3992_v54, %v3994_v34  ;;  %v4005_v42 = vsel %vm599_vm5, %v3994_v34, %v3996_v18 }
 0x55b   :  { %5473 = vmatmul.mubr.msk.bf16.vlgmr.msra.gmra.mxu0 %vm3513_vm12, %v5534_v12  ;;  %4032 = vmatprep.subr.bf16.mxu1 %v4004_v31 }
 0x55c   :  { %4033 = vmatpush1.bf16.msra.mxu1 %v4003_v47  ;;  %4093 = vmatprep.mubr.bf16.mxu0 %v7377_v4 }
 0x55d   :  { %v4322_v0 = vpop.permute.xlu0 %4321  ;;  %v3998_v30 = vpop.permute.xlu1 %3997 }
 0x55e   :  { %v4006_v62 = vsel %vm599_vm5, %v3996_v18, %v3998_v30  ;;  %v4007_v22 = vsel %vm599_vm5, %v3998_v30, %v4000_v32 }
 0x55f   :  { %5477 = vmatmul.mubr.msk.bf16.vlgmr.msra.gmra.mxu1 %vm3513_vm12, %v5535_v7  ;;  %4075 = vmatprep.subr.bf16.mxu0 %v4006_v62 }
 0x560   :  { %4076 = vmatpush1.bf16.msra.mxu0 %v4005_v42  ;;  %4136 = vmatprep.mubr.bf16.mxu1 %v7377_v4 }
 0x561   :  { %v4320_v14 = vpop.permute.xlu0 %4319  ;;  %4184 = vmatprep.subr.bf16.mxu0 %v6630_v61  ;;  %v4002_v11 = vpop.permute.xlu1 %4001  ;;  %v5536_v61 = vld [vmem:[%s7291_s4 + $0x20] sm:$0x1f]  }
 0x562   :  { %v4008_v5 = vsel %vm599_vm5, %v4000_v32, %v4002_v11  ;;  %v4331_v41 = vsel %vm924_vm6, %v4320_v14, %v4322_v0  ;;  %v5539_v32 = vld [vmem:[%s7291_s4 + $0x38] sm:$0x1f]   ;;  %v5540_v14 = vld [vmem:[%s7291_s4 + $0x40] sm:$0x1f]  }
 0x563   :  { %5478 = vmatmul.mubr.msk.bf16.vlgmr.msra.gmra.mxu0 %vm3513_vm12, %v5535_v7  ;;  %4118 = vmatprep.subr.bf16.mxu1 %v4008_v5 }
 0x564   :  { %4119 = vmatpush1.bf16.msra.mxu1 %v4007_v22  ;;  %4185 = vmatpush1.bf16.msra.mxu0 %v6632_v25 }
 0x565   :  { %v4328_v29 = vpop.permute.xlu0 %4327  ;;  %4227 = vmatprep.subr.bf16.mxu1 %v6652_v60  ;;  %4270 = vmatprep.subr.bf16.mxu0 %v6660_v39  ;;  %v4324_v6 = vpop.permute.xlu1 %4323 }
 0x566   :  { %4202 = vmatprep.mubr.bf16.mxu0 %v7377_v4  ;;  %v4332_v26 = vsel %vm924_vm6, %v4322_v0, %v4324_v6  ;;  %v7384_v0 = vld [vmem:[#allocation9_spill] sm:$0xff] }
 0x567   :  { %5479 = vmatmul.mubr.msk.bf16.vlgmr.msra.gmra.mxu1 %vm3513_vm12, %v5535_v7 }
 0x568   :  { %4228 = vmatpush1.bf16.msra.mxu1 %v6644_v1  ;;  %4245 = vmatprep.mubr.bf16.mxu1 %v7377_v4 }
 0x569   :  { %v4498_v25 = vpop.permute.xlu0 %4497  ;;  %4360 = vmatprep.subr.bf16.mxu1 %v4332_v26  ;;  %v4326_v60 = vpop.permute.xlu1 %4325 }
 0x56a   :  { %v4334_v39 = vsel %vm924_vm6, %v4326_v60, %v4328_v29  ;;  %v4333_v10 = vsel %vm924_vm6, %v4324_v6, %v4326_v60 }
 0x56b   :  { %5483 = vmatmul.mubr.msk.bf16.vlgmr.msra.gmra.mxu0 %vm3513_vm12, %v5536_v61 }
 0x56c   :  { %4271 = vmatpush1.bf16.msra.mxu0 %v6642_v27  ;;  %4288 = vmatprep.mubr.bf16.mxu0 %v7377_v4 }
 0x56d   :  { %4403 = vmatprep.subr.bf16.mxu0 %v4334_v39  ;;  %v4496_v35 = vpop.permute.xlu0 %4495  ;;  %v4330_v45 = vpop.permute.xlu1 %4329 }
 0x56e   :  { %v4336_v1 = vsel %vm924_vm6, %v4330_v45, %v7381_v17  ;;  %v4335_v37 = vsel %vm924_vm6, %v4328_v29, %v4330_v45  ;;  %v4507_v57 = vsel %vm1097_vm7, %v4496_v35, %v4498_v25 }
 0x56f   :  { %5484 = vmatmul.mubr.msk.bf16.vlgmr.msra.gmra.mxu1 %vm3513_vm12, %v5536_v61 }
 0x570   :  { %4361 = vmatpush1.bf16.msra.mxu1 %v4331_v41  ;;  %4378 = vmatprep.mubr.bf16.mxu1 %v7377_v4 }
 0x571   :  { %4446 = vmatprep.subr.bf16.mxu1 %v4336_v1  ;;  %v4504_v13 = vpop.permute.xlu0 %4503  ;;  %v4500_v33 = vpop.permute.xlu1 %4499 }
 0x572   :  { %v4508_v27 = vsel %vm1097_vm7, %v4498_v25, %v4500_v33 }
 0x573   :  { %5485 = vmatmul.mubr.msk.bf16.vlgmr.msra.gmra.mxu0 %vm3513_vm12, %v5536_v61 }
 0x574   :  { %4404 = vmatpush1.bf16.msra.mxu0 %v4333_v10  ;;  %4421 = vmatprep.mubr.bf16.mxu0 %v7377_v4 }
 0x575   :  { %4536 = vmatprep.subr.bf16.mxu0 %v4508_v27  ;;  %v4674_v44 = vpop.permute.xlu0 %4673  ;;  %v4502_v24 = vpop.permute.xlu1 %4501 }
 0x576   :  { %v4510_v55 = vsel %vm1097_vm7, %v4502_v24, %v4504_v13  ;;  %v4509_v9 = vsel %vm1097_vm7, %v4500_v33, %v4502_v24 }
 0x577   :  { %5489 = vmatmul.mubr.msk.bf16.vlgmr.msra.gmra.mxu1 %vm3513_vm12, %v5537_v38 }
 0x578   :  { %4447 = vmatpush1.bf16.msra.mxu1 %v4335_v37  ;;  %4464 = vmatprep.mubr.bf16.mxu1 %v7377_v4 }
 0x579   :  { %4579 = vmatprep.subr.bf16.mxu1 %v4510_v55  ;;  %v4672_v51 = vpop.permute.xlu0 %4671  ;;  %v4506_v46 = vpop.permute.xlu1 %4505 }
 0x57a   :  { %v4512_v50 = vsel %vm1097_vm7, %v4506_v46, %v7382_v8  ;;  %v4511_v12 = vsel %vm1097_vm7, %v4504_v13, %v4506_v46  ;;  %v4683_v36 = vsel %vm1270_vm8, %v4672_v51, %v4674_v44 }
 0x57b   :  { %5490 = vmatmul.mubr.msk.bf16.vlgmr.msra.gmra.mxu0 %vm3513_vm12, %v5537_v38 }
 0x57c   :  { %4537 = vmatpush1.bf16.msra.mxu0 %v4507_v57  ;;  %4554 = vmatprep.mubr.bf16.mxu0 %v7377_v4 }
 0x57d   :  { %4622 = vmatprep.subr.bf16.mxu0 %v4512_v50  ;;  %v4680_v19 = vpop.permute.xlu0 %4679  ;;  %v4676_v21 = vpop.permute.xlu1 %4675 }
 0x57e   :  { %v4684_v28 = vsel %vm1270_vm8, %v4674_v44, %v4676_v21 }
 0x57f   :  { %5491 = vmatmul.mubr.msk.bf16.vlgmr.msra.gmra.mxu1 %vm3513_vm12, %v5537_v38 }
 0x580   :  { %4580 = vmatpush1.bf16.msra.mxu1 %v4509_v9  ;;  %4597 = vmatprep.mubr.bf16.mxu1 %v7377_v4 }
 0x581   :  { %4712 = vmatprep.subr.bf16.mxu1 %v4684_v28  ;;  %v4850_v15 = vpop.permute.xlu0 %4849  ;;  %v4678_v52 = vpop.permute.xlu1 %4677 }
 0x582   :  { %v4686_v59 = vsel %vm1270_vm8, %v4678_v52, %v4680_v19  ;;  %v4685_v2 = vsel %vm1270_vm8, %v4676_v21, %v4678_v52 }
 0x583   :  { %5495 = vmatmul.mubr.msk.bf16.vlgmr.msra.gmra.mxu0 %vm3513_vm12, %v5538_v20 }
 0x584   :  { %4623 = vmatpush1.bf16.msra.mxu0 %v4511_v12  ;;  %4640 = vmatprep.mubr.bf16.mxu0 %v7377_v4 }
 0x585   :  { %4755 = vmatprep.subr.bf16.mxu0 %v4686_v59  ;;  %v4682_v54 = vpop.permute.xlu1 %4681  ;;  %v4848_v18 = vpop.permute.xlu0 %4847 }
 0x586   :  { %v4688_v3 = vsel %vm1270_vm8, %v4682_v54, %v7383_v53  ;;  %v4687_v47 = vsel %vm1270_vm8, %v4680_v19, %v4682_v54  ;;  %v4859_v62 = vsel %vm1443_vm9, %v4848_v18, %v4850_v15 }
 0x587   :  { %5496 = vmatmul.mubr.msk.bf16.vlgmr.msra.gmra.mxu1 %vm3513_vm12, %v5538_v20 }
 0x588   :  { %4713 = vmatpush1.bf16.msra.mxu1 %v4683_v36  ;;  %4730 = vmatprep.mubr.bf16.mxu1 %v7377_v4 }
 0x589   :  { %4798 = vmatprep.subr.bf16.mxu1 %v4688_v3  ;;  %v4852_v40 = vpop.permute.xlu1 %4851  ;;  %v4856_v34 = vpop.permute.xlu0 %4855 }
 0x58a   :  { %v4860_v48 = vsel %vm1443_vm9, %v4850_v15, %v4852_v40 }
 0x58b   :  { %5497 = vmatmul.mubr.msk.bf16.vlgmr.msra.gmra.mxu0 %vm3513_vm12, %v5538_v20 }
 0x58c   :  { %4756 = vmatpush1.bf16.msra.mxu0 %v4685_v2  ;;  %4773 = vmatprep.mubr.bf16.mxu0 %v7377_v4 }
 0x58d   :  { %4888 = vmatprep.subr.bf16.mxu0 %v4860_v48  ;;  %v4854_v31 = vpop.permute.xlu1 %4853 }
 0x58e   :  { %v4862_v58 = vsel %vm1443_vm9, %v4854_v31, %v4856_v34  ;;  %v4861_v42 = vsel %vm1443_vm9, %v4852_v40, %v4854_v31 }
 0x58f   :  { %5501 = vmatmul.mubr.msk.bf16.vlgmr.msra.gmra.mxu1 %vm3513_vm12, %v5539_v32 }
 0x590   :  { %4799 = vmatpush1.bf16.msra.mxu1 %v4687_v47  ;;  %4816 = vmatprep.mubr.bf16.mxu1 %v7377_v4 }
 0x591   :  { %4931 = vmatprep.subr.bf16.mxu1 %v4862_v58  ;;  %v4858_v7 = vpop.permute.xlu1 %4857 }
 0x592   :  { %v4864_v30 = vsel %vm1443_vm9, %v4858_v7, %v7384_v0  ;;  %v4863_v11 = vsel %vm1443_vm9, %v4856_v34, %v4858_v7 }
 0x593   :  { %5502 = vmatmul.mubr.msk.bf16.vlgmr.msra.gmra.mxu0 %vm3513_vm12, %v5539_v32 }
 0x594   :  { %4889 = vmatpush1.bf16.msra.mxu0 %v4859_v62  ;;  %4906 = vmatprep.mubr.bf16.mxu0 %v7377_v4 }
 0x595   :  { %4974 = vmatprep.subr.bf16.mxu0 %v4864_v30 }
 0x597   :  { %5503 = vmatmul.mubr.msk.bf16.vlgmr.msra.gmra.mxu1 %vm3513_vm12, %v5539_v32 }
 0x598   :  { %4932 = vmatpush1.bf16.msra.mxu1 %v4861_v42  ;;  %4949 = vmatprep.mubr.bf16.mxu1 %v7377_v4 }
 0x59b   :  { %5507 = vmatmul.mubr.msk.bf16.vlgmr.msra.gmra.mxu0 %vm3513_vm12, %v5540_v14 }
 0x59c   :  { %4975 = vmatpush1.bf16.msra.mxu0 %v4863_v11  ;;  %4992 = vmatprep.mubr.bf16.mxu0 %v7377_v4 }
 0x59f   :  { %5508 = vmatmul.mubr.msk.bf16.vlgmr.msra.gmra.mxu1 %vm3513_vm12, %v5540_v14 }
 0x5a3   :  { %5509 = vmatmul.mubr.msk.bf16.vlgmr.msra.gmra.mxu0 %vm3513_vm12, %v5540_v14 }
 0x5f7   :  { %v3551_v5 = vpop.f32.mrf.mxu0 }
 0x5f9   :  { %v3553_v22 = vpop.f32.mrf.mxu0 }
 0x5fb   :  { %v3555_v29 = vpop.f32.mrf.mxu0 }
 0x5fd   :  { %v3557_v61 = vpop.f32.mrf.mxu0 }
 0x5ff   :  { %v3594_v6 = vpop.f32.mrf.mxu1 }
 0x601   :  { %v3596_v26 = vpop.f32.mrf.mxu1 }
 0x603   :  { %v3598_v25 = vpop.f32.mrf.mxu1  ;;  %v3637_v60 = vpop.f32.mrf.mxu0 }
 0x605   :  { %v3600_v39 = vpop.f32.mrf.mxu1  ;;  %v3639_v35 = vpop.f32.mrf.mxu0 }
 0x607   :  { %v3641_v45 = vpop.f32.mrf.mxu0  ;;  %v3712_v17 = vpop.f32.mrf.mxu1 }
 0x608   :  { %v3713_v1 = vadd.f32 %v3712_v17, %v3551_v5 }
 0x609   :  { %v3643_v41 = vpop.f32.mrf.mxu0  ;;  %v3714_v13 = vpop.f32.mrf.mxu1 }
 0x60a   :  { %v6893_v4 = vadd.f32 %v3714_v13, %v3553_v22 }
 0x60b   :  { %v3716_v33 = vpop.f32.mrf.mxu1  ;;  %v3755_v27 = vpop.f32.mrf.mxu0 }
 0x60c   :  { %v6895_v10 = vadd.f32 %v3716_v33, %v3555_v29  ;;  %v6897_v38 = vadd.f32 %v3755_v27, %v3594_v6 }
 0x60d   :  { %v3718_v44 = vpop.f32.mrf.mxu1  ;;  %v3757_v24 = vpop.f32.mrf.mxu0 }
 0x60e   :  { %v6899_v55 = vadd.f32 %v3718_v44, %v3557_v61  ;;  %v6901_v37 = vadd.f32 %v3757_v24, %v3596_v26 }
 0x60f   :  { %v3759_v51 = vpop.f32.mrf.mxu0  ;;  %v3798_v46 = vpop.f32.mrf.mxu1 }
 0x610   :  { %v6903_v8 = vadd.f32 %v3759_v51, %v3598_v25  ;;  %v6905_v50 = vadd.f32 %v3798_v46, %v3637_v60 }
 0x611   :  { %v3761_v57 = vpop.f32.mrf.mxu0  ;;  %v3800_v19 = vpop.f32.mrf.mxu1 }
 0x612   :  { %v6907_v21 = vadd.f32 %v3761_v57, %v3600_v39  ;;  %v6909_v28 = vadd.f32 %v3800_v19, %v3639_v35 }
 0x613   :  { %v3802_v9 = vpop.f32.mrf.mxu1  ;;  %v3876_v20 = vpop.f32.mrf.mxu0 }
 0x614   :  { %v6911_v15 = vadd.f32 %v3802_v9, %v3641_v45  ;;  %v6913_v52 = vadd.f32 %v3876_v20, %v3713_v1 }
 0x615   :  { %v3804_v59 = vpop.f32.mrf.mxu1  ;;  %v3878_v12 = vpop.f32.mrf.mxu0 }
 0x616   :  { %v6915_v54 = vadd.f32 %v3804_v59, %v3643_v41 }
 0x617   :  { %v3880_v53 = vpop.f32.mrf.mxu0  ;;  %v3919_v3 = vpop.f32.mrf.mxu1 }
 0x619   :  { %v3882_v36 = vpop.f32.mrf.mxu0  ;;  %v3921_v18 = vpop.f32.mrf.mxu1 }
 0x61b   :  { %v3923_v40 = vpop.f32.mrf.mxu1  ;;  %v3962_v48 = vpop.f32.mrf.mxu0 }
 0x61d   :  { %v3925_v2 = vpop.f32.mrf.mxu1  ;;  %v3964_v32 = vpop.f32.mrf.mxu0 }
 0x61f   :  { %v3966_v34 = vpop.f32.mrf.mxu0  ;;  %v4052_v31 = vpop.f32.mrf.mxu1 }
 0x621   :  { %v3968_v58 = vpop.f32.mrf.mxu0  ;;  %v4054_v47 = vpop.f32.mrf.mxu1 }
 0x623   :  { %v4056_v7 = vpop.f32.mrf.mxu1  ;;  %v4095_v0 = vpop.f32.mrf.mxu0 }
 0x625   :  { %v4058_v30 = vpop.f32.mrf.mxu1  ;;  %v4097_v62 = vpop.f32.mrf.mxu0 }
 0x627   :  { %v4099_v42 = vpop.f32.mrf.mxu0  ;;  %v4138_v14 = vpop.f32.mrf.mxu1 }
 0x629   :  { %v6917_v11 = vpop.f32.mrf.mxu0  ;;  %v6919_v5 = vpop.f32.mrf.mxu1 }
 0x62b   :  { %v6921_v22 = vpop.f32.mrf.mxu1  ;;  %v6923_v29 = vpop.f32.mrf.mxu0 }
 0x62d   :  { %v6925_v6 = vpop.f32.mrf.mxu1  ;;  %v6927_v61 = vpop.f32.mrf.mxu0 }
 0x62f   :  { %v6929_v26 = vpop.f32.mrf.mxu0  ;;  %v6931_v25 = vpop.f32.mrf.mxu1 }
 0x631   :  { %v6933_v60 = vpop.f32.mrf.mxu0  ;;  %v6935_v39 = vpop.f32.mrf.mxu1 }
 0x633   :  { %v6937_v35 = vpop.f32.mrf.mxu1  ;;  %v6939_v45 = vpop.f32.mrf.mxu0 }
 0x635   :  { %v6941_v17 = vpop.f32.mrf.mxu1  ;;  %v6943_v1 = vpop.f32.mrf.mxu0 }
 0x637   :  { %v6945_v41 = vpop.f32.mrf.mxu0  ;;  %v4380_v13 = vpop.f32.mrf.mxu1 }
 0x639   :  { %v6947_v33 = vpop.f32.mrf.mxu0  ;;  %v6949_v27 = vpop.f32.mrf.mxu1 }
 0x63b   :  { %v6951_v44 = vpop.f32.mrf.mxu1  ;;  %v6953_v24 = vpop.f32.mrf.mxu0 }
 0x63d   :  { %v6955_v51 = vpop.f32.mrf.mxu1  ;;  %v6957_v46 = vpop.f32.mrf.mxu0 }
 0x63e   :  { %7385 = vst [vmem:[#allocation16_spill] sm:$0xff] %v6957_v46 }
 0x63f   :  { %v6959_v57 = vpop.f32.mrf.mxu0  ;;  %v6961_v19 = vpop.f32.mrf.mxu1 }
 0x640   :  { %7386 = vst [vmem:[#allocation17_spill] sm:$0xff] %v6959_v57  ;;  %7387 = vst [vmem:[#allocation18_spill] sm:$0xff] %v6961_v19 }
 0x641   :  { %v6963_v9 = vpop.f32.mrf.mxu0  ;;  %v6965_v20 = vpop.f32.mrf.mxu1 }
 0x642   :  { %7388 = vst [vmem:[#allocation19_spill] sm:$0xff] %v6963_v9  ;;  %7389 = vst [vmem:[#allocation24_spill] sm:$0xff] %v6965_v20 }
 0x643   :  { %v6967_v59 = vpop.f32.mrf.mxu1  ;;  %v4556_v23 = vpop.f32.mrf.mxu0 }
 0x644   :  { %7390 = vst [vmem:[#allocation20_spill] sm:$0xff] %v6967_v59 }
 0x645   :  { %v6969_v49 = vpop.f32.mrf.mxu1  ;;  %v6971_v16 = vpop.f32.mrf.mxu0 }
 0x646   :  { %7391 = vst [vmem:[#allocation21_spill] sm:$0xff] %v6969_v49  ;;  %7392 = vst [vmem:[#allocation22_spill] sm:$0xff] %v6971_v16  ;;  %v3972_v49 = vadd.f32 %v3878_v12, %v6893_v4  ;;  %v3977_v16 = vadd.f32 %v3880_v53, %v6895_v10  ;;  %v3981_v4 = vadd.f32 %v3966_v34, %v6911_v15 }
 0x647   :  { %v6973_v56 = vpop.f32.mrf.mxu0  ;;  %v6975_v63 = vpop.f32.mrf.mxu1  ;;  %v4147_v10 = vadd.f32 %v4052_v31, %v6913_v52  ;;  %v3982_v53 = vadd.f32 %v3968_v58, %v6915_v54 }
 0x648   :  { %7393 = vst [vmem:[#allocation23_spill] sm:$0xff] %v6973_v56  ;;  %7394 = vst [vmem:[#allocation25_spill] sm:$0xff] %v6975_v63  ;;  %v3973_v56 = vadd.f32 %v3919_v3, %v6897_v38  ;;  %v4153_v3 = vadd.f32 %v4056_v7, %v3977_v16  ;;  %v4157_v52 = vadd.f32 %v6921_v22, %v3981_v4 }
 0x649   :  { %v6977_v43 = vpop.f32.mrf.mxu0  ;;  %v6979_v57 = vpop.f32.mrf.mxu1 }
 0x64a   :  { %7395 = vst [vmem:[#allocation26_spill] sm:$0xff] %v6977_v43  ;;  %7396 = vst [vmem:[#allocation27_spill] sm:$0xff] %v6979_v57  ;;  %v3978_v43 = vadd.f32 %v3882_v36, %v6899_v55  ;;  %v3974_v57 = vadd.f32 %v3921_v18, %v6901_v37  ;;  %v4148_v55 = vadd.f32 %v4054_v47, %v3972_v49 }
 0x64b   :  { %v6981_v19 = vpop.f32.mrf.mxu1  ;;  %v6983_v9 = vpop.f32.mrf.mxu0  ;;  %v4149_v37 = vadd.f32 %v4095_v0, %v3973_v56  ;;  %v4305_v56 = vadd.f32 %v6929_v26, %v4153_v3 }
 0x64c   :  { %7397 = vst [vmem:[#allocation28_spill] sm:$0xff] %v6981_v19  ;;  %7398 = vst [vmem:[#allocation29_spill] sm:$0xff] %v6983_v9  ;;  %v3979_v19 = vadd.f32 %v3923_v40, %v6903_v8  ;;  %v3975_v9 = vadd.f32 %v3962_v48, %v6905_v50  ;;  %v4154_v36 = vadd.f32 %v4058_v30, %v3978_v43 }
 0x64d   :  { %v6985_v20 = vpop.f32.mrf.mxu1  ;;  %v6987_v59 = vpop.f32.mrf.mxu0  ;;  %v4150_v8 = vadd.f32 %v4097_v62, %v3974_v57  ;;  %v4299_v48 = vadd.f32 %v6923_v29, %v4147_v10  ;;  %v4300_v49 = vadd.f32 %v6927_v61, %v4148_v55  ;;  %v4301_v43 = vadd.f32 %v6931_v25, %v4149_v37  ;;  %v7401_v61 = vld [vmem:[#allocation16_spill] sm:$0xff]  ;;  %v7402_v25 = vld [vmem:[#allocation17_spill] sm:$0xff] }
 0x64e   :  { %7399 = vst [vmem:[#allocation30_spill] sm:$0xff] %v6985_v20  ;;  %7400 = vst [vmem:[#allocation31_spill] sm:$0xff] %v6987_v59  ;;  %v3980_v20 = vadd.f32 %v3925_v2, %v6907_v21  ;;  %v3976_v59 = vadd.f32 %v3964_v32, %v6909_v28  ;;  %v4155_v18 = vadd.f32 %v4099_v42, %v3979_v19  ;;  %v7030_v57 = vpop.permute.xlu1 %5017 }
 0x64f   :  { %v6992_v46 = vpop.f32.mrf.mxu0  ;;  %v4732_v63 = vpop.f32.mrf.mxu1  ;;  %v4151_v50 = vadd.f32 %v4138_v14, %v3975_v9  ;;  %v4158_v2 = vadd.f32 %v6925_v6, %v3982_v53  ;;  %v4306_v32 = vadd.f32 %v6933_v60, %v4154_v36  ;;  %v4302_v34 = vadd.f32 %v6935_v39, %v4150_v8  ;;  %v7410_v53 = vld [vmem:[#allocation25_spill] sm:$0xff] }
 0x650   :  { %v4156_v28 = vadd.f32 %v6917_v11, %v3980_v20  ;;  %v4152_v15 = vadd.f32 %v6919_v5, %v3976_v59  ;;  %v4307_v31 = vadd.f32 %v6937_v35, %v4155_v18  ;;  %v4475_v58 = vadd.f32 %v4380_v13, %v4299_v48  ;;  %v7405_v13 = vld [vmem:[#allocation22_spill] sm:$0xff]  ;;  %v7409_v20 = vld [vmem:[#allocation23_spill] sm:$0xff] }
 0x651   :  { %v7002_v38 = vpop.f32.mrf.mxu0  ;;  %v4734_v12 = vpop.f32.mrf.mxu1  ;;  %v4303_v47 = vadd.f32 %v6939_v45, %v4151_v50  ;;  %v4309_v30 = vadd.f32 %v6945_v41, %v4157_v52  ;;  %v4310_v14 = vadd.f32 %v6947_v33, %v4158_v2  ;;  %v4476_v11 = vadd.f32 %v6949_v27, %v4300_v49  ;;  %v7403_v45 = vld [vmem:[#allocation18_spill] sm:$0xff]  ;;  %v7412_v18 = vld [vmem:[#allocation27_spill] sm:$0xff] }
 0x652   :  { %v4308_v7 = vadd.f32 %v6941_v17, %v4156_v28  ;;  %v4304_v0 = vadd.f32 %v6943_v1, %v4152_v15  ;;  %v4481_v5 = vadd.f32 %v6951_v44, %v4305_v56  ;;  %v4651_v22 = vadd.f32 %v4556_v23, %v4475_v58  ;;  %v7404_v1 = vld [vmem:[#allocation19_spill] sm:$0xff]  ;;  %v7406_v23 = vld [vmem:[#allocation24_spill] sm:$0xff]  ;;  %v7411_v3 = vld [vmem:[#allocation26_spill] sm:$0xff]  ;;  %v7045_v58 = vpop.permute.xlu0 %5022 }
 0x653   :  { %v4736_v40 = vpop.f32.mrf.mxu1  ;;  %v4775_v21 = vpop.f32.mrf.mxu0  ;;  %v4477_v29 = vadd.f32 %v6953_v24, %v4301_v43  ;;  %v4482_v6 = vadd.f32 %v6955_v51, %v4306_v32  ;;  %v4478_v26 = vadd.f32 %v7401_v61, %v4302_v34  ;;  %v4483_v60 = vadd.f32 %v7402_v25, %v4307_v31  ;;  %v7407_v24 = vld [vmem:[#allocation20_spill] sm:$0xff]  ;;  %v7408_v51 = vld [vmem:[#allocation21_spill] sm:$0xff] }
 0x654   :  { %v4479_v17 = vadd.f32 %v7403_v45, %v4303_v47  ;;  %v4484_v41 = vadd.f32 %v7404_v1, %v4308_v7  ;;  %v4652_v33 = vadd.f32 %v7405_v13, %v4476_v11  ;;  %v4827_v27 = vadd.f32 %v4732_v63, %v4651_v22  ;;  %v7413_v50 = vld [vmem:[#allocation28_spill] sm:$0xff]  ;;  %v7414_v15 = vld [vmem:[#allocation29_spill] sm:$0xff]  ;;  %v7417_v22 = vld [vmem:[#allocation10_spill] sm:$0xff] }
 0x655   :  { %v4738_v16 = vpop.f32.mrf.mxu1  ;;  %v4777_v54 = vpop.f32.mrf.mxu0  ;;  %v4480_v44 = vadd.f32 %v7406_v23, %v4304_v0  ;;  %v4485_v19 = vadd.f32 %v7407_v24, %v4309_v30  ;;  %v4486_v9 = vadd.f32 %v7408_v51, %v4310_v14  ;;  %v4657_v59 = vadd.f32 %v7409_v20, %v4481_v5  ;;  %v7415_v48 = vld [vmem:[#allocation30_spill] sm:$0xff] }
 0x656   :  { %v4653_v55 = vadd.f32 %v7410_v53, %v4477_v29  ;;  %v4658_v37 = vadd.f32 %v7411_v3, %v4482_v6  ;;  %v4828_v36 = vadd.f32 %v4734_v12, %v4652_v33  ;;  %v4654_v63 = vadd.f32 %v7412_v18, %v4478_v26  ;;  %v7416_v12 = vld [vmem:[#allocation31_spill] sm:$0xff] }
 0x657   :  { %v4779_v62 = vpop.f32.mrf.mxu0  ;;  %v4818_v42 = vpop.f32.mrf.mxu1  ;;  %v4659_v28 = vadd.f32 %v7413_v50, %v4483_v60  ;;  %v4655_v52 = vadd.f32 %v7414_v15, %v4479_v17  ;;  %v4660_v2 = vadd.f32 %v7415_v48, %v4484_v41  ;;  %v4833_v43 = vadd.f32 %v4736_v40, %v4657_v59 }
 0x658   :  { %v4829_v32 = vadd.f32 %v4775_v21, %v4653_v55  ;;  %v4656_v47 = vadd.f32 %v7416_v12, %v4480_v44  ;;  %v4661_v7 = vadd.f32 %v6992_v46, %v4485_v19  ;;  %v4662_v0 = vadd.f32 %v7002_v38, %v4486_v9  ;;  %v7421_v12 = vld [vmem:[#allocation14_spill] sm:$0xff] }
 0x659   :  { %v4781_v39 = vpop.f32.mrf.mxu0  ;;  %v4820_v35 = vpop.f32.mrf.mxu1  ;;  %v4834_v30 = vadd.f32 %v4738_v16, %v4658_v37  ;;  %v4830_v6 = vadd.f32 %v4777_v54, %v4654_v63  ;;  %v4835_v61 = vadd.f32 %v4779_v62, %v4659_v28  ;;  %v4831_v26 = vadd.f32 %v4818_v42, %v4655_v52  ;;  %v7418_v16 = vld [vmem:[#allocation11_spill] sm:$0xff]  ;;  %v7420_v63 = vld [vmem:[#allocation13_spill] sm:$0xff] }
 0x65a   :  { %v4836_v25 = vadd.f32 %v4781_v39, %v4660_v2  ;;  %v4832_v46 = vadd.f32 %v4820_v35, %v4656_v47  ;;  %v7419_v39 = vld [vmem:[#allocation12_spill] sm:$0xff] }
 0x65b   :  { %v4822_v4 = vpop.f32.mrf.mxu1  ;;  %v4908_v10 = vpop.f32.mrf.mxu0 }
 0x65c   :  { %v5003_v8 = vadd.f32 %v4908_v10, %v4827_v27  ;;  %v4837_v41 = vadd.f32 %v4822_v4, %v4661_v7 }
 0x65d   :  { %v4824_v49 = vpop.f32.mrf.mxu1  ;;  %v4910_v56 = vpop.f32.mrf.mxu0 }
 0x65e   :  { %v5004_v34 = vadd.f32 %v4910_v56, %v4828_v36  ;;  %v7043_v31 = vadd.f32 %v7030_v57, %v5003_v8  ;;  %v4838_v4 = vadd.f32 %v4824_v49, %v4662_v0 }
 0x65f   :  { %v4912_v14 = vpop.f32.mrf.mxu0  ;;  %v4951_v11 = vpop.f32.mrf.mxu1 }
 0x660   :  { %v7051_v5 = vadd.f32 %v7030_v57, %v5004_v34  ;;  %v5009_v40 = vadd.f32 %v4912_v14, %v4833_v43  ;;  %v5005_v21 = vadd.f32 %v4951_v11, %v4829_v32  ;;  %v5037_v29 = vmul.f32 %v7043_v31, %v7417_v22 }
 0x661   :  { %v4914_v60 = vpop.f32.mrf.mxu0  ;;  %v4953_v45 = vpop.f32.mrf.mxu1 }
 0x662   :  { %v7056_v38 = vadd.f32 %v7030_v57, %v5005_v21  ;;  %v5038_v17 = vmul.f32 %v7051_v5, %v7418_v16  ;;  %v7061_v1 = vadd.f32 %v7045_v58, %v5009_v40  ;;  %v5069_v13 = vmul.f32 %v5037_v29, %v7043_v31 }
 0x663   :  { %v5010_v33 = vadd.f32 %v4914_v60, %v4834_v30  ;;  %v5006_v54 = vadd.f32 %v4953_v45, %v4830_v6  ;;  %v4955_v62 = vpop.f32.mrf.mxu1  ;;  %v4994_v42 = vpop.f32.mrf.mxu0  ;;  %v7422_v60 = vld [vmem:[#allocation15_spill] sm:$0xff] }
 0x664   :  { %v5039_v27 = vmul.f32 %v7056_v38, %v7419_v39  ;;  %v5049_v35 = vadd.f32 %v5038_v17, %v5037_v29  ;;  %v5070_v23 = vmul.f32 %v5038_v17, %v7051_v5  ;;  %v5043_v44 = vmul.f32 %v7061_v1, %v7417_v22 }
 0x665   :  { %v7070_v24 = vadd.f32 %v7045_v58, %v5010_v33  ;;  %v7073_v19 = vadd.f32 %v7030_v57, %v5006_v54  ;;  %v5011_v51 = vadd.f32 %v4955_v62, %v4835_v61  ;;  %v5007_v9 = vadd.f32 %v4994_v42, %v4831_v26  ;;  %v4957_v20 = vpop.f32.mrf.mxu1  ;;  %v4996_v59 = vpop.f32.mrf.mxu0 }
 0x666   :  { %v5050_v10 = vadd.f32 %v5049_v35, %v5039_v27  ;;  %v5071_v53 = vmul.f32 %v5039_v27, %v7056_v38  ;;  %v5081_v55 = vadd.f32 %v5070_v23, %v5069_v13  ;;  %v5056_v37 = vsel %vm103_vm1, %v5043_v44, 0.0 }
 0x667   :  { %v5044_v3 = vmul.f32 %v7070_v24, %v7418_v16  ;;  %v5075_v36 = vmul.f32 %v5043_v44, %v7061_v1  ;;  %v7081_v8 = vadd.f32 %v7045_v58, %v5011_v51  ;;  %v4998_v18 = vpop.f32.mrf.mxu0  ;;  %v5040_v50 = vmul.f32 %v7073_v19, %v7420_v63 }
 0x668   :  { %v7086_v28 = vadd.f32 %v7030_v57, %v5007_v9  ;;  %v5012_v15 = vadd.f32 %v4957_v20, %v4836_v25  ;;  %v5008_v52 = vadd.f32 %v4996_v59, %v4832_v46  ;;  %v5082_v48 = vadd.f32 %v5081_v55, %v5071_v53 }
 0x669   :  { %v5057_v2 = vsel %vm103_vm1, %v5044_v3, 0.0  ;;  %v5076_v49 = vmul.f32 %v5044_v3, %v7070_v24  ;;  %v5088_v56 = vsel %vm103_vm1, %v5075_v36, 0.0  ;;  %v5000_v43 = vpop.f32.mrf.mxu0  ;;  %v5045_v34 = vmul.f32 %v7081_v8, %v7419_v39 }
 0x66a   :  { %v5058_v32 = vadd.f32 %v5057_v2, %v5056_v37  ;;  %v5041_v47 = vmul.f32 %v7086_v28, %v7421_v12  ;;  %v7096_v7 = vadd.f32 %v7045_v58, %v5012_v15  ;;  %v7100_v30 = vadd.f32 %v7030_v57, %v5008_v52 }
 0x66b   :  { %v5089_v0 = vsel %vm103_vm1, %v5076_v49, 0.0  ;;  %v5013_v14 = vadd.f32 %v4998_v18, %v4837_v41  ;;  %v5014_v11 = vadd.f32 %v5000_v43, %v4838_v4  ;;  %v5072_v21 = vmul.f32 %v5040_v50, %v7073_v19 }
 0x66c   :  { %v5090_v40 = vadd.f32 %v5089_v0, %v5088_v56  ;;  %v5059_v22 = vsel %vm103_vm1, %v5045_v34, 0.0  ;;  %v5077_v29 = vmul.f32 %v5045_v34, %v7081_v8  ;;  %v5073_v6 = vmul.f32 %v5041_v47, %v7086_v28 }
 0x66d   :  { %v5046_v61 = vmul.f32 %v7096_v7, %v7420_v63  ;;  %v7109_v26 = vadd.f32 %v7045_v58, %v5013_v14  ;;  %v7112_v57 = vadd.f32 %v7045_v58, %v5014_v11  ;;  %v5042_v45 = vmul.f32 %v7100_v30, %v7422_v60 }
 0x66e   :  { %v5091_v25 = vsel %vm103_vm1, %v5077_v29, 0.0  ;;  %v5051_v46 = vadd.f32 %v5050_v10, %v5040_v50  ;;  %v5060_v16 = vadd.f32 %v5059_v22, %v5058_v32  ;;  %v5083_v42 = vadd.f32 %v5082_v48, %v5072_v21 }
 0x66f   :  { %v5078_v17 = vmul.f32 %v5046_v61, %v7096_v7  ;;  %v5047_v41 = vmul.f32 %v7109_v26, %v7421_v12  ;;  %v5048_v13 = vmul.f32 %v7112_v57, %v7422_v60  ;;  %v5061_v33 = vsel %vm103_vm1, %v5046_v61, 0.0 }
 0x670   :  { %v5052_v54 = vadd.f32 %v5051_v46, %v5041_v47  ;;  %v5062_v58 = vadd.f32 %v5061_v33, %v5060_v16  ;;  %v5092_v62 = vadd.f32 %v5091_v25, %v5090_v40  ;;  %v5074_v53 = vmul.f32 %v5042_v45, %v7100_v30 }
 0x671   :  { %v5079_v39 = vmul.f32 %v5047_v41, %v7109_v26  ;;  %v5063_v27 = vsel %vm103_vm1, %v5047_v41, 0.0  ;;  %v5065_v35 = vsel %vm103_vm1, %v5048_v13, 0.0  ;;  %v5080_v23 = vmul.f32 %v5048_v13, %v7112_v57 }
 0x672   :  { %v5053_v44 = vadd.f32 %v5052_v54, %v5042_v45  ;;  %v5064_v51 = vadd.f32 %v5063_v27, %v5062_v58  ;;  %v5093_v9 = vsel %vm103_vm1, %v5078_v17, 0.0  ;;  %v5084_v55 = vadd.f32 %v5083_v42, %v5073_v6 }
 0x673   :  { %v5094_v20 = vadd.f32 %v5093_v9, %v5092_v62  ;;  %v5095_v59 = vsel %vm103_vm1, %v5079_v39, 0.0  ;;  %v5097_v10 = vsel %vm103_vm1, %v5080_v23, 0.0 }
 0x674   :  { %5054 = vadd.xlane.f32.xlu0 %v5053_v44  ;;  %v5066_v4 = vadd.f32 %v5065_v35, %v5064_v51  ;;  %v5085_v36 = vadd.f32 %v5084_v55, %v5074_v53 }
 0x675   :  { %v5096_v3 = vadd.f32 %v5095_v59, %v5094_v20 }
 0x676   :  { %5067 = vadd.xlane.f32.xlu1 %v5066_v4 }
 0x677   :  { %v5098_v37 = vadd.f32 %v5097_v10, %v5096_v3 }
 0x679   :  { %5099 = vadd.xlane.f32.xlu0 %v5098_v37 }
 0x67a   :  { %5086 = vadd.xlane.f32.xlu1 %v5085_v36 }
 0x6fd   :  { %v5055_v18 = vpop.xlane.xlu0 %5054 }
 0x6fe   :  { %v5101_v50 = vmul.f32 0.001953125, %v5055_v18 }
 0x6ff   :  { %v5068_v63 = vpop.xlane.xlu1 %5067 }
 0x700   :  { %v5102_v15 = vmul.f32 0.001953125, %v5068_v63  ;;  %v5105_v56 = vmul.f32 %v5101_v50, %v5101_v50  ;;  %v5111_v11 = vsub.f32 %v7043_v31, %v5101_v50  ;;  %v5112_v40 = vsub.f32 %v7051_v5, %v5101_v50 }
 0x701   :  { %v5113_v21 = vsub.f32 %v7056_v38, %v5101_v50  ;;  %v5114_v22 = vsub.f32 %v7073_v19, %v5101_v50  ;;  %v5115_v45 = vsub.f32 %v7086_v28, %v5101_v50  ;;  %v5116_v46 = vsub.f32 %v7100_v30, %v5101_v50 }
 0x702   :  { %v5100_v52 = vpop.xlane.xlu0 %5099  ;;  %v5106_v49 = vmul.f32 %v5102_v15, %v5102_v15  ;;  %v5117_v29 = vsub.f32 %v7061_v1, %v5102_v15  ;;  %v5118_v6 = vsub.f32 %v7070_v24, %v5102_v15  ;;  %v5119_v61 = vsub.f32 %v7081_v8, %v5102_v15 }
 0x703   :  { %v5087_v48 = vpop.xlane.xlu1 %5086  ;;  %v5104_v2 = vmul.f32 0.001953125, %v5100_v52  ;;  %v5120_v25 = vsub.f32 %v7096_v7, %v5102_v15  ;;  %v5121_v31 = vsub.f32 %v7109_v26, %v5102_v15  ;;  %v5122_v5 = vsub.f32 %v7112_v57, %v5102_v15 }
 0x704   :  { %v5103_v43 = vmul.f32 0.001953125, %v5087_v48 }
 0x705   :  { %v5108_v32 = vsub.f32 %v5104_v2, %v5106_v49 }
 0x706   :  { %v5107_v34 = vsub.f32 %v5103_v43, %v5105_v56 }
 0x707   :  { %v5110_v12 = vmax.f32 %v5108_v32, 0.0 }
 0x708   :  { %v5109_v47 = vmax.f32 %v5107_v34, 0.0 }
 0x709   :  { %v5124_v0 = vadd.f32 1e-05, %v5110_v12 }
 0x70a   :  { %v5123_v14 = vadd.f32 1e-05, %v5109_v47 }
 0x70b   :  { %5547 = vrsqrt.f32 %v5124_v0 }
 0x70c   :  { %5549 = vrsqrt.f32 %v5123_v14 }
 0x718   :  { %v5548_v60 = vpop.eup %5547 }
 0x719   :  { %v5550_v38 = vpop.eup %5549  ;;  %v7143_v16 = vmul.f32 %v5548_v60, %v5117_v29  ;;  %v7145_v19 = vmul.f32 %v5548_v60, %v5118_v6  ;;  %v7147_v1 = vmul.f32 %v5548_v60, %v5119_v61  ;;  %v7149_v24 = vmul.f32 %v5548_v60, %v5120_v25 }
 0x71a   :  { %v7151_v8 = vmul.f32 %v5548_v60, %v5121_v31  ;;  %v7153_v7 = vmul.f32 %v5548_v60, %v5122_v5  ;;  %v7155_v28 = vmul.f32 %v5550_v38, %v5111_v11  ;;  %v7157_v30 = vmul.f32 %v5550_v38, %v5112_v40 }
 0x71b   :  { %v5145_v26 = vmax.f32 %v7143_v16, 0.0  ;;  %v5146_v57 = vmax.f32 %v7145_v19, 0.0  ;;  %v5147_v17 = vmax.f32 %v7147_v1, 0.0  ;;  %v5148_v41 = vmax.f32 %v7149_v24, 0.0 }
 0x71c   :  { %v5149_v13 = vmax.f32 %v7151_v8, 0.0  ;;  %v5150_v33 = vmax.f32 %v7153_v7, 0.0  ;;  %v5129_v54 = vmul.f32 %v5550_v38, %v5113_v21  ;;  %v5130_v58 = vmul.f32 %v5550_v38, %v5114_v22 }
 0x71d   :  { %v5151_v62 = vsel %vm103_vm1, %v5145_v26, -inf  ;;  %v5159_v42 = vsel %vm103_vm1, %v5146_v57, -inf  ;;  %v5167_v39 = vsel %vm103_vm1, %v5147_v17, -inf  ;;  %v5175_v27 = vsel %vm103_vm1, %v5148_v41, -inf }
 0x71e   :  { %v5183_v35 = vsel %vm103_vm1, %v5149_v13, -inf  ;;  %v5191_v23 = vsel %vm103_vm1, %v5150_v33, -inf  ;;  %v5131_v44 = vmul.f32 %v5550_v38, %v5115_v45  ;;  %v5132_v51 = vmul.f32 %v5550_v38, %v5116_v46 }
 0x71f   :  { %v5139_v9 = vmax.f32 %v7155_v28, 0.0  ;;  %v5140_v20 = vmax.f32 %v7157_v30, 0.0  ;;  %v5141_v59 = vmax.f32 %v5129_v54, 0.0  ;;  %v5142_v4 = vmax.f32 %v5130_v58, 0.0 }
 0x720   :  { %v5143_v10 = vmax.f32 %v5131_v44, 0.0  ;;  %v5144_v53 = vmax.f32 %v5132_v51, 0.0 }
 0x721   :  { %v5152_v55 = vmax.f32 %v5139_v9, %v5151_v62  ;;  %v5160_v3 = vmax.f32 %v5140_v20, %v5159_v42  ;;  %v5168_v37 = vmax.f32 %v5141_v59, %v5167_v39  ;;  %v5176_v36 = vmax.f32 %v5142_v4, %v5175_v27 }
 0x722   :  { %v5184_v18 = vmax.f32 %v5143_v10, %v5183_v35  ;;  %v5192_v63 = vmax.f32 %v5144_v53, %v5191_v23 }
 0x723   :  { %v5153_v50 = vrot.slane %v5152_v55, 4  ;;  %v5161_v15 = vrot.slane %v5160_v3, 4  ;;  %v5169_v52 = vrot.slane %v5168_v37, 4  ;;  %v5177_v48 = vrot.slane %v5176_v36, 4 }
 0x724   :  { %v5185_v2 = vrot.slane %v5184_v18, 4  ;;  %v5193_v49 = vrot.slane %v5192_v63, 4 }
 0x725   :  { %v5154_v56 = vmax.f32 %v5152_v55, %v5153_v50  ;;  %v5162_v43 = vmax.f32 %v5160_v3, %v5161_v15  ;;  %v5170_v32 = vmax.f32 %v5168_v37, %v5169_v52  ;;  %v5178_v34 = vmax.f32 %v5176_v36, %v5177_v48 }
 0x726   :  { %v5186_v12 = vmax.f32 %v5184_v18, %v5185_v2  ;;  %v5194_v47 = vmax.f32 %v5192_v63, %v5193_v49 }
 0x727   :  { %v5155_v0 = vrot.slane %v5154_v56, 2  ;;  %v5163_v14 = vrot.slane %v5162_v43, 2  ;;  %v5171_v11 = vrot.slane %v5170_v32, 2  ;;  %v5179_v40 = vrot.slane %v5178_v34, 2 }
 0x728   :  { %v5187_v21 = vrot.slane %v5186_v12, 2  ;;  %v5195_v22 = vrot.slane %v5194_v47, 2 }
 0x729   :  { %v5156_v29 = vmax.f32 %v5154_v56, %v5155_v0  ;;  %v5164_v6 = vmax.f32 %v5162_v43, %v5163_v14  ;;  %v5172_v61 = vmax.f32 %v5170_v32, %v5171_v11  ;;  %v5180_v25 = vmax.f32 %v5178_v34, %v5179_v40 }
 0x72a   :  { %v5188_v60 = vmax.f32 %v5186_v12, %v5187_v21  ;;  %v5196_v45 = vmax.f32 %v5194_v47, %v5195_v22 }
 0x72b   :  { %v5157_v46 = vrot.slane %v5156_v29, 1  ;;  %v5165_v31 = vrot.slane %v5164_v6, 1  ;;  %v5173_v5 = vrot.slane %v5172_v61, 1  ;;  %v5181_v38 = vrot.slane %v5180_v25, 1 }
 0x72c   :  { %v5189_v28 = vrot.slane %v5188_v60, 1  ;;  %v5197_v30 = vrot.slane %v5196_v45, 1 }
 0x72d   :  { %v5158_v54 = vmax.f32 %v5156_v29, %v5157_v46  ;;  %v5166_v58 = vmax.f32 %v5164_v6, %v5165_v31  ;;  %v5174_v62 = vmax.f32 %v5172_v61, %v5173_v5  ;;  %v5182_v42 = vmax.f32 %v5180_v25, %v5181_v38 }
 0x72e   :  { %v5190_v39 = vmax.f32 %v5188_v60, %v5189_v28  ;;  %v5198_v27 = vmax.f32 %v5196_v45, %v5197_v30 }
 0x72f   :  { %v5199_v35 = vsub.f32 %v5139_v9, %v5158_v54  ;;  %v5200_v23 = vsub.f32 %v5140_v20, %v5166_v58  ;;  %v5201_v44 = vsub.f32 %v5141_v59, %v5174_v62  ;;  %v5202_v51 = vsub.f32 %v5142_v4, %v5182_v42 }
 0x730   :  { %v5203_v55 = vsub.f32 %v5143_v10, %v5190_v39  ;;  %v5204_v3 = vsub.f32 %v5144_v53, %v5198_v27  ;;  %v5205_v37 = vsub.f32 %v5145_v26, %v5158_v54  ;;  %v5206_v50 = vsub.f32 %v5146_v57, %v5166_v58 }
 0x731   :  { %v5211_v36 = vmul.f32 1.442695, %v5199_v35  ;;  %v5213_v18 = vmul.f32 1.442695, %v5200_v23  ;;  %v5215_v63 = vmul.f32 1.442695, %v5201_v44  ;;  %v5207_v52 = vsub.f32 %v5147_v17, %v5174_v62 }
 0x732   :  { %v5217_v15 = vmul.f32 1.442695, %v5202_v51  ;;  %v5219_v9 = vmul.f32 1.442695, %v5203_v55  ;;  %v5208_v20 = vsub.f32 %v5148_v41, %v5182_v42  ;;  %v5221_v59 = vmul.f32 1.442695, %v5204_v3 }
 0x733   :  { %5551 = vpow2.f32 %v5211_v36  ;;  %v5209_v16 = vsub.f32 %v5149_v13, %v5190_v39  ;;  %v5223_v26 = vmul.f32 1.442695, %v5205_v37  ;;  %v5210_v19 = vsub.f32 %v5150_v33, %v5198_v27 }
 0x734   :  { %5553 = vpow2.f32 %v5213_v18  ;;  %v5225_v57 = vmul.f32 1.442695, %v5206_v50  ;;  %v5227_v1 = vmul.f32 1.442695, %v5207_v52  ;;  %v5229_v17 = vmul.f32 1.442695, %v5208_v20 }
 0x735   :  { %5555 = vpow2.f32 %v5215_v63  ;;  %v5231_v4 = vmul.f32 1.442695, %v5209_v16  ;;  %v5233_v24 = vmul.f32 1.442695, %v5210_v19 }
 0x736   :  { %5557 = vpow2.f32 %v5217_v15 }
 0x737   :  { %5559 = vpow2.f32 %v5219_v9 }
 0x738   :  { %5561 = vpow2.f32 %v5221_v59 }
 0x739   :  { %5563 = vpow2.f32 %v5223_v26 }
 0x73a   :  { %5565 = vpow2.f32 %v5225_v57 }
 0x73b   :  { %5567 = vpow2.f32 %v5227_v1 }
 0x73c   :  { %5569 = vpow2.f32 %v5229_v17 }
 0x73d   :  { %5571 = vpow2.f32 %v5231_v4 }
 0x73e   :  { %5573 = vpow2.f32 %v5233_v24 }
 0x740   :  { %v7197_v8 = vpop.eup %5551 }
 0x741   :  { %v7199_v41 = vpop.eup %5553 }
 0x742   :  { %v7201_v7 = vpop.eup %5555 }
 0x743   :  { %v7203_v13 = vpop.eup %5557 }
 0x744   :  { %v7205_v33 = vpop.eup %5559 }
 0x745   :  { %v7207_v10 = vpop.eup %5561 }
 0x746   :  { %v7209_v53 = vpop.eup %5563 }
 0x747   :  { %v7211_v48 = vpop.eup %5565  ;;  %v5235_v2 = vsel %vm103_vm1, %v7209_v53, 0.0 }
 0x748   :  { %v7215_v49 = vpop.eup %5567  ;;  %v5236_v56 = vadd.f32 %v7197_v8, %v5235_v2  ;;  %v5243_v43 = vsel %vm103_vm1, %v7211_v48, 0.0 }
 0x749   :  { %v7220_v32 = vpop.eup %5569  ;;  %v5244_v34 = vadd.f32 %v7199_v41, %v5243_v43  ;;  %v5251_v12 = vsel %vm103_vm1, %v7215_v49, 0.0 }
 0x74a   :  { %v7225_v47 = vpop.eup %5571  ;;  %v5237_v0 = vrot.slane %v5236_v56, 4  ;;  %v5252_v14 = vadd.f32 %v7201_v7, %v5251_v12  ;;  %v5259_v11 = vsel %vm103_vm1, %v7220_v32, 0.0 }
 0x74b   :  { %v7230_v40 = vpop.eup %5573  ;;  %v5245_v21 = vrot.slane %v5244_v34, 4  ;;  %v5260_v22 = vadd.f32 %v7203_v13, %v5259_v11  ;;  %v5267_v29 = vsel %vm103_vm1, %v7225_v47, 0.0 }
 0x74c   :  { %v5238_v6 = vadd.f32 %v5237_v0, %v5236_v56  ;;  %v5253_v61 = vrot.slane %v5252_v14, 4  ;;  %v5268_v25 = vadd.f32 %v7205_v33, %v5267_v29  ;;  %v5275_v60 = vsel %vm103_vm1, %v7230_v40, 0.0 }
 0x74d   :  { %v5246_v45 = vadd.f32 %v5245_v21, %v5244_v34  ;;  %v5261_v46 = vrot.slane %v5260_v22, 4  ;;  %v5276_v31 = vadd.f32 %v7207_v10, %v5275_v60 }
 0x74e   :  { %v5239_v5 = vrot.slane %v5238_v6, 2  ;;  %v5254_v38 = vadd.f32 %v5253_v61, %v5252_v14  ;;  %v5269_v28 = vrot.slane %v5268_v25, 4 }
 0x74f   :  { %v5247_v30 = vrot.slane %v5246_v45, 2  ;;  %v5262_v54 = vadd.f32 %v5261_v46, %v5260_v22  ;;  %v5277_v58 = vrot.slane %v5276_v31, 4 }
 0x750   :  { %v5240_v62 = vadd.f32 %v5239_v5, %v5238_v6  ;;  %v5255_v42 = vrot.slane %v5254_v38, 2  ;;  %v5270_v39 = vadd.f32 %v5269_v28, %v5268_v25 }
 0x751   :  { %v5248_v27 = vadd.f32 %v5247_v30, %v5246_v45  ;;  %v5263_v35 = vrot.slane %v5262_v54, 2  ;;  %v5278_v23 = vadd.f32 %v5277_v58, %v5276_v31 }
 0x752   :  { %v5241_v44 = vrot.slane %v5240_v62, 1  ;;  %v5256_v51 = vadd.f32 %v5255_v42, %v5254_v38  ;;  %v5271_v55 = vrot.slane %v5270_v39, 2 }
 0x753   :  { %v5249_v3 = vrot.slane %v5248_v27, 1  ;;  %v5264_v37 = vadd.f32 %v5263_v35, %v5262_v54  ;;  %v5279_v36 = vrot.slane %v5278_v23, 2 }
 0x754   :  { %v5242_v18 = vadd.f32 %v5241_v44, %v5240_v62  ;;  %v5257_v63 = vrot.slane %v5256_v51, 1  ;;  %v5272_v50 = vadd.f32 %v5271_v55, %v5270_v39 }
 0x755   :  { %v5250_v15 = vadd.f32 %v5249_v3, %v5248_v27  ;;  %v5265_v52 = vrot.slane %v5264_v37, 1  ;;  %v5280_v9 = vadd.f32 %v5279_v36, %v5278_v23 }
 0x756   :  { %v5258_v20 = vadd.f32 %v5257_v63, %v5256_v51  ;;  %v5273_v59 = vrot.slane %v5272_v50, 1  ;;  %5575 = vrcp.f32 %v5242_v18 }
 0x757   :  { %v5266_v16 = vadd.f32 %v5265_v52, %v5264_v37  ;;  %v5281_v26 = vrot.slane %v5280_v9, 1  ;;  %5577 = vrcp.f32 %v5250_v15 }
 0x758   :  { %v5274_v19 = vadd.f32 %v5273_v59, %v5272_v50  ;;  %5579 = vrcp.f32 %v5258_v20 }
 0x759   :  { %v5282_v57 = vadd.f32 %v5281_v26, %v5280_v9  ;;  %5581 = vrcp.f32 %v5266_v16 }
 0x75a   :  { %5583 = vrcp.f32 %v5274_v19 }
 0x75b   :  { %5585 = vrcp.f32 %v5282_v57 }
 0x763   :  { %v5576_v1 = vpop.eup %5575 }
 0x764   :  { %v5578_v17 = vpop.eup %5577  ;;  %v5284_v4 = vmul.f32 %v5576_v1, %v7197_v8  ;;  %v5295_v24 = vmul.f32 %v5576_v1, %v7209_v53 }
 0x765   :  { %v5580_v2 = vpop.eup %5579  ;;  %v5286_v56 = vmul.f32 %v5578_v17, %v7199_v41  ;;  %v5296_v43 = vmul.f32 %v5578_v17, %v7211_v48 }
 0x766   :  { %v5582_v34 = vpop.eup %5581  ;;  %v5288_v12 = vmul.f32 %v5580_v2, %v7201_v7  ;;  %v5297_v0 = vmul.f32 %v5580_v2, %v7215_v49  ;;  %5301 = vst [vmem:[%s7293_s6] sm:$0xff] %v5284_v4  ;;  %5307 = vst [vmem:[%s7293_s6 + $0x30] sm:$0x1] %v5295_v24 }
 0x767   :  { %v5584_v8 = vpop.eup %5583  ;;  %v5290_v53 = vmul.f32 %v5582_v34, %v7203_v13  ;;  %v5298_v41 = vmul.f32 %v5582_v34, %v7220_v32  ;;  %5302 = vst [vmem:[%s7293_s6 + $0x8] sm:$0xff] %v5286_v56  ;;  %5308 = vst [vmem:[%s7293_s6 + $0x38] sm:$0x1] %v5296_v43 }
 0x768   :  { %v5586_v7 = vpop.eup %5585  ;;  %v5292_v48 = vmul.f32 %v5584_v8, %v7205_v33  ;;  %v5299_v49 = vmul.f32 %v5584_v8, %v7225_v47  ;;  %5303 = vst [vmem:[%s7293_s6 + $0x10] sm:$0xff] %v5288_v12  ;;  %5309 = vst [vmem:[%s7293_s6 + $0x40] sm:$0x1] %v5297_v0 }
 0x769   :  { %v5294_v13 = vmul.f32 %v5586_v7, %v7207_v10  ;;  %v5300_v32 = vmul.f32 %v5586_v7, %v7230_v40  ;;  %5304 = vst [vmem:[%s7293_s6 + $0x18] sm:$0xff] %v5290_v53  ;;  %5310 = vst [vmem:[%s7293_s6 + $0x48] sm:$0x1] %v5298_v41 }
 0x76a   :  { %5305 = vst [vmem:[%s7293_s6 + $0x20] sm:$0xff] %v5292_v48  ;;  %5311 = vst [vmem:[%s7293_s6 + $0x50] sm:$0x1] %v5299_v49 }
 0x76b   :  { %5306 = vst [vmem:[%s7293_s6 + $0x28] sm:$0xff] %v5294_v13  ;;  %5312 = vst [vmem:[%s7293_s6 + $0x58] sm:$0x1] %v5300_v32 }

</bundles_post_ra>
